<compile_context>
chip_gen: v5e
topology: v5e:2x2
jax: 0.10.0
libtpu: 0.0.40
codegen_flags: <defaults>
</compile_context>

<pallas_src>
import functools

import jax
import jax.numpy as jnp
from jax.experimental import pallas as pl
from jax.experimental.pallas import tpu as pltpu


LANES = 128                        # vreg lane width -> Cout padded to a multiple of this
MAX_TILE_M = 1024                  # rows per grid step (upper bound)
TILE_BYTE_BUDGET = 8 * 1024 * 1024  # per patch-tile byte budget (double-buffered by Pallas)
VMEM_LIMIT = 32 * 1024 * 1024      # conservative scoped VMEM (v7x physical is 64 MiB)
BN_EPS = 1e-5
LEAKY_SLOPE = 0.2


def _round_up(x, m):
    return (x + m - 1) // m * m


def _pick_tile_m(m, k, bytes_per_elem=2):
    """Largest tile <= MAX_TILE_M that divides M and keeps the patch tile within budget."""
    if m <= MAX_TILE_M and m * k * bytes_per_elem <= TILE_BYTE_BUDGET:
        return m
    for t in (1024, 512, 256, 128, 64, 32, 16, 8):
        if t <= MAX_TILE_M and m % t == 0 and t * k * bytes_per_elem <= TILE_BYTE_BUDGET:
            return t
    for t in (8, 16, 32, 64, 128):          # fallback: smallest dividing tile
        if m % t == 0:
            return t
    return m


# ------------------------------ Pallas kernels ------------------------------ #

def _matmul_act_kernel(p_ref, w_ref, o_ref, *, act):
    """One M-tile:  y = patches @ W  (bf16 MXU, f32 acc)  -> activation -> store."""
    y = jnp.dot(p_ref[...], w_ref[...], preferred_element_type=jnp.float32)
    if act == "leaky":
        y = jnp.where(y >= 0.0, y, LEAKY_SLOPE * y)
    elif act == "sigmoid":
        y = 1.0 / (1.0 + jnp.exp(-y))            # EUP exp; exact sigmoid range
    o_ref[...] = y.astype(o_ref.dtype)


def _matmul_stats_kernel(p_ref, w_ref, y_ref, stats_ref):
    """One M-tile: matmul, write pre-BN y (bf16), accumulate per-channel sum / sumsq
    into the resident stats output block across the M grid axis ('arbitrary')."""
    @pl.when(pl.program_id(0) == 0)
    def _():
        stats_ref[...] = jnp.zeros_like(stats_ref)

    y = jnp.dot(p_ref[...], w_ref[...], preferred_element_type=jnp.float32)
    y_ref[...] = y.astype(y_ref.dtype)
    stats_ref[0:1, :] += jnp.sum(y, axis=0, keepdims=True)
    stats_ref[1:2, :] += jnp.sum(y * y, axis=0, keepdims=True)


def _bn_act_kernel(y_ref, stats_ref, g_ref, b_ref, o_ref, *, inv_count):
    """Training-mode BatchNorm (batch stats, biased var) folded into per-channel
    scale/shift, then LeakyReLU(0.2), on one M-tile."""
    y = y_ref[...].astype(jnp.float32)
    mean = stats_ref[0:1, :] * inv_count
    var = jnp.maximum(stats_ref[1:2, :] * inv_count - mean * mean, 0.0)
    inv_std = jax.lax.rsqrt(var + BN_EPS)
    scale = g_ref[...] * inv_std
    shift = b_ref[...] - mean * scale
    y = y * scale + shift
    y = jnp.where(y >= 0.0, y, LEAKY_SLOPE * y)
    o_ref[...] = y.astype(o_ref.dtype)


# ----------------------------- kernel wrappers ------------------------------ #

def conv_act(patches_bf16, w_pad_bf16, *, act, out_dtype):
    """Tiled (M) matmul + activation.  Output is (M, N_pad) in out_dtype."""
    m_rows, k = patches_bf16.shape
    n_pad = w_pad_bf16.shape[1]
    tm = _pick_tile_m(m_rows, k)
    return pl.pallas_call(
        functools.partial(_matmul_act_kernel, act=act),
        out_shape=jax.ShapeDtypeStruct((m_rows, n_pad), out_dtype),
        grid_spec=pltpu.PrefetchScalarGridSpec(
            num_scalar_prefetch=0,
            grid=(m_rows // tm,),
            in_specs=[pl.BlockSpec((tm, k), lambda m: (m, 0)),
                      pl.BlockSpec((k, n_pad), lambda m: (0, 0))],    # resident weights
            out_specs=pl.BlockSpec((tm, n_pad), lambda m: (m, 0)),
        ),
        compiler_params=pltpu.CompilerParams(
            dimension_semantics=("parallel",),
            vmem_limit_bytes=VMEM_LIMIT,
        ),
    )(patches_bf16, w_pad_bf16)


def conv_with_stats(patches_bf16, w_pad_bf16):
    """Tiled matmul producing pre-BN y (M, N_pad) bf16 plus per-channel [sum; sumsq]."""
    m_rows, k = patches_bf16.shape
    n_pad = w_pad_bf16.shape[1]
    tm = _pick_tile_m(m_rows, k)
    return pl.pallas_call(
        _matmul_stats_kernel,
        out_shape=(jax.ShapeDtypeStruct((m_rows, n_pad), jnp.bfloat16),
                   jax.ShapeDtypeStruct((8, n_pad), jnp.float32)),
        grid_spec=pltpu.PrefetchScalarGridSpec(
            num_scalar_prefetch=0,
            grid=(m_rows // tm,),
            in_specs=[pl.BlockSpec((tm, k), lambda m: (m, 0)),
                      pl.BlockSpec((k, n_pad), lambda m: (0, 0))],
            out_specs=(pl.BlockSpec((tm, n_pad), lambda m: (m, 0)),
                       pl.BlockSpec((8, n_pad), lambda m: (0, 0))),   # resident accumulator
        ),
        compiler_params=pltpu.CompilerParams(
            dimension_semantics=("arbitrary",),      # stats accumulate across M tiles
            vmem_limit_bytes=VMEM_LIMIT,
        ),
    )(patches_bf16, w_pad_bf16)


def bn_act(y_bf16, stats, gamma_pad, beta_pad, *, count):
    """Tiled BatchNorm(batch stats) + LeakyReLU over the pre-BN activations."""
    m_rows, n_pad = y_bf16.shape
    tm = _pick_tile_m(m_rows, n_pad)
    return pl.pallas_call(
        functools.partial(_bn_act_kernel, inv_count=1.0 / float(count)),
        out_shape=jax.ShapeDtypeStruct((m_rows, n_pad), jnp.bfloat16),
        grid_spec=pltpu.PrefetchScalarGridSpec(
            num_scalar_prefetch=0,
            grid=(m_rows // tm,),
            in_specs=[pl.BlockSpec((tm, n_pad), lambda m: (m, 0)),
                      pl.BlockSpec((8, n_pad), lambda m: (0, 0)),
                      pl.BlockSpec((1, n_pad), lambda m: (0, 0)),
                      pl.BlockSpec((1, n_pad), lambda m: (0, 0))],
            out_specs=pl.BlockSpec((tm, n_pad), lambda m: (m, 0)),
        ),
        compiler_params=pltpu.CompilerParams(
            dimension_semantics=("parallel",),
            vmem_limit_bytes=VMEM_LIMIT,
        ),
    )(y_bf16, stats, gamma_pad, beta_pad)


# -------------------------------- JAX glue ---------------------------------- #

def im2col(x_nhwc, k, s, p):
    """Extract conv patches. Feature ordering = (kh, kw, Cin) flattened, matching a
    (kh, kw, Cin, Cout)-reshaped PyTorch weight."""
    n, h, w, c = x_nhwc.shape
    xp = jnp.pad(x_nhwc, ((0, 0), (p, p), (p, p), (0, 0)))
    ho = (h + 2 * p - k) // s + 1
    wo = (w + 2 * p - k) // s + 1
    cols = []
    for di in range(k):
        for dj in range(k):
            cols.append(
                xp[:, di:di + (ho - 1) * s + 1:s, dj:dj + (wo - 1) * s + 1:s, :]
            )  # (N, Ho, Wo, C)
    patches = jnp.stack(cols, axis=3)                  # (N, Ho, Wo, k*k, C)
    return patches.reshape(n * ho * wo, k * k * c), (n, ho, wo)


def _prep_weight(w_torch):
    """(Cout, Cin, kh, kw) -> (K, N_pad) bf16, zero-padded on the channel (lane) axis."""
    cout = w_torch.shape[0]
    n_pad = _round_up(cout, LANES)
    w_mat = jnp.transpose(w_torch, (2, 3, 1, 0)).reshape(-1, cout)     # (K, Cout)
    w_pad = jnp.zeros((w_mat.shape[0], n_pad), jnp.float32).at[:, :cout].set(w_mat)
    return w_pad.astype(jnp.bfloat16)


def _prep_affine(gamma, beta):
    cout = gamma.shape[0]
    n_pad = _round_up(cout, LANES)
    g = jnp.ones((1, n_pad), jnp.float32).at[0, :cout].set(gamma)
    b = jnp.zeros((1, n_pad), jnp.float32).at[0, :cout].set(beta)
    return g, b


def init_discriminator_params(key, nc, ndf):
    """Synthetic DCGAN-style params: conv weights ~ N(0, 0.02), BN gamma=1, beta=0."""
    channel_pairs = [(nc, ndf), (ndf, ndf * 2), (ndf * 2, ndf * 4),
                     (ndf * 4, ndf * 8), (ndf * 8, 1)]
    params = []
    for cin, cout in channel_pairs:
        key, sub = jax.random.split(key)
        w = 0.02 * jax.random.normal(sub, (cout, cin, 4, 4), jnp.float32)  # torch layout
        params.append((w, jnp.ones((cout,), jnp.float32), jnp.zeros((cout,), jnp.float32)))
    return params


def discriminator_forward(x_nchw, params):
    """Forward of the image_dim==64 Discriminator. Input NCHW, output (N, 1, 1, 1)."""
    x = jnp.transpose(x_nchw, (0, 2, 3, 1))            # -> NHWC
    cfgs = [
        dict(use_bn=False, act="leaky", k=4, s=2, p=1),    # Conv(nc, ndf)    + LeakyReLU
        dict(use_bn=True,  act="leaky", k=4, s=2, p=1),    # Conv(ndf, 2ndf)  + BN + LReLU
        dict(use_bn=True,  act="leaky", k=4, s=2, p=1),    # Conv(2ndf, 4ndf) + BN + LReLU
        dict(use_bn=True,  act="leaky", k=4, s=2, p=1),    # Conv(4ndf, 8ndf) + BN + LReLU
        dict(use_bn=False, act="sigmoid", k=4, s=1, p=0),  # Conv(8ndf, 1)    + Sigmoid
    ]
    n_layers = len(cfgs)
    for li, ((w, gamma, beta), cfg) in enumerate(zip(params, cfgs)):
        cout = w.shape[0]
        patches, (n, ho, wo) = im2col(x, cfg["k"], cfg["s"], cfg["p"])
        patches = patches.astype(jnp.bfloat16)          # halve HBM bytes on the hot stream
        w_pad = _prep_weight(w)
        if cfg["use_bn"]:
            y_pre, stats = conv_with_stats(patches, w_pad)
            g_pad, b_pad = _prep_affine(gamma, beta)
            y = bn_act(y_pre, stats, g_pad, b_pad, count=patches.shape[0])
        else:
            out_dtype = jnp.float32 if li == n_layers - 1 else jnp.bfloat16
            y = conv_act(patches, w_pad, act=cfg["act"], out_dtype=out_dtype)
        x = y[:, :cout].reshape(n, ho, wo, cout)         # drop lane padding
    return jnp.transpose(x, (0, 3, 1, 2)).astype(jnp.float32)   # NCHW: (N, 1, 1, 1)


# ---------------------------------- main ------------------------------------ #

if __name__ == "__main__":
    # image_dim must be 64 so the final 4x4 / stride-1 / pad-0 conv reduces 4x4 -> 1x1.
    batch, nc, ndf, image_dim = 2, 3, 8, 64

    key = jax.random.PRNGKey(0)
    key_x, key_p = jax.random.split(key)
    x = jax.random.normal(key_x, (batch, nc, image_dim, image_dim), jnp.float32)
    params = init_discriminator_params(key_p, nc, ndf)

    fwd = jax.jit(discriminator_forward)
    out = jax.block_until_ready(fwd(x, params))

    assert out.shape == (batch, 1, 1, 1), out.shape
    assert bool(jnp.all(jnp.isfinite(out)))
    assert bool(jnp.all((out > 0.0) & (out < 1.0)))      # sigmoid range
    print("KERNEL_OK")
</pallas_src>

<mosaic_0001>
module attributes {stable_mosaic.version = 11 : i64} {
  func.func @_matmul_act_kernel(%arg0: i32, %arg1: memref<1024x48xbf16, #tpu.memory_space<vmem>>, %arg2: memref<48x128xbf16, #tpu.memory_space<vmem>>, %arg3: memref<1024x128xbf16, #tpu.memory_space<vmem>>) attributes {dimension_semantics = [#tpu.dimension_semantics<parallel>], iteration_bounds = array<i64: 2>, scalar_prefetch = 0 : i64, scratch_operands = 0 : i64, tpu.core_type = #tpu.core_type<tc>, window_params = [{transform_indices = @transform_0, window_bounds = array<i64: 1024, 48>}, {pipeline_mode = #tpu.pipeline_mode<synchronous>, transform_indices = @transform_1, window_bounds = array<i64: 48, 128>}, {transform_indices = @transform_2, window_bounds = array<i64: 1024, 128>}]} {
    %c0 = arith.constant 0 : index
    %c0_0 = arith.constant 0 : index
    %0 = vector.load %arg1[%c0, %c0_0] : memref<1024x48xbf16, #tpu.memory_space<vmem>>, vector<1024x48xbf16>
    %c0_1 = arith.constant 0 : index
    %c0_2 = arith.constant 0 : index
    %1 = vector.load %arg2[%c0_1, %c0_2] : memref<48x128xbf16, #tpu.memory_space<vmem>>, vector<48x128xbf16>
    %cst = arith.constant dense<0.000000e+00> : vector<1024x128xf32>
    %2 = tpu.matmul %0, %1, %cst {dimension_numbers = #tpu.dot_dimension_numbers<[1], [0], [0], [1], [0, 0, 1, 1], [], []>} : vector<1024x48xbf16>, vector<48x128xbf16>, vector<1024x128xf32> -> vector<1024x128xf32>
    %cst_3 = arith.constant 0.000000e+00 : f32
    %3 = vector.broadcast %cst_3 : f32 to vector<1024x128xf32>
    %4 = arith.cmpf oge, %2, %3 : vector<1024x128xf32>
    %cst_4 = arith.constant 2.000000e-01 : f32
    %5 = vector.broadcast %cst_4 : f32 to vector<1024x128xf32>
    %6 = arith.mulf %5, %2 : vector<1024x128xf32>
    %7 = arith.select %4, %2, %6 : vector<1024x128xi1>, vector<1024x128xf32>
    %8 = arith.truncf %7 : vector<1024x128xf32> to vector<1024x128xbf16>
    %c0_5 = arith.constant 0 : index
    %c0_6 = arith.constant 0 : index
    %9 = vector.load %arg3[%c0_5, %c0_6] : memref<1024x128xbf16, #tpu.memory_space<vmem>>, vector<1024x128xbf16>
    tpu.vector_store %arg3[%c0_5, %c0_6], %8 {strides = array<i32>} : memref<1024x128xbf16, #tpu.memory_space<vmem>>, vector<1024x128xbf16>,
    return
  }
  func.func @transform_0(%arg0: i32) -> (i32, i32) {
    %c0_i32 = arith.constant 0 : i32
    %c0_i32_0 = arith.constant 0 : i32
    return %arg0, %c0_i32 : i32, i32
  }
  func.func @transform_1(%arg0: i32) -> (i32, i32) {
    %c0_i32 = arith.constant 0 : i32
    %c0_i32_0 = arith.constant 0 : i32
    %c0_i32_1 = arith.constant 0 : i32
    return %c0_i32, %c0_i32_0 : i32, i32
  }
  func.func @transform_2(%arg0: i32) -> (i32, i32) {
    %c0_i32 = arith.constant 0 : i32
    %c0_i32_0 = arith.constant 0 : i32
    return %arg0, %c0_i32 : i32, i32
  }
}

module attributes {stable_mosaic.version = 11 : i64} {
  func.func @_matmul_stats_kernel(%arg0: i32, %arg1: memref<512x128xbf16, #tpu.memory_space<vmem>>, %arg2: memref<128x128xbf16, #tpu.memory_space<vmem>>, %arg3: memref<512x128xbf16, #tpu.memory_space<vmem>>, %arg4: memref<8x128xf32, #tpu.memory_space<vmem>>) attributes {dimension_semantics = [#tpu.dimension_semantics<arbitrary>], iteration_bounds = array<i64: 1>, scalar_prefetch = 0 : i64, scratch_operands = 0 : i64, tpu.core_type = #tpu.core_type<tc>, window_params = [{transform_indices = @transform_0, window_bounds = array<i64: 512, 128>}, {pipeline_mode = #tpu.pipeline_mode<synchronous>, transform_indices = @transform_1, window_bounds = array<i64: 128, 128>}, {transform_indices = @transform_2, window_bounds = array<i64: 512, 128>}, {pipeline_mode = #tpu.pipeline_mode<synchronous>, transform_indices = @transform_3, window_bounds = array<i64: 8, 128>}]} {
    %c0_i32 = arith.constant 0 : i32
    %0 = arith.cmpi eq, %arg0, %c0_i32 : i32
    %1 = arith.extui %0 : i1 to i32
    %c0_i32_0 = arith.constant 0 : i32
    %2 = arith.cmpi ne, %1, %c0_i32_0 : i32
    scf.if %2 {
      %cst_15 = arith.constant 0.000000e+00 : f32
      %19 = vector.broadcast %cst_15 : f32 to vector<8x128xf32>
      %c0_16 = arith.constant 0 : index
      %c0_17 = arith.constant 0 : index
      %20 = vector.load %arg4[%c0_16, %c0_17] : memref<8x128xf32, #tpu.memory_space<vmem>>, vector<8x128xf32>
      tpu.vector_store %arg4[%c0_16, %c0_17], %19 {strides = array<i32>} : memref<8x128xf32, #tpu.memory_space<vmem>>, vector<8x128xf32>,
    } else {
    }
    %c0 = arith.constant 0 : index
    %c0_1 = arith.constant 0 : index
    %3 = vector.load %arg1[%c0, %c0_1] : memref<512x128xbf16, #tpu.memory_space<vmem>>, vector<512x128xbf16>
    %c0_2 = arith.constant 0 : index
    %c0_3 = arith.constant 0 : index
    %4 = vector.load %arg2[%c0_2, %c0_3] : memref<128x128xbf16, #tpu.memory_space<vmem>>, vector<128x128xbf16>
    %cst = arith.constant dense<0.000000e+00> : vector<512x128xf32>
    %5 = tpu.matmul %3, %4, %cst {dimension_numbers = #tpu.dot_dimension_numbers<[1], [0], [0], [1], [0, 0, 1, 1], [], []>} : vector<512x128xbf16>, vector<128x128xbf16>, vector<512x128xf32> -> vector<512x128xf32>
    %6 = arith.truncf %5 : vector<512x128xf32> to vector<512x128xbf16>
    %c0_4 = arith.constant 0 : index
    %c0_5 = arith.constant 0 : index
    %7 = vector.load %arg3[%c0_4, %c0_5] : memref<512x128xbf16, #tpu.memory_space<vmem>>, vector<512x128xbf16>
    tpu.vector_store %arg3[%c0_4, %c0_5], %6 {strides = array<i32>} : memref<512x128xbf16, #tpu.memory_space<vmem>>, vector<512x128xbf16>,
    %c0_6 = arith.constant 0 : index
    %c0_7 = arith.constant 0 : index
    %8 = vector.load %arg4[%c0_6, %c0_7] : memref<8x128xf32, #tpu.memory_space<vmem>>, vector<1x128xf32>
    %cst_8 = arith.constant dense<0.000000e+00> : vector<128xf32>
    %9 = vector.multi_reduction <add>, %5, %cst_8 [0] : vector<512x128xf32> to vector<128xf32>
    %10 = vector.shape_cast %9 : vector<128xf32> to vector<1x128xf32>
    %11 = arith.addf %8, %10 : vector<1x128xf32>
    %c0_9 = arith.constant 0 : index
    %c0_10 = arith.constant 0 : index
    %12 = vector.load %arg4[%c0_9, %c0_10] : memref<8x128xf32, #tpu.memory_space<vmem>>, vector<1x128xf32>
    tpu.vector_store %arg4[%c0_9, %c0_10], %11 {strides = array<i32>} : memref<8x128xf32, #tpu.memory_space<vmem>>, vector<1x128xf32>,
    %c1 = arith.constant 1 : index
    %c0_11 = arith.constant 0 : index
    %13 = vector.load %arg4[%c1, %c0_11] : memref<8x128xf32, #tpu.memory_space<vmem>>, vector<1x128xf32>
    %14 = arith.mulf %5, %5 : vector<512x128xf32>
    %cst_12 = arith.constant dense<0.000000e+00> : vector<128xf32>
    %15 = vector.multi_reduction <add>, %14, %cst_12 [0] : vector<512x128xf32> to vector<128xf32>
    %16 = vector.shape_cast %15 : vector<128xf32> to vector<1x128xf32>
    %17 = arith.addf %13, %16 : vector<1x128xf32>
    %c1_13 = arith.constant 1 : index
    %c0_14 = arith.constant 0 : index
    %18 = vector.load %arg4[%c1_13, %c0_14] : memref<8x128xf32, #tpu.memory_space<vmem>>, vector<1x128xf32>
    tpu.vector_store %arg4[%c1_13, %c0_14], %17 {strides = array<i32>} : memref<8x128xf32, #tpu.memory_space<vmem>>, vector<1x128xf32>,
    return
  }
  func.func @transform_0(%arg0: i32) -> (i32, i32) {
    %c0_i32 = arith.constant 0 : i32
    %c0_i32_0 = arith.constant 0 : i32
    return %arg0, %c0_i32 : i32, i32
  }
  func.func @transform_1(%arg0: i32) -> (i32, i32) {
    %c0_i32 = arith.constant 0 : i32
    %c0_i32_0 = arith.constant 0 : i32
    %c0_i32_1 = arith.constant 0 : i32
    return %c0_i32, %c0_i32_0 : i32, i32
  }
  func.func @transform_2(%arg0: i32) -> (i32, i32) {
    %c0_i32 = arith.constant 0 : i32
    %c0_i32_0 = arith.constant 0 : i32
    return %arg0, %c0_i32 : i32, i32
  }
  func.func @transform_3(%arg0: i32) -> (i32, i32) {
    %c0_i32 = arith.constant 0 : i32
    %c0_i32_0 = arith.constant 0 : i32
    %c0_i32_1 = arith.constant 0 : i32
    return %c0_i32, %c0_i32_0 : i32, i32
  }
}

module attributes {stable_mosaic.version = 11 : i64} {
  func.func @_bn_act_kernel(%arg0: i32, %arg1: memref<512x128xbf16, #tpu.memory_space<vmem>>, %arg2: memref<8x128xf32, #tpu.memory_space<vmem>>, %arg3: memref<1x128xf32, #tpu.memory_space<vmem>>, %arg4: memref<1x128xf32, #tpu.memory_space<vmem>>, %arg5: memref<512x128xbf16, #tpu.memory_space<vmem>>) attributes {dimension_semantics = [#tpu.dimension_semantics<parallel>], iteration_bounds = array<i64: 1>, scalar_prefetch = 0 : i64, scratch_operands = 0 : i64, tpu.core_type = #tpu.core_type<tc>, window_params = [{transform_indices = @transform_0, window_bounds = array<i64: 512, 128>}, {pipeline_mode = #tpu.pipeline_mode<synchronous>, transform_indices = @transform_1, window_bounds = array<i64: 8, 128>}, {pipeline_mode = #tpu.pipeline_mode<synchronous>, transform_indices = @transform_2, window_bounds = array<i64: 1, 128>}, {pipeline_mode = #tpu.pipeline_mode<synchronous>, transform_indices = @transform_3, window_bounds = array<i64: 1, 128>}, {transform_indices = @transform_4, window_bounds = array<i64: 512, 128>}]} {
    %c0 = arith.constant 0 : index
    %c0_0 = arith.constant 0 : index
    %0 = vector.load %arg1[%c0, %c0_0] : memref<512x128xbf16, #tpu.memory_space<vmem>>, vector<512x128xbf16>
    %1 = arith.extf %0 : vector<512x128xbf16> to vector<512x128xf32>
    %c0_1 = arith.constant 0 : index
    %c0_2 = arith.constant 0 : index
    %2 = vector.load %arg2[%c0_1, %c0_2] : memref<8x128xf32, #tpu.memory_space<vmem>>, vector<1x128xf32>
    %cst = arith.constant 0.001953125 : f32
    %3 = vector.broadcast %cst : f32 to vector<1x128xf32>
    %4 = arith.mulf %2, %3 : vector<1x128xf32>
    %c1 = arith.constant 1 : index
    %c0_3 = arith.constant 0 : index
    %5 = vector.load %arg2[%c1, %c0_3] : memref<8x128xf32, #tpu.memory_space<vmem>>, vector<1x128xf32>
    %cst_4 = arith.constant 0.001953125 : f32
    %6 = vector.broadcast %cst_4 : f32 to vector<1x128xf32>
    %7 = arith.mulf %5, %6 : vector<1x128xf32>
    %8 = arith.mulf %4, %4 : vector<1x128xf32>
    %9 = arith.subf %7, %8 : vector<1x128xf32>
    %cst_5 = arith.constant 0.000000e+00 : f32
    %10 = vector.broadcast %cst_5 : f32 to vector<1x128xf32>
    %11 = arith.maximumf %9, %10 : vector<1x128xf32>
    %cst_6 = arith.constant 9.99999974E-6 : f32
    %12 = vector.broadcast %cst_6 : f32 to vector<1x128xf32>
    %13 = arith.addf %11, %12 : vector<1x128xf32>
    %14 = math.rsqrt %13 : vector<1x128xf32>
    %c0_7 = arith.constant 0 : index
    %c0_8 = arith.constant 0 : index
    %15 = vector.load %arg3[%c0_7, %c0_8] : memref<1x128xf32, #tpu.memory_space<vmem>>, vector<1x128xf32>
    %16 = arith.mulf %15, %14 : vector<1x128xf32>
    %c0_9 = arith.constant 0 : index
    %c0_10 = arith.constant 0 : index
    %17 = vector.load %arg4[%c0_9, %c0_10] : memref<1x128xf32, #tpu.memory_space<vmem>>, vector<1x128xf32>
    %18 = arith.mulf %4, %16 : vector<1x128xf32>
    %19 = arith.subf %17, %18 : vector<1x128xf32>
    %20 = vector.broadcast %16 : vector<1x128xf32> to vector<512x128xf32>
    %21 = arith.mulf %1, %20 : vector<512x128xf32>
    %22 = vector.broadcast %19 : vector<1x128xf32> to vector<512x128xf32>
    %23 = arith.addf %21, %22 : vector<512x128xf32>
    %cst_11 = arith.constant 0.000000e+00 : f32
    %24 = vector.broadcast %cst_11 : f32 to vector<512x128xf32>
    %25 = arith.cmpf oge, %23, %24 : vector<512x128xf32>
    %cst_12 = arith.constant 2.000000e-01 : f32
    %26 = vector.broadcast %cst_12 : f32 to vector<512x128xf32>
    %27 = arith.mulf %26, %23 : vector<512x128xf32>
    %28 = arith.select %25, %23, %27 : vector<512x128xi1>, vector<512x128xf32>
    %29 = arith.truncf %28 : vector<512x128xf32> to vector<512x128xbf16>
    %c0_13 = arith.constant 0 : index
    %c0_14 = arith.constant 0 : index
    %30 = vector.load %arg5[%c0_13, %c0_14] : memref<512x128xbf16, #tpu.memory_space<vmem>>, vector<512x128xbf16>
    tpu.vector_store %arg5[%c0_13, %c0_14], %29 {strides = array<i32>} : memref<512x128xbf16, #tpu.memory_space<vmem>>, vector<512x128xbf16>,
    return
  }
  func.func @transform_0(%arg0: i32) -> (i32, i32) {
    %c0_i32 = arith.constant 0 : i32
    %c0_i32_0 = arith.constant 0 : i32
    return %arg0, %c0_i32 : i32, i32
  }
  func.func @transform_1(%arg0: i32) -> (i32, i32) {
    %c0_i32 = arith.constant 0 : i32
    %c0_i32_0 = arith.constant 0 : i32
    %c0_i32_1 = arith.constant 0 : i32
    return %c0_i32, %c0_i32_0 : i32, i32
  }
  func.func @transform_2(%arg0: i32) -> (i32, i32) {
    %c0_i32 = arith.constant 0 : i32
    %c0_i32_0 = arith.constant 0 : i32
    %c0_i32_1 = arith.constant 0 : i32
    return %c0_i32, %c0_i32_0 : i32, i32
  }
  func.func @transform_3(%arg0: i32) -> (i32, i32) {
    %c0_i32 = arith.constant 0 : i32
    %c0_i32_0 = arith.constant 0 : i32
    %c0_i32_1 = arith.constant 0 : i32
    return %c0_i32, %c0_i32_0 : i32, i32
  }
  func.func @transform_4(%arg0: i32) -> (i32, i32) {
    %c0_i32 = arith.constant 0 : i32
    %c0_i32_0 = arith.constant 0 : i32
    return %arg0, %c0_i32 : i32, i32
  }
}

module attributes {stable_mosaic.version = 11 : i64} {
  func.func @_matmul_stats_kernel(%arg0: i32, %arg1: memref<128x256xbf16, #tpu.memory_space<vmem>>, %arg2: memref<256x128xbf16, #tpu.memory_space<vmem>>, %arg3: memref<128x128xbf16, #tpu.memory_space<vmem>>, %arg4: memref<8x128xf32, #tpu.memory_space<vmem>>) attributes {dimension_semantics = [#tpu.dimension_semantics<arbitrary>], iteration_bounds = array<i64: 1>, scalar_prefetch = 0 : i64, scratch_operands = 0 : i64, tpu.core_type = #tpu.core_type<tc>, window_params = [{transform_indices = @transform_0, window_bounds = array<i64: 128, 256>}, {pipeline_mode = #tpu.pipeline_mode<synchronous>, transform_indices = @transform_1, window_bounds = array<i64: 256, 128>}, {transform_indices = @transform_2, window_bounds = array<i64: 128, 128>}, {pipeline_mode = #tpu.pipeline_mode<synchronous>, transform_indices = @transform_3, window_bounds = array<i64: 8, 128>}]} {
    %c0_i32 = arith.constant 0 : i32
    %0 = arith.cmpi eq, %arg0, %c0_i32 : i32
    %1 = arith.extui %0 : i1 to i32
    %c0_i32_0 = arith.constant 0 : i32
    %2 = arith.cmpi ne, %1, %c0_i32_0 : i32
    scf.if %2 {
      %cst_15 = arith.constant 0.000000e+00 : f32
      %19 = vector.broadcast %cst_15 : f32 to vector<8x128xf32>
      %c0_16 = arith.constant 0 : index
      %c0_17 = arith.constant 0 : index
      %20 = vector.load %arg4[%c0_16, %c0_17] : memref<8x128xf32, #tpu.memory_space<vmem>>, vector<8x128xf32>
      tpu.vector_store %arg4[%c0_16, %c0_17], %19 {strides = array<i32>} : memref<8x128xf32, #tpu.memory_space<vmem>>, vector<8x128xf32>,
    } else {
    }
    %c0 = arith.constant 0 : index
    %c0_1 = arith.constant 0 : index
    %3 = vector.load %arg1[%c0, %c0_1] : memref<128x256xbf16, #tpu.memory_space<vmem>>, vector<128x256xbf16>
    %c0_2 = arith.constant 0 : index
    %c0_3 = arith.constant 0 : index
    %4 = vector.load %arg2[%c0_2, %c0_3] : memref<256x128xbf16, #tpu.memory_space<vmem>>, vector<256x128xbf16>
    %cst = arith.constant dense<0.000000e+00> : vector<128x128xf32>
    %5 = tpu.matmul %3, %4, %cst {dimension_numbers = #tpu.dot_dimension_numbers<[1], [0], [0], [1], [0, 0, 1, 1], [], []>} : vector<128x256xbf16>, vector<256x128xbf16>, vector<128x128xf32> -> vector<128x128xf32>
    %6 = arith.truncf %5 : vector<128x128xf32> to vector<128x128xbf16>
    %c0_4 = arith.constant 0 : index
    %c0_5 = arith.constant 0 : index
    %7 = vector.load %arg3[%c0_4, %c0_5] : memref<128x128xbf16, #tpu.memory_space<vmem>>, vector<128x128xbf16>
    tpu.vector_store %arg3[%c0_4, %c0_5], %6 {strides = array<i32>} : memref<128x128xbf16, #tpu.memory_space<vmem>>, vector<128x128xbf16>,
    %c0_6 = arith.constant 0 : index
    %c0_7 = arith.constant 0 : index
    %8 = vector.load %arg4[%c0_6, %c0_7] : memref<8x128xf32, #tpu.memory_space<vmem>>, vector<1x128xf32>
    %cst_8 = arith.constant dense<0.000000e+00> : vector<128xf32>
    %9 = vector.multi_reduction <add>, %5, %cst_8 [0] : vector<128x128xf32> to vector<128xf32>
    %10 = vector.shape_cast %9 : vector<128xf32> to vector<1x128xf32>
    %11 = arith.addf %8, %10 : vector<1x128xf32>
    %c0_9 = arith.constant 0 : index
    %c0_10 = arith.constant 0 : index
    %12 = vector.load %arg4[%c0_9, %c0_10] : memref<8x128xf32, #tpu.memory_space<vmem>>, vector<1x128xf32>
    tpu.vector_store %arg4[%c0_9, %c0_10], %11 {strides = array<i32>} : memref<8x128xf32, #tpu.memory_space<vmem>>, vector<1x128xf32>,
    %c1 = arith.constant 1 : index
    %c0_11 = arith.constant 0 : index
    %13 = vector.load %arg4[%c1, %c0_11] : memref<8x128xf32, #tpu.memory_space<vmem>>, vector<1x128xf32>
    %14 = arith.mulf %5, %5 : vector<128x128xf32>
    %cst_12 = arith.constant dense<0.000000e+00> : vector<128xf32>
    %15 = vector.multi_reduction <add>, %14, %cst_12 [0] : vector<128x128xf32> to vector<128xf32>
    %16 = vector.shape_cast %15 : vector<128xf32> to vector<1x128xf32>
    %17 = arith.addf %13, %16 : vector<1x128xf32>
    %c1_13 = arith.constant 1 : index
    %c0_14 = arith.constant 0 : index
    %18 = vector.load %arg4[%c1_13, %c0_14] : memref<8x128xf32, #tpu.memory_space<vmem>>, vector<1x128xf32>
    tpu.vector_store %arg4[%c1_13, %c0_14], %17 {strides = array<i32>} : memref<8x128xf32, #tpu.memory_space<vmem>>, vector<1x128xf32>,
    return
  }
  func.func @transform_0(%arg0: i32) -> (i32, i32) {
    %c0_i32 = arith.constant 0 : i32
    %c0_i32_0 = arith.constant 0 : i32
    return %arg0, %c0_i32 : i32, i32
  }
  func.func @transform_1(%arg0: i32) -> (i32, i32) {
    %c0_i32 = arith.constant 0 : i32
    %c0_i32_0 = arith.constant 0 : i32
    %c0_i32_1 = arith.constant 0 : i32
    return %c0_i32, %c0_i32_0 : i32, i32
  }
  func.func @transform_2(%arg0: i32) -> (i32, i32) {
    %c0_i32 = arith.constant 0 : i32
    %c0_i32_0 = arith.constant 0 : i32
    return %arg0, %c0_i32 : i32, i32
  }
  func.func @transform_3(%arg0: i32) -> (i32, i32) {
    %c0_i32 = arith.constant 0 : i32
    %c0_i32_0 = arith.constant 0 : i32
    %c0_i32_1 = arith.constant 0 : i32
    return %c0_i32, %c0_i32_0 : i32, i32
  }
}

module attributes {stable_mosaic.version = 11 : i64} {
  func.func @_bn_act_kernel(%arg0: i32, %arg1: memref<128x128xbf16, #tpu.memory_space<vmem>>, %arg2: memref<8x128xf32, #tpu.memory_space<vmem>>, %arg3: memref<1x128xf32, #tpu.memory_space<vmem>>, %arg4: memref<1x128xf32, #tpu.memory_space<vmem>>, %arg5: memref<128x128xbf16, #tpu.memory_space<vmem>>) attributes {dimension_semantics = [#tpu.dimension_semantics<parallel>], iteration_bounds = array<i64: 1>, scalar_prefetch = 0 : i64, scratch_operands = 0 : i64, tpu.core_type = #tpu.core_type<tc>, window_params = [{transform_indices = @transform_0, window_bounds = array<i64: 128, 128>}, {pipeline_mode = #tpu.pipeline_mode<synchronous>, transform_indices = @transform_1, window_bounds = array<i64: 8, 128>}, {pipeline_mode = #tpu.pipeline_mode<synchronous>, transform_indices = @transform_2, window_bounds = array<i64: 1, 128>}, {pipeline_mode = #tpu.pipeline_mode<synchronous>, transform_indices = @transform_3, window_bounds = array<i64: 1, 128>}, {transform_indices = @transform_4, window_bounds = array<i64: 128, 128>}]} {
    %c0 = arith.constant 0 : index
    %c0_0 = arith.constant 0 : index
    %0 = vector.load %arg1[%c0, %c0_0] : memref<128x128xbf16, #tpu.memory_space<vmem>>, vector<128x128xbf16>
    %1 = arith.extf %0 : vector<128x128xbf16> to vector<128x128xf32>
    %c0_1 = arith.constant 0 : index
    %c0_2 = arith.constant 0 : index
    %2 = vector.load %arg2[%c0_1, %c0_2] : memref<8x128xf32, #tpu.memory_space<vmem>>, vector<1x128xf32>
    %cst = arith.constant 7.812500e-03 : f32
    %3 = vector.broadcast %cst : f32 to vector<1x128xf32>
    %4 = arith.mulf %2, %3 : vector<1x128xf32>
    %c1 = arith.constant 1 : index
    %c0_3 = arith.constant 0 : index
    %5 = vector.load %arg2[%c1, %c0_3] : memref<8x128xf32, #tpu.memory_space<vmem>>, vector<1x128xf32>
    %cst_4 = arith.constant 7.812500e-03 : f32
    %6 = vector.broadcast %cst_4 : f32 to vector<1x128xf32>
    %7 = arith.mulf %5, %6 : vector<1x128xf32>
    %8 = arith.mulf %4, %4 : vector<1x128xf32>
    %9 = arith.subf %7, %8 : vector<1x128xf32>
    %cst_5 = arith.constant 0.000000e+00 : f32
    %10 = vector.broadcast %cst_5 : f32 to vector<1x128xf32>
    %11 = arith.maximumf %9, %10 : vector<1x128xf32>
    %cst_6 = arith.constant 9.99999974E-6 : f32
    %12 = vector.broadcast %cst_6 : f32 to vector<1x128xf32>
    %13 = arith.addf %11, %12 : vector<1x128xf32>
    %14 = math.rsqrt %13 : vector<1x128xf32>
    %c0_7 = arith.constant 0 : index
    %c0_8 = arith.constant 0 : index
    %15 = vector.load %arg3[%c0_7, %c0_8] : memref<1x128xf32, #tpu.memory_space<vmem>>, vector<1x128xf32>
    %16 = arith.mulf %15, %14 : vector<1x128xf32>
    %c0_9 = arith.constant 0 : index
    %c0_10 = arith.constant 0 : index
    %17 = vector.load %arg4[%c0_9, %c0_10] : memref<1x128xf32, #tpu.memory_space<vmem>>, vector<1x128xf32>
    %18 = arith.mulf %4, %16 : vector<1x128xf32>
    %19 = arith.subf %17, %18 : vector<1x128xf32>
    %20 = vector.broadcast %16 : vector<1x128xf32> to vector<128x128xf32>
    %21 = arith.mulf %1, %20 : vector<128x128xf32>
    %22 = vector.broadcast %19 : vector<1x128xf32> to vector<128x128xf32>
    %23 = arith.addf %21, %22 : vector<128x128xf32>
    %cst_11 = arith.constant 0.000000e+00 : f32
    %24 = vector.broadcast %cst_11 : f32 to vector<128x128xf32>
    %25 = arith.cmpf oge, %23, %24 : vector<128x128xf32>
    %cst_12 = arith.constant 2.000000e-01 : f32
    %26 = vector.broadcast %cst_12 : f32 to vector<128x128xf32>
    %27 = arith.mulf %26, %23 : vector<128x128xf32>
    %28 = arith.select %25, %23, %27 : vector<128x128xi1>, vector<128x128xf32>
    %29 = arith.truncf %28 : vector<128x128xf32> to vector<128x128xbf16>
    %c0_13 = arith.constant 0 : index
    %c0_14 = arith.constant 0 : index
    %30 = vector.load %arg5[%c0_13, %c0_14] : memref<128x128xbf16, #tpu.memory_space<vmem>>, vector<128x128xbf16>
    tpu.vector_store %arg5[%c0_13, %c0_14], %29 {strides = array<i32>} : memref<128x128xbf16, #tpu.memory_space<vmem>>, vector<128x128xbf16>,
    return
  }
  func.func @transform_0(%arg0: i32) -> (i32, i32) {
    %c0_i32 = arith.constant 0 : i32
    %c0_i32_0 = arith.constant 0 : i32
    return %arg0, %c0_i32 : i32, i32
  }
  func.func @transform_1(%arg0: i32) -> (i32, i32) {
    %c0_i32 = arith.constant 0 : i32
    %c0_i32_0 = arith.constant 0 : i32
    %c0_i32_1 = arith.constant 0 : i32
    return %c0_i32, %c0_i32_0 : i32, i32
  }
  func.func @transform_2(%arg0: i32) -> (i32, i32) {
    %c0_i32 = arith.constant 0 : i32
    %c0_i32_0 = arith.constant 0 : i32
    %c0_i32_1 = arith.constant 0 : i32
    return %c0_i32, %c0_i32_0 : i32, i32
  }
  func.func @transform_3(%arg0: i32) -> (i32, i32) {
    %c0_i32 = arith.constant 0 : i32
    %c0_i32_0 = arith.constant 0 : i32
    %c0_i32_1 = arith.constant 0 : i32
    return %c0_i32, %c0_i32_0 : i32, i32
  }
  func.func @transform_4(%arg0: i32) -> (i32, i32) {
    %c0_i32 = arith.constant 0 : i32
    %c0_i32_0 = arith.constant 0 : i32
    return %arg0, %c0_i32 : i32, i32
  }
}

module attributes {stable_mosaic.version = 11 : i64} {
  func.func @_matmul_stats_kernel(%arg0: i32, %arg1: memref<32x512xbf16, #tpu.memory_space<vmem>>, %arg2: memref<512x128xbf16, #tpu.memory_space<vmem>>, %arg3: memref<32x128xbf16, #tpu.memory_space<vmem>>, %arg4: memref<8x128xf32, #tpu.memory_space<vmem>>) attributes {dimension_semantics = [#tpu.dimension_semantics<arbitrary>], iteration_bounds = array<i64: 1>, scalar_prefetch = 0 : i64, scratch_operands = 0 : i64, tpu.core_type = #tpu.core_type<tc>, window_params = [{transform_indices = @transform_0, window_bounds = array<i64: 32, 512>}, {pipeline_mode = #tpu.pipeline_mode<synchronous>, transform_indices = @transform_1, window_bounds = array<i64: 512, 128>}, {transform_indices = @transform_2, window_bounds = array<i64: 32, 128>}, {pipeline_mode = #tpu.pipeline_mode<synchronous>, transform_indices = @transform_3, window_bounds = array<i64: 8, 128>}]} {
    %c0_i32 = arith.constant 0 : i32
    %0 = arith.cmpi eq, %arg0, %c0_i32 : i32
    %1 = arith.extui %0 : i1 to i32
    %c0_i32_0 = arith.constant 0 : i32
    %2 = arith.cmpi ne, %1, %c0_i32_0 : i32
    scf.if %2 {
      %cst_15 = arith.constant 0.000000e+00 : f32
      %19 = vector.broadcast %cst_15 : f32 to vector<8x128xf32>
      %c0_16 = arith.constant 0 : index
      %c0_17 = arith.constant 0 : index
      %20 = vector.load %arg4[%c0_16, %c0_17] : memref<8x128xf32, #tpu.memory_space<vmem>>, vector<8x128xf32>
      tpu.vector_store %arg4[%c0_16, %c0_17], %19 {strides = array<i32>} : memref<8x128xf32, #tpu.memory_space<vmem>>, vector<8x128xf32>,
    } else {
    }
    %c0 = arith.constant 0 : index
    %c0_1 = arith.constant 0 : index
    %3 = vector.load %arg1[%c0, %c0_1] : memref<32x512xbf16, #tpu.memory_space<vmem>>, vector<32x512xbf16>
    %c0_2 = arith.constant 0 : index
    %c0_3 = arith.constant 0 : index
    %4 = vector.load %arg2[%c0_2, %c0_3] : memref<512x128xbf16, #tpu.memory_space<vmem>>, vector<512x128xbf16>
    %cst = arith.constant dense<0.000000e+00> : vector<32x128xf32>
    %5 = tpu.matmul %3, %4, %cst {dimension_numbers = #tpu.dot_dimension_numbers<[1], [0], [0], [1], [0, 0, 1, 1], [], []>} : vector<32x512xbf16>, vector<512x128xbf16>, vector<32x128xf32> -> vector<32x128xf32>
    %6 = arith.truncf %5 : vector<32x128xf32> to vector<32x128xbf16>
    %c0_4 = arith.constant 0 : index
    %c0_5 = arith.constant 0 : index
    %7 = vector.load %arg3[%c0_4, %c0_5] : memref<32x128xbf16, #tpu.memory_space<vmem>>, vector<32x128xbf16>
    tpu.vector_store %arg3[%c0_4, %c0_5], %6 {strides = array<i32>} : memref<32x128xbf16, #tpu.memory_space<vmem>>, vector<32x128xbf16>,
    %c0_6 = arith.constant 0 : index
    %c0_7 = arith.constant 0 : index
    %8 = vector.load %arg4[%c0_6, %c0_7] : memref<8x128xf32, #tpu.memory_space<vmem>>, vector<1x128xf32>
    %cst_8 = arith.constant dense<0.000000e+00> : vector<128xf32>
    %9 = vector.multi_reduction <add>, %5, %cst_8 [0] : vector<32x128xf32> to vector<128xf32>
    %10 = vector.shape_cast %9 : vector<128xf32> to vector<1x128xf32>
    %11 = arith.addf %8, %10 : vector<1x128xf32>
    %c0_9 = arith.constant 0 : index
    %c0_10 = arith.constant 0 : index
    %12 = vector.load %arg4[%c0_9, %c0_10] : memref<8x128xf32, #tpu.memory_space<vmem>>, vector<1x128xf32>
    tpu.vector_store %arg4[%c0_9, %c0_10], %11 {strides = array<i32>} : memref<8x128xf32, #tpu.memory_space<vmem>>, vector<1x128xf32>,
    %c1 = arith.constant 1 : index
    %c0_11 = arith.constant 0 : index
    %13 = vector.load %arg4[%c1, %c0_11] : memref<8x128xf32, #tpu.memory_space<vmem>>, vector<1x128xf32>
    %14 = arith.mulf %5, %5 : vector<32x128xf32>
    %cst_12 = arith.constant dense<0.000000e+00> : vector<128xf32>
    %15 = vector.multi_reduction <add>, %14, %cst_12 [0] : vector<32x128xf32> to vector<128xf32>
    %16 = vector.shape_cast %15 : vector<128xf32> to vector<1x128xf32>
    %17 = arith.addf %13, %16 : vector<1x128xf32>
    %c1_13 = arith.constant 1 : index
    %c0_14 = arith.constant 0 : index
    %18 = vector.load %arg4[%c1_13, %c0_14] : memref<8x128xf32, #tpu.memory_space<vmem>>, vector<1x128xf32>
    tpu.vector_store %arg4[%c1_13, %c0_14], %17 {strides = array<i32>} : memref<8x128xf32, #tpu.memory_space<vmem>>, vector<1x128xf32>,
    return
  }
  func.func @transform_0(%arg0: i32) -> (i32, i32) {
    %c0_i32 = arith.constant 0 : i32
    %c0_i32_0 = arith.constant 0 : i32
    return %arg0, %c0_i32 : i32, i32
  }
  func.func @transform_1(%arg0: i32) -> (i32, i32) {
    %c0_i32 = arith.constant 0 : i32
    %c0_i32_0 = arith.constant 0 : i32
    %c0_i32_1 = arith.constant 0 : i32
    return %c0_i32, %c0_i32_0 : i32, i32
  }
  func.func @transform_2(%arg0: i32) -> (i32, i32) {
    %c0_i32 = arith.constant 0 : i32
    %c0_i32_0 = arith.constant 0 : i32
    return %arg0, %c0_i32 : i32, i32
  }
  func.func @transform_3(%arg0: i32) -> (i32, i32) {
    %c0_i32 = arith.constant 0 : i32
    %c0_i32_0 = arith.constant 0 : i32
    %c0_i32_1 = arith.constant 0 : i32
    return %c0_i32, %c0_i32_0 : i32, i32
  }
}

module attributes {stable_mosaic.version = 11 : i64} {
  func.func @_bn_act_kernel(%arg0: i32, %arg1: memref<32x128xbf16, #tpu.memory_space<vmem>>, %arg2: memref<8x128xf32, #tpu.memory_space<vmem>>, %arg3: memref<1x128xf32, #tpu.memory_space<vmem>>, %arg4: memref<1x128xf32, #tpu.memory_space<vmem>>, %arg5: memref<32x128xbf16, #tpu.memory_space<vmem>>) attributes {dimension_semantics = [#tpu.dimension_semantics<parallel>], iteration_bounds = array<i64: 1>, scalar_prefetch = 0 : i64, scratch_operands = 0 : i64, tpu.core_type = #tpu.core_type<tc>, window_params = [{transform_indices = @transform_0, window_bounds = array<i64: 32, 128>}, {pipeline_mode = #tpu.pipeline_mode<synchronous>, transform_indices = @transform_1, window_bounds = array<i64: 8, 128>}, {pipeline_mode = #tpu.pipeline_mode<synchronous>, transform_indices = @transform_2, window_bounds = array<i64: 1, 128>}, {pipeline_mode = #tpu.pipeline_mode<synchronous>, transform_indices = @transform_3, window_bounds = array<i64: 1, 128>}, {transform_indices = @transform_4, window_bounds = array<i64: 32, 128>}]} {
    %c0 = arith.constant 0 : index
    %c0_0 = arith.constant 0 : index
    %0 = vector.load %arg1[%c0, %c0_0] : memref<32x128xbf16, #tpu.memory_space<vmem>>, vector<32x128xbf16>
    %1 = arith.extf %0 : vector<32x128xbf16> to vector<32x128xf32>
    %c0_1 = arith.constant 0 : index
    %c0_2 = arith.constant 0 : index
    %2 = vector.load %arg2[%c0_1, %c0_2] : memref<8x128xf32, #tpu.memory_space<vmem>>, vector<1x128xf32>
    %cst = arith.constant 3.125000e-02 : f32
    %3 = vector.broadcast %cst : f32 to vector<1x128xf32>
    %4 = arith.mulf %2, %3 : vector<1x128xf32>
    %c1 = arith.constant 1 : index
    %c0_3 = arith.constant 0 : index
    %5 = vector.load %arg2[%c1, %c0_3] : memref<8x128xf32, #tpu.memory_space<vmem>>, vector<1x128xf32>
    %cst_4 = arith.constant 3.125000e-02 : f32
    %6 = vector.broadcast %cst_4 : f32 to vector<1x128xf32>
    %7 = arith.mulf %5, %6 : vector<1x128xf32>
    %8 = arith.mulf %4, %4 : vector<1x128xf32>
    %9 = arith.subf %7, %8 : vector<1x128xf32>
    %cst_5 = arith.constant 0.000000e+00 : f32
    %10 = vector.broadcast %cst_5 : f32 to vector<1x128xf32>
    %11 = arith.maximumf %9, %10 : vector<1x128xf32>
    %cst_6 = arith.constant 9.99999974E-6 : f32
    %12 = vector.broadcast %cst_6 : f32 to vector<1x128xf32>
    %13 = arith.addf %11, %12 : vector<1x128xf32>
    %14 = math.rsqrt %13 : vector<1x128xf32>
    %c0_7 = arith.constant 0 : index
    %c0_8 = arith.constant 0 : index
    %15 = vector.load %arg3[%c0_7, %c0_8] : memref<1x128xf32, #tpu.memory_space<vmem>>, vector<1x128xf32>
    %16 = arith.mulf %15, %14 : vector<1x128xf32>
    %c0_9 = arith.constant 0 : index
    %c0_10 = arith.constant 0 : index
    %17 = vector.load %arg4[%c0_9, %c0_10] : memref<1x128xf32, #tpu.memory_space<vmem>>, vector<1x128xf32>
    %18 = arith.mulf %4, %16 : vector<1x128xf32>
    %19 = arith.subf %17, %18 : vector<1x128xf32>
    %20 = vector.broadcast %16 : vector<1x128xf32> to vector<32x128xf32>
    %21 = arith.mulf %1, %20 : vector<32x128xf32>
    %22 = vector.broadcast %19 : vector<1x128xf32> to vector<32x128xf32>
    %23 = arith.addf %21, %22 : vector<32x128xf32>
    %cst_11 = arith.constant 0.000000e+00 : f32
    %24 = vector.broadcast %cst_11 : f32 to vector<32x128xf32>
    %25 = arith.cmpf oge, %23, %24 : vector<32x128xf32>
    %cst_12 = arith.constant 2.000000e-01 : f32
    %26 = vector.broadcast %cst_12 : f32 to vector<32x128xf32>
    %27 = arith.mulf %26, %23 : vector<32x128xf32>
    %28 = arith.select %25, %23, %27 : vector<32x128xi1>, vector<32x128xf32>
    %29 = arith.truncf %28 : vector<32x128xf32> to vector<32x128xbf16>
    %c0_13 = arith.constant 0 : index
    %c0_14 = arith.constant 0 : index
    %30 = vector.load %arg5[%c0_13, %c0_14] : memref<32x128xbf16, #tpu.memory_space<vmem>>, vector<32x128xbf16>
    tpu.vector_store %arg5[%c0_13, %c0_14], %29 {strides = array<i32>} : memref<32x128xbf16, #tpu.memory_space<vmem>>, vector<32x128xbf16>,
    return
  }
  func.func @transform_0(%arg0: i32) -> (i32, i32) {
    %c0_i32 = arith.constant 0 : i32
    %c0_i32_0 = arith.constant 0 : i32
    return %arg0, %c0_i32 : i32, i32
  }
  func.func @transform_1(%arg0: i32) -> (i32, i32) {
    %c0_i32 = arith.constant 0 : i32
    %c0_i32_0 = arith.constant 0 : i32
    %c0_i32_1 = arith.constant 0 : i32
    return %c0_i32, %c0_i32_0 : i32, i32
  }
  func.func @transform_2(%arg0: i32) -> (i32, i32) {
    %c0_i32 = arith.constant 0 : i32
    %c0_i32_0 = arith.constant 0 : i32
    %c0_i32_1 = arith.constant 0 : i32
    return %c0_i32, %c0_i32_0 : i32, i32
  }
  func.func @transform_3(%arg0: i32) -> (i32, i32) {
    %c0_i32 = arith.constant 0 : i32
    %c0_i32_0 = arith.constant 0 : i32
    %c0_i32_1 = arith.constant 0 : i32
    return %c0_i32, %c0_i32_0 : i32, i32
  }
  func.func @transform_4(%arg0: i32) -> (i32, i32) {
    %c0_i32 = arith.constant 0 : i32
    %c0_i32_0 = arith.constant 0 : i32
    return %arg0, %c0_i32 : i32, i32
  }
}

module attributes {stable_mosaic.version = 11 : i64} {
  func.func @_matmul_act_kernel(%arg0: i32, %arg1: memref<2x1024xbf16, #tpu.memory_space<vmem>>, %arg2: memref<1024x128xbf16, #tpu.memory_space<vmem>>, %arg3: memref<2x128xf32, #tpu.memory_space<vmem>>) attributes {dimension_semantics = [#tpu.dimension_semantics<parallel>], iteration_bounds = array<i64: 1>, scalar_prefetch = 0 : i64, scratch_operands = 0 : i64, tpu.core_type = #tpu.core_type<tc>, window_params = [{transform_indices = @transform_0, window_bounds = array<i64: 2, 1024>}, {pipeline_mode = #tpu.pipeline_mode<synchronous>, transform_indices = @transform_1, window_bounds = array<i64: 1024, 128>}, {transform_indices = @transform_2, window_bounds = array<i64: 2, 128>}]} {
    %c0 = arith.constant 0 : index
    %c0_0 = arith.constant 0 : index
    %0 = vector.load %arg1[%c0, %c0_0] : memref<2x1024xbf16, #tpu.memory_space<vmem>>, vector<2x1024xbf16>
    %c0_1 = arith.constant 0 : index
    %c0_2 = arith.constant 0 : index
    %1 = vector.load %arg2[%c0_1, %c0_2] : memref<1024x128xbf16, #tpu.memory_space<vmem>>, vector<1024x128xbf16>
    %cst = arith.constant dense<0.000000e+00> : vector<2x128xf32>
    %2 = tpu.matmul %0, %1, %cst {dimension_numbers = #tpu.dot_dimension_numbers<[1], [0], [0], [1], [0, 0, 1, 1], [], []>} : vector<2x1024xbf16>, vector<1024x128xbf16>, vector<2x128xf32> -> vector<2x128xf32>
    %cst_3 = arith.constant 0.000000e+00 : f32
    %3 = vector.broadcast %cst_3 : f32 to vector<2x128xf32>
    %4 = arith.subf %3, %2 : vector<2x128xf32>
    %5 = math.exp %4 : vector<2x128xf32>
    %cst_4 = arith.constant 1.000000e+00 : f32
    %6 = vector.broadcast %cst_4 : f32 to vector<2x128xf32>
    %7 = arith.addf %6, %5 : vector<2x128xf32>
    %cst_5 = arith.constant 1.000000e+00 : f32
    %8 = vector.broadcast %cst_5 : f32 to vector<2x128xf32>
    %9 = arith.divf %8, %7 : vector<2x128xf32>
    %c0_6 = arith.constant 0 : index
    %c0_7 = arith.constant 0 : index
    %10 = vector.load %arg3[%c0_6, %c0_7] : memref<2x128xf32, #tpu.memory_space<vmem>>, vector<2x128xf32>
    tpu.vector_store %arg3[%c0_6, %c0_7], %9 {strides = array<i32>} : memref<2x128xf32, #tpu.memory_space<vmem>>, vector<2x128xf32>,
    return
  }
  func.func @transform_0(%arg0: i32) -> (i32, i32) {
    %c0_i32 = arith.constant 0 : i32
    %c0_i32_0 = arith.constant 0 : i32
    return %arg0, %c0_i32 : i32, i32
  }
  func.func @transform_1(%arg0: i32) -> (i32, i32) {
    %c0_i32 = arith.constant 0 : i32
    %c0_i32_0 = arith.constant 0 : i32
    %c0_i32_1 = arith.constant 0 : i32
    return %c0_i32, %c0_i32_0 : i32, i32
  }
  func.func @transform_2(%arg0: i32) -> (i32, i32) {
    %c0_i32 = arith.constant 0 : i32
    %c0_i32_0 = arith.constant 0 : i32
    return %arg0, %c0_i32 : i32, i32
  }
}

</mosaic_0001>

<bundles_post_ra>
// kernel: discriminator_forward.8
= control target key start
LH: loop header
LB: loop body
LE: loop exit
PB: predicated region body
PF: predicated region fallthrough
CT: control target
= control target key end

     0   :  { %s2671_s9 = smov 0   ;;  %s2900_s0 = inlined_call_operand.vmem [shape: bf16[2048,48], index: 0, kind: input, shape index: {}]   ;;  %s2901_s1 = inlined_call_operand.vmem [shape: bf16[48,128], index: 1, kind: input, shape index: {}]   ;;  %s2902_s2 = inlined_call_operand.vmem [shape: bf16[2048,128], index: 2, kind: output, shape index: {}]  }
   0x1 LB: > { %s1838_s10 = sadd.s32 4294967295, %s2654_s9   ;;  %p1842_p0 = scmp.ge.s32.totalorder %s2654_s9, 1  ;;  %s2654_s9 = sphi %s2671_s9, %s12_s9  }
   0x2   : > { %p113_p1 = scmp.lt.s32.totalorder %s2654_s9, 3 }
   0x4   : > { %p114_p2 = pnand %p1842_p0, %p113_p1 }
   0x5   : > { %s1843_s13 = sshll.u32 (!%p114_p2), %s1838_s10, 7 }
   0x6   : > { %117 = sbr.rel (%p114_p2) target bundleno = 411 (0x19b), region = 28  ;;  %p136_p3 = scmp.lt.s32.totalorder (!%p114_p2), %s1843_s13, 255 }
   0xb   : > { %v2247_v0 = vld [vmem:[%s2901_s1 + $0x10] sm:$0xff]  ;;  %v2246_v1 = vld [vmem:[%s2901_s1 + $0x8] sm:$0xff]  ;;  %s2904_s13 = smov (!%p136_p3, %s1843_s13), 255  ;;  %v2245_v2 = vld [vmem:[%s2901_s1] sm:$0xff]  ;;  %vm620_vm0 = vcmask 392192  }
   0xc   : > { %818 = vmatpush.bf16.msra.mxu0 %v2247_v0  ;;  %2631 = vmatpush.bf16.msra.mxu1 %v2247_v0  ;;  %s1844_s16 = sshll.u32 %s2904_s13, 2 }
   0xd   : > { %2632 = vmatpush.bf16.msra.mxu2 %v2247_v0  ;;  %2633 = vmatpush.bf16.msra.mxu3 %v2247_v0  ;;  %s2696_s21 = scalar_lea.vmem %s2900_s0, %s1844_s16  ;;  %s2775_s24 = scalar_lea.vmem %s2902_s2, %s1844_s16 }
   0xe   : > { %v2181_v3 = vld [vmem:[%s2696_s21] sm:$0xff]  ;;  %v2182_v7 = vld [vmem:[%s2696_s21 + $0x8] sm:$0xff]  ;;  %v2183_v11 = vld [vmem:[%s2696_s21 + $0x10] sm:$0xff] }
   0xf   : > { %v2197_v4 = vld [vmem:[%s2696_s21 + $0x80] sm:$0xff]  ;;  %v2198_v8 = vld [vmem:[%s2696_s21 + $0x88] sm:$0xff]  ;;  %v2199_v12 = vld [vmem:[%s2696_s21 + $0x90] sm:$0xff] }
  0x10   : > { %819 = vmatpush.bf16.msra.mxu0 %v2246_v1  ;;  %2634 = vmatpush.bf16.msra.mxu1 %v2246_v1  ;;  %v2213_v5 = vld [vmem:[%s2696_s21 + $0x100] sm:$0xff]  ;;  %v2214_v9 = vld [vmem:[%s2696_s21 + $0x108] sm:$0xff]  ;;  %v2215_v13 = vld [vmem:[%s2696_s21 + $0x110] sm:$0xff] }
  0x11   : > { %2635 = vmatpush.bf16.msra.mxu2 %v2246_v1  ;;  %2636 = vmatpush.bf16.msra.mxu3 %v2246_v1  ;;  %v2229_v6 = vld [vmem:[%s2696_s21 + $0x180] sm:$0xff]  ;;  %v2230_v10 = vld [vmem:[%s2696_s21 + $0x188] sm:$0xff]  ;;  %v2231_v14 = vld [vmem:[%s2696_s21 + $0x190] sm:$0xff] }
  0x12   : > { %v2184_v15 = vld [vmem:[%s2696_s21 + $0x18] sm:$0xff]  ;;  %v2185_v19 = vld [vmem:[%s2696_s21 + $0x20] sm:$0xff]  ;;  %v2186_v23 = vld [vmem:[%s2696_s21 + $0x28] sm:$0xff] }
  0x13   : > { %v2200_v16 = vld [vmem:[%s2696_s21 + $0x98] sm:$0xff]  ;;  %v2201_v20 = vld [vmem:[%s2696_s21 + $0xa0] sm:$0xff]  ;;  %v2202_v24 = vld [vmem:[%s2696_s21 + $0xa8] sm:$0xff] }
  0x14   : > { %820 = vmatpush.bf16.msra.mxu0 %v2245_v2  ;;  %2637 = vmatpush.bf16.msra.mxu1 %v2245_v2  ;;  %v2216_v17 = vld [vmem:[%s2696_s21 + $0x118] sm:$0xff]  ;;  %v2217_v21 = vld [vmem:[%s2696_s21 + $0x120] sm:$0xff]  ;;  %v2218_v25 = vld [vmem:[%s2696_s21 + $0x128] sm:$0xff] }
  0x15   : > { %2638 = vmatpush.bf16.msra.mxu2 %v2245_v2  ;;  %2639 = vmatpush.bf16.msra.mxu3 %v2245_v2  ;;  %v2232_v18 = vld [vmem:[%s2696_s21 + $0x198] sm:$0xff]  ;;  %v2233_v22 = vld [vmem:[%s2696_s21 + $0x1a0] sm:$0xff]  ;;  %v2234_v26 = vld [vmem:[%s2696_s21 + $0x1a8] sm:$0xff] }
  0x16   : > { %v2187_v27 = vld [vmem:[%s2696_s21 + $0x30] sm:$0xff]  ;;  %v2188_v31 = vld [vmem:[%s2696_s21 + $0x38] sm:$0xff]  ;;  %v2189_v35 = vld [vmem:[%s2696_s21 + $0x40] sm:$0xff] }
  0x17   : > { %2115 = vmatmul.msk.bf16.vlgmr.msra.gmra.mxu0 %vm620_vm0, %v2181_v3  ;;  %2131 = vmatmul.msk.bf16.vlgmr.msra.gmra.mxu1 %vm620_vm0, %v2197_v4  ;;  %v2203_v28 = vld [vmem:[%s2696_s21 + $0xb0] sm:$0xff]  ;;  %v2204_v32 = vld [vmem:[%s2696_s21 + $0xb8] sm:$0xff]  ;;  %v2205_v36 = vld [vmem:[%s2696_s21 + $0xc0] sm:$0xff] }
  0x18   : > { %2147 = vmatmul.msk.bf16.vlgmr.msra.gmra.mxu2 %vm620_vm0, %v2213_v5  ;;  %2163 = vmatmul.msk.bf16.vlgmr.msra.gmra.mxu3 %vm620_vm0, %v2229_v6  ;;  %v2219_v29 = vld [vmem:[%s2696_s21 + $0x130] sm:$0xff]  ;;  %v2220_v33 = vld [vmem:[%s2696_s21 + $0x138] sm:$0xff]  ;;  %v2221_v39 = vld [vmem:[%s2696_s21 + $0x140] sm:$0xff] }
  0x19   : > { %v2235_v30 = vld [vmem:[%s2696_s21 + $0x1b0] sm:$0xff]  ;;  %v2236_v34 = vld [vmem:[%s2696_s21 + $0x1b8] sm:$0xff]  ;;  %v2237_v40 = vld [vmem:[%s2696_s21 + $0x1c0] sm:$0xff] }
  0x1a   : > { %v2190_v59 = vld [vmem:[%s2696_s21 + $0x48] sm:$0xff] }
  0x1b   : > { %v2206_v60 = vld [vmem:[%s2696_s21 + $0xc8] sm:$0xff] }
  0x1c   : > { %v2222_v61 = vld [vmem:[%s2696_s21 + $0x148] sm:$0xff] }
  0x1d   : > { %v2238_v2 = vld [vmem:[%s2696_s21 + $0x1c8] sm:$0xff] }
  0x27   : > { %2116 = vmatmul.msk.bf16.gmra.mxu0 %vm620_vm0, %v2182_v7  ;;  %2132 = vmatmul.msk.bf16.gmra.mxu1 %vm620_vm0, %v2198_v8 }
  0x28   : > { %2148 = vmatmul.msk.bf16.gmra.mxu2 %vm620_vm0, %v2214_v9  ;;  %2164 = vmatmul.msk.bf16.gmra.mxu3 %vm620_vm0, %v2230_v10 }
  0x37   : > { %2117 = vmatmul.msk.bf16.gmra.mxu0 %vm620_vm0, %v2183_v11  ;;  %2133 = vmatmul.msk.bf16.gmra.mxu1 %vm620_vm0, %v2199_v12 }
  0x38   : > { %2149 = vmatmul.msk.bf16.gmra.mxu2 %vm620_vm0, %v2215_v13  ;;  %2165 = vmatmul.msk.bf16.gmra.mxu3 %vm620_vm0, %v2231_v14 }
  0x47   : > { %2118 = vmatmul.msk.bf16.gmra.mxu0 %vm620_vm0, %v2184_v15  ;;  %2134 = vmatmul.msk.bf16.gmra.mxu1 %vm620_vm0, %v2200_v16 }
  0x48   : > { %2150 = vmatmul.msk.bf16.gmra.mxu2 %vm620_vm0, %v2216_v17  ;;  %2166 = vmatmul.msk.bf16.gmra.mxu3 %vm620_vm0, %v2232_v18 }
  0x57   : > { %2119 = vmatmul.msk.bf16.gmra.mxu0 %vm620_vm0, %v2185_v19  ;;  %2135 = vmatmul.msk.bf16.gmra.mxu1 %vm620_vm0, %v2201_v20 }
  0x58   : > { %2151 = vmatmul.msk.bf16.gmra.mxu2 %vm620_vm0, %v2217_v21  ;;  %2167 = vmatmul.msk.bf16.gmra.mxu3 %vm620_vm0, %v2233_v22 }
  0x67   : > { %2120 = vmatmul.msk.bf16.gmra.mxu0 %vm620_vm0, %v2186_v23  ;;  %2136 = vmatmul.msk.bf16.gmra.mxu1 %vm620_vm0, %v2202_v24 }
  0x68   : > { %2152 = vmatmul.msk.bf16.gmra.mxu2 %vm620_vm0, %v2218_v25  ;;  %2168 = vmatmul.msk.bf16.gmra.mxu3 %vm620_vm0, %v2234_v26 }
  0x77   : > { %2121 = vmatmul.msk.bf16.gmra.mxu0 %vm620_vm0, %v2187_v27  ;;  %2137 = vmatmul.msk.bf16.gmra.mxu1 %vm620_vm0, %v2203_v28  ;;  %v2191_v27 = vld [vmem:[%s2696_s21 + $0x50] sm:$0xff] }
  0x78   : > { %2153 = vmatmul.msk.bf16.gmra.mxu2 %vm620_vm0, %v2219_v29  ;;  %2169 = vmatmul.msk.bf16.gmra.mxu3 %vm620_vm0, %v2235_v30  ;;  %v2207_v28 = vld [vmem:[%s2696_s21 + $0xd0] sm:$0xff] }
  0x79   : > { %v2223_v29 = vld [vmem:[%s2696_s21 + $0x150] sm:$0xff] }
  0x87   : > { %2122 = vmatmul.msk.bf16.gmra.mxu0 %vm620_vm0, %v2188_v31  ;;  %2138 = vmatmul.msk.bf16.gmra.mxu1 %vm620_vm0, %v2204_v32 }
  0x88   : > { %2154 = vmatmul.msk.bf16.gmra.mxu2 %vm620_vm0, %v2220_v33  ;;  %2170 = vmatmul.msk.bf16.gmra.mxu3 %vm620_vm0, %v2236_v34  ;;  %v2239_v34 = vld [vmem:[%s2696_s21 + $0x1d0] sm:$0xff] }
  0x94   : > { %v822_v37 = vpop.f32.mrf.mxu0  ;;  %v902_v38 = vpop.f32.mrf.mxu1 }
  0x95   : > { %v1270_v41 = vmul.f32 0.2, %v822_v37  ;;  %v1302_v42 = vmul.f32 0.2, %v902_v38  ;;  %vm1142_vm1 = vcmp.ge.f32.partialorder %v822_v37, 0.0  ;;  %vm1174_vm2 = vcmp.ge.f32.partialorder %v902_v38, 0.0 }
  0x97   : > { %2123 = vmatmul.msk.bf16.gmra.mxu0 %vm620_vm0, %v2189_v35  ;;  %2139 = vmatmul.msk.bf16.gmra.mxu1 %vm620_vm0, %v2205_v36  ;;  %v1398_v49 = vsel %vm1142_vm1, %v822_v37, %v1270_v41  ;;  %v1430_v50 = vsel %vm1174_vm2, %v902_v38, %v1302_v42 }
  0x98   : > { %2155 = vmatmul.msk.bf16.gmra.mxu2 %vm620_vm0, %v2221_v39  ;;  %2171 = vmatmul.msk.bf16.gmra.mxu3 %vm620_vm0, %v2237_v40 }
  0x9b   : > { %v982_v43 = vpop.f32.mrf.mxu2  ;;  %v1062_v44 = vpop.f32.mrf.mxu3 }
  0x9c   : > { %v824_v45 = vpop.f32.mrf.mxu0  ;;  %v904_v46 = vpop.f32.mrf.mxu1  ;;  %v1334_v55 = vmul.f32 0.2, %v982_v43  ;;  %v1366_v56 = vmul.f32 0.2, %v1062_v44  ;;  %vm1206_vm5 = vcmp.ge.f32.partialorder %v982_v43, 0.0  ;;  %vm1238_vm6 = vcmp.ge.f32.partialorder %v1062_v44, 0.0 }
  0x9d   : > { %vm1143_vm3 = vcmp.ge.f32.partialorder %v824_v45, 0.0  ;;  %v1271_v47 = vmul.f32 0.2, %v824_v45  ;;  %vm1175_vm4 = vcmp.ge.f32.partialorder %v904_v46, 0.0  ;;  %v1303_v48 = vmul.f32 0.2, %v904_v46 }
  0x9e   : > { %v1462_v3 = vsel %vm1206_vm5, %v982_v43, %v1334_v55  ;;  %v1494_v4 = vsel %vm1238_vm6, %v1062_v44, %v1366_v56 }
  0x9f   : > { %v1399_v51 = vsel %vm1143_vm3, %v824_v45, %v1271_v47  ;;  %v1431_v52 = vsel %vm1175_vm4, %v904_v46, %v1303_v48 }
  0xa0   : > { %v2251_v53 = vpack.c.bf16 %v1399_v51, %v1398_v49  ;;  %v2331_v54 = vpack.c.bf16 %v1431_v52, %v1430_v50 }
  0xa2   : > { %2252 = vst [vmem:[%s2775_s24] sm:$0xff] %v2251_v53  }
  0xa3   : > { %2583 = vst [vmem:[%s2775_s24 + $0x80] sm:$0xff] %v2331_v54   ;;  %v984_v57 = vpop.f32.mrf.mxu2  ;;  %v1064_v58 = vpop.f32.mrf.mxu3 }
  0xa4   : > { %vm1207_vm7 = vcmp.ge.f32.partialorder %v984_v57, 0.0  ;;  %v1335_v62 = vmul.f32 0.2, %v984_v57  ;;  %vm1239_vm8 = vcmp.ge.f32.partialorder %v1064_v58, 0.0  ;;  %v1367_v63 = vmul.f32 0.2, %v1064_v58  ;;  %v827_v0 = vpop.f32.mrf.mxu0  ;;  %v907_v1 = vpop.f32.mrf.mxu1 }
  0xa5   : > { %v1272_v9 = vmul.f32 0.2, %v827_v0  ;;  %v1304_v10 = vmul.f32 0.2, %v907_v1  ;;  %vm1144_vm9 = vcmp.ge.f32.partialorder %v827_v0, 0.0  ;;  %vm1176_vm10 = vcmp.ge.f32.partialorder %v907_v1, 0.0 }
  0xa6   : > { %v1463_v5 = vsel %vm1207_vm7, %v984_v57, %v1335_v62  ;;  %v1495_v6 = vsel %vm1239_vm8, %v1064_v58, %v1367_v63 }
  0xa7   : > { %v2411_v7 = vpack.c.bf16 %v1463_v5, %v1462_v3  ;;  %v2491_v8 = vpack.c.bf16 %v1495_v6, %v1494_v4  ;;  %2124 = vmatmul.msk.bf16.gmra.mxu0 %vm620_vm0, %v2190_v59  ;;  %2140 = vmatmul.msk.bf16.gmra.mxu1 %vm620_vm0, %v2206_v60  ;;  %v1400_v17 = vsel %vm1144_vm9, %v827_v0, %v1272_v9  ;;  %v2192_v59 = vld [vmem:[%s2696_s21 + $0x58] sm:$0xff] }
  0xa8   : > { %2156 = vmatmul.msk.bf16.gmra.mxu2 %vm620_vm0, %v2222_v61  ;;  %2172 = vmatmul.msk.bf16.gmra.mxu3 %vm620_vm0, %v2238_v2  ;;  %v1432_v18 = vsel %vm1176_vm10, %v907_v1, %v1304_v10  ;;  %v2208_v60 = vld [vmem:[%s2696_s21 + $0xd8] sm:$0xff] }
  0xa9   : > { %2599 = vst [vmem:[%s2775_s24 + $0x100] sm:$0xff] %v2411_v7   ;;  %v2224_v61 = vld [vmem:[%s2696_s21 + $0x158] sm:$0xff] }
  0xaa   : > { %2615 = vst [vmem:[%s2775_s24 + $0x180] sm:$0xff] %v2491_v8   ;;  %v2240_v2 = vld [vmem:[%s2696_s21 + $0x1d8] sm:$0xff] }
  0xab   : > { %v987_v11 = vpop.f32.mrf.mxu2  ;;  %v1067_v12 = vpop.f32.mrf.mxu3 }
  0xac   : > { %v829_v13 = vpop.f32.mrf.mxu0  ;;  %v909_v14 = vpop.f32.mrf.mxu1  ;;  %v1336_v23 = vmul.f32 0.2, %v987_v11  ;;  %v1368_v24 = vmul.f32 0.2, %v1067_v12  ;;  %vm1208_vm13 = vcmp.ge.f32.partialorder %v987_v11, 0.0  ;;  %vm1240_vm14 = vcmp.ge.f32.partialorder %v1067_v12, 0.0 }
  0xad   : > { %vm1145_vm11 = vcmp.ge.f32.partialorder %v829_v13, 0.0  ;;  %v1273_v15 = vmul.f32 0.2, %v829_v13  ;;  %vm1177_vm12 = vcmp.ge.f32.partialorder %v909_v14, 0.0  ;;  %v1305_v16 = vmul.f32 0.2, %v909_v14 }
  0xae   : > { %v1464_v35 = vsel %vm1208_vm13, %v987_v11, %v1336_v23  ;;  %v1496_v36 = vsel %vm1240_vm14, %v1067_v12, %v1368_v24 }
  0xaf   : > { %v1401_v19 = vsel %vm1145_vm11, %v829_v13, %v1273_v15  ;;  %v1433_v20 = vsel %vm1177_vm12, %v909_v14, %v1305_v16 }
  0xb0   : > { %v2256_v21 = vpack.c.bf16 %v1401_v19, %v1400_v17  ;;  %v2336_v22 = vpack.c.bf16 %v1433_v20, %v1432_v18 }
  0xb2   : > { %2568 = vst [vmem:[%s2775_s24 + $0x8] sm:$0xff] %v2256_v21  }
  0xb3   : > { %2584 = vst [vmem:[%s2775_s24 + $0x88] sm:$0xff] %v2336_v22   ;;  %v989_v25 = vpop.f32.mrf.mxu2  ;;  %v1069_v26 = vpop.f32.mrf.mxu3 }
  0xb4   : > { %vm1209_vm15 = vcmp.ge.f32.partialorder %v989_v25, 0.0  ;;  %v1337_v30 = vmul.f32 0.2, %v989_v25  ;;  %vm1241_vm1 = vcmp.ge.f32.partialorder %v1069_v26, 0.0  ;;  %v1369_v31 = vmul.f32 0.2, %v1069_v26  ;;  %v832_v32 = vpop.f32.mrf.mxu0  ;;  %v912_v33 = vpop.f32.mrf.mxu1 }
  0xb5   : > { %v1274_v41 = vmul.f32 0.2, %v832_v32  ;;  %v1306_v42 = vmul.f32 0.2, %v912_v33  ;;  %vm1146_vm2 = vcmp.ge.f32.partialorder %v832_v32, 0.0  ;;  %vm1178_vm3 = vcmp.ge.f32.partialorder %v912_v33, 0.0 }
  0xb6   : > { %v1465_v37 = vsel %vm1209_vm15, %v989_v25, %v1337_v30  ;;  %v1497_v38 = vsel %vm1241_vm1, %v1069_v26, %v1369_v31 }
  0xb7   : > { %v2416_v39 = vpack.c.bf16 %v1465_v37, %v1464_v35  ;;  %v2496_v40 = vpack.c.bf16 %v1497_v38, %v1496_v36  ;;  %2125 = vmatmul.msk.bf16.gmra.mxu0 %vm620_vm0, %v2191_v27  ;;  %2141 = vmatmul.msk.bf16.gmra.mxu1 %vm620_vm0, %v2207_v28  ;;  %v1402_v49 = vsel %vm1146_vm2, %v832_v32, %v1274_v41  ;;  %v2193_v27 = vld [vmem:[%s2696_s21 + $0x60] sm:$0xff] }
  0xb8   : > { %2157 = vmatmul.msk.bf16.gmra.mxu2 %vm620_vm0, %v2223_v29  ;;  %2173 = vmatmul.msk.bf16.gmra.mxu3 %vm620_vm0, %v2239_v34  ;;  %v1434_v50 = vsel %vm1178_vm3, %v912_v33, %v1306_v42  ;;  %v2209_v28 = vld [vmem:[%s2696_s21 + $0xe0] sm:$0xff] }
  0xb9   : > { %2600 = vst [vmem:[%s2775_s24 + $0x108] sm:$0xff] %v2416_v39   ;;  %v2225_v29 = vld [vmem:[%s2696_s21 + $0x160] sm:$0xff] }
  0xba   : > { %2616 = vst [vmem:[%s2775_s24 + $0x188] sm:$0xff] %v2496_v40   ;;  %v2241_v34 = vld [vmem:[%s2696_s21 + $0x1e0] sm:$0xff] }
  0xbb   : > { %v992_v43 = vpop.f32.mrf.mxu2  ;;  %v1072_v44 = vpop.f32.mrf.mxu3 }
  0xbc   : > { %v834_v45 = vpop.f32.mrf.mxu0  ;;  %v914_v46 = vpop.f32.mrf.mxu1  ;;  %v1338_v55 = vmul.f32 0.2, %v992_v43  ;;  %v1370_v56 = vmul.f32 0.2, %v1072_v44  ;;  %vm1210_vm6 = vcmp.ge.f32.partialorder %v992_v43, 0.0  ;;  %vm1242_vm7 = vcmp.ge.f32.partialorder %v1072_v44, 0.0 }
  0xbd   : > { %vm1147_vm4 = vcmp.ge.f32.partialorder %v834_v45, 0.0  ;;  %v1275_v47 = vmul.f32 0.2, %v834_v45  ;;  %vm1179_vm5 = vcmp.ge.f32.partialorder %v914_v46, 0.0  ;;  %v1307_v48 = vmul.f32 0.2, %v914_v46 }
  0xbe   : > { %v1466_v3 = vsel %vm1210_vm6, %v992_v43, %v1338_v55  ;;  %v1498_v4 = vsel %vm1242_vm7, %v1072_v44, %v1370_v56 }
  0xbf   : > { %v1403_v51 = vsel %vm1147_vm4, %v834_v45, %v1275_v47  ;;  %v1435_v52 = vsel %vm1179_vm5, %v914_v46, %v1307_v48 }
  0xc0   : > { %v2261_v53 = vpack.c.bf16 %v1403_v51, %v1402_v49  ;;  %v2341_v54 = vpack.c.bf16 %v1435_v52, %v1434_v50 }
  0xc2   : > { %2569 = vst [vmem:[%s2775_s24 + $0x10] sm:$0xff] %v2261_v53  }
  0xc3   : > { %2585 = vst [vmem:[%s2775_s24 + $0x90] sm:$0xff] %v2341_v54   ;;  %v994_v57 = vpop.f32.mrf.mxu2  ;;  %v1074_v58 = vpop.f32.mrf.mxu3 }
  0xc4   : > { %vm1211_vm8 = vcmp.ge.f32.partialorder %v994_v57, 0.0  ;;  %v1339_v62 = vmul.f32 0.2, %v994_v57  ;;  %vm1243_vm9 = vcmp.ge.f32.partialorder %v1074_v58, 0.0  ;;  %v1371_v63 = vmul.f32 0.2, %v1074_v58  ;;  %v837_v0 = vpop.f32.mrf.mxu0  ;;  %v917_v1 = vpop.f32.mrf.mxu1 }
  0xc5   : > { %v1276_v9 = vmul.f32 0.2, %v837_v0  ;;  %v1308_v10 = vmul.f32 0.2, %v917_v1  ;;  %vm1148_vm10 = vcmp.ge.f32.partialorder %v837_v0, 0.0  ;;  %vm1180_vm11 = vcmp.ge.f32.partialorder %v917_v1, 0.0 }
  0xc6   : > { %v1467_v5 = vsel %vm1211_vm8, %v994_v57, %v1339_v62  ;;  %v1499_v6 = vsel %vm1243_vm9, %v1074_v58, %v1371_v63 }
  0xc7   : > { %v2421_v7 = vpack.c.bf16 %v1467_v5, %v1466_v3  ;;  %v2501_v8 = vpack.c.bf16 %v1499_v6, %v1498_v4  ;;  %2126 = vmatmul.msk.bf16.gmra.mxu0 %vm620_vm0, %v2192_v59  ;;  %2142 = vmatmul.msk.bf16.gmra.mxu1 %vm620_vm0, %v2208_v60  ;;  %v1404_v17 = vsel %vm1148_vm10, %v837_v0, %v1276_v9  ;;  %v2194_v59 = vld [vmem:[%s2696_s21 + $0x68] sm:$0xff] }
  0xc8   : > { %2158 = vmatmul.msk.bf16.gmra.mxu2 %vm620_vm0, %v2224_v61  ;;  %2174 = vmatmul.msk.bf16.gmra.mxu3 %vm620_vm0, %v2240_v2  ;;  %v1436_v18 = vsel %vm1180_vm11, %v917_v1, %v1308_v10  ;;  %v2210_v60 = vld [vmem:[%s2696_s21 + $0xe8] sm:$0xff] }
  0xc9   : > { %2601 = vst [vmem:[%s2775_s24 + $0x110] sm:$0xff] %v2421_v7   ;;  %v2226_v61 = vld [vmem:[%s2696_s21 + $0x168] sm:$0xff] }
  0xca   : > { %2617 = vst [vmem:[%s2775_s24 + $0x190] sm:$0xff] %v2501_v8   ;;  %v2242_v2 = vld [vmem:[%s2696_s21 + $0x1e8] sm:$0xff] }
  0xcb   : > { %v997_v11 = vpop.f32.mrf.mxu2  ;;  %v1077_v12 = vpop.f32.mrf.mxu3 }
  0xcc   : > { %v839_v13 = vpop.f32.mrf.mxu0  ;;  %v919_v14 = vpop.f32.mrf.mxu1  ;;  %v1340_v23 = vmul.f32 0.2, %v997_v11  ;;  %v1372_v24 = vmul.f32 0.2, %v1077_v12  ;;  %vm1212_vm14 = vcmp.ge.f32.partialorder %v997_v11, 0.0  ;;  %vm1244_vm15 = vcmp.ge.f32.partialorder %v1077_v12, 0.0 }
  0xcd   : > { %vm1149_vm12 = vcmp.ge.f32.partialorder %v839_v13, 0.0  ;;  %v1277_v15 = vmul.f32 0.2, %v839_v13  ;;  %vm1181_vm13 = vcmp.ge.f32.partialorder %v919_v14, 0.0  ;;  %v1309_v16 = vmul.f32 0.2, %v919_v14 }
  0xce   : > { %v1468_v35 = vsel %vm1212_vm14, %v997_v11, %v1340_v23  ;;  %v1500_v36 = vsel %vm1244_vm15, %v1077_v12, %v1372_v24 }
  0xcf   : > { %v1405_v19 = vsel %vm1149_vm12, %v839_v13, %v1277_v15  ;;  %v1437_v20 = vsel %vm1181_vm13, %v919_v14, %v1309_v16 }
  0xd0   : > { %v2266_v21 = vpack.c.bf16 %v1405_v19, %v1404_v17  ;;  %v2346_v22 = vpack.c.bf16 %v1437_v20, %v1436_v18 }
  0xd2   : > { %2570 = vst [vmem:[%s2775_s24 + $0x18] sm:$0xff] %v2266_v21  }
  0xd3   : > { %2586 = vst [vmem:[%s2775_s24 + $0x98] sm:$0xff] %v2346_v22   ;;  %v999_v25 = vpop.f32.mrf.mxu2  ;;  %v1079_v26 = vpop.f32.mrf.mxu3 }
  0xd4   : > { %vm1213_vm1 = vcmp.ge.f32.partialorder %v999_v25, 0.0  ;;  %v1341_v30 = vmul.f32 0.2, %v999_v25  ;;  %vm1245_vm2 = vcmp.ge.f32.partialorder %v1079_v26, 0.0  ;;  %v1373_v31 = vmul.f32 0.2, %v1079_v26  ;;  %v842_v32 = vpop.f32.mrf.mxu0  ;;  %v922_v33 = vpop.f32.mrf.mxu1 }
  0xd5   : > { %v1278_v41 = vmul.f32 0.2, %v842_v32  ;;  %v1310_v42 = vmul.f32 0.2, %v922_v33  ;;  %vm1150_vm3 = vcmp.ge.f32.partialorder %v842_v32, 0.0  ;;  %vm1182_vm4 = vcmp.ge.f32.partialorder %v922_v33, 0.0 }
  0xd6   : > { %v1469_v37 = vsel %vm1213_vm1, %v999_v25, %v1341_v30  ;;  %v1501_v38 = vsel %vm1245_vm2, %v1079_v26, %v1373_v31 }
  0xd7   : > { %v2426_v39 = vpack.c.bf16 %v1469_v37, %v1468_v35  ;;  %v2506_v40 = vpack.c.bf16 %v1501_v38, %v1500_v36  ;;  %2127 = vmatmul.msk.bf16.gmra.mxu0 %vm620_vm0, %v2193_v27  ;;  %2143 = vmatmul.msk.bf16.gmra.mxu1 %vm620_vm0, %v2209_v28  ;;  %v1406_v49 = vsel %vm1150_vm3, %v842_v32, %v1278_v41  ;;  %v2195_v27 = vld [vmem:[%s2696_s21 + $0x70] sm:$0xff] }
  0xd8   : > { %2159 = vmatmul.msk.bf16.gmra.mxu2 %vm620_vm0, %v2225_v29  ;;  %2175 = vmatmul.msk.bf16.gmra.mxu3 %vm620_vm0, %v2241_v34  ;;  %v1438_v50 = vsel %vm1182_vm4, %v922_v33, %v1310_v42  ;;  %v2211_v28 = vld [vmem:[%s2696_s21 + $0xf0] sm:$0xff] }
  0xd9   : > { %2602 = vst [vmem:[%s2775_s24 + $0x118] sm:$0xff] %v2426_v39   ;;  %v2227_v29 = vld [vmem:[%s2696_s21 + $0x170] sm:$0xff] }
  0xda   : > { %2618 = vst [vmem:[%s2775_s24 + $0x198] sm:$0xff] %v2506_v40   ;;  %v2243_v34 = vld [vmem:[%s2696_s21 + $0x1f0] sm:$0xff] }
  0xdb   : > { %v1002_v43 = vpop.f32.mrf.mxu2  ;;  %v1082_v44 = vpop.f32.mrf.mxu3 }
  0xdc   : > { %v844_v45 = vpop.f32.mrf.mxu0  ;;  %v924_v46 = vpop.f32.mrf.mxu1  ;;  %v1342_v55 = vmul.f32 0.2, %v1002_v43  ;;  %v1374_v56 = vmul.f32 0.2, %v1082_v44  ;;  %vm1214_vm7 = vcmp.ge.f32.partialorder %v1002_v43, 0.0  ;;  %vm1246_vm8 = vcmp.ge.f32.partialorder %v1082_v44, 0.0 }
  0xdd   : > { %vm1151_vm5 = vcmp.ge.f32.partialorder %v844_v45, 0.0  ;;  %v1279_v47 = vmul.f32 0.2, %v844_v45  ;;  %vm1183_vm6 = vcmp.ge.f32.partialorder %v924_v46, 0.0  ;;  %v1311_v48 = vmul.f32 0.2, %v924_v46 }
  0xde   : > { %v1470_v3 = vsel %vm1214_vm7, %v1002_v43, %v1342_v55  ;;  %v1502_v4 = vsel %vm1246_vm8, %v1082_v44, %v1374_v56 }
  0xdf   : > { %v1407_v51 = vsel %vm1151_vm5, %v844_v45, %v1279_v47  ;;  %v1439_v52 = vsel %vm1183_vm6, %v924_v46, %v1311_v48 }
  0xe0   : > { %v2271_v53 = vpack.c.bf16 %v1407_v51, %v1406_v49  ;;  %v2351_v54 = vpack.c.bf16 %v1439_v52, %v1438_v50 }
  0xe2   : > { %2571 = vst [vmem:[%s2775_s24 + $0x20] sm:$0xff] %v2271_v53  }
  0xe3   : > { %2587 = vst [vmem:[%s2775_s24 + $0xa0] sm:$0xff] %v2351_v54   ;;  %v1004_v57 = vpop.f32.mrf.mxu2  ;;  %v1084_v58 = vpop.f32.mrf.mxu3 }
  0xe4   : > { %vm1215_vm9 = vcmp.ge.f32.partialorder %v1004_v57, 0.0  ;;  %v1343_v62 = vmul.f32 0.2, %v1004_v57  ;;  %vm1247_vm10 = vcmp.ge.f32.partialorder %v1084_v58, 0.0  ;;  %v1375_v63 = vmul.f32 0.2, %v1084_v58  ;;  %v847_v0 = vpop.f32.mrf.mxu0  ;;  %v927_v1 = vpop.f32.mrf.mxu1 }
  0xe5   : > { %v1280_v9 = vmul.f32 0.2, %v847_v0  ;;  %v1312_v10 = vmul.f32 0.2, %v927_v1  ;;  %vm1152_vm11 = vcmp.ge.f32.partialorder %v847_v0, 0.0  ;;  %vm1184_vm12 = vcmp.ge.f32.partialorder %v927_v1, 0.0 }
  0xe6   : > { %v1471_v5 = vsel %vm1215_vm9, %v1004_v57, %v1343_v62  ;;  %v1503_v6 = vsel %vm1247_vm10, %v1084_v58, %v1375_v63 }
  0xe7   : > { %v2431_v7 = vpack.c.bf16 %v1471_v5, %v1470_v3  ;;  %v2511_v8 = vpack.c.bf16 %v1503_v6, %v1502_v4  ;;  %2128 = vmatmul.msk.bf16.gmra.mxu0 %vm620_vm0, %v2194_v59  ;;  %2144 = vmatmul.msk.bf16.gmra.mxu1 %vm620_vm0, %v2210_v60  ;;  %v1408_v17 = vsel %vm1152_vm11, %v847_v0, %v1280_v9  ;;  %v2196_v59 = vld [vmem:[%s2696_s21 + $0x78] sm:$0xff] }
  0xe8   : > { %2160 = vmatmul.msk.bf16.gmra.mxu2 %vm620_vm0, %v2226_v61  ;;  %2176 = vmatmul.msk.bf16.gmra.mxu3 %vm620_vm0, %v2242_v2  ;;  %v1440_v18 = vsel %vm1184_vm12, %v927_v1, %v1312_v10  ;;  %v2212_v60 = vld [vmem:[%s2696_s21 + $0xf8] sm:$0xff] }
  0xe9   : > { %2603 = vst [vmem:[%s2775_s24 + $0x120] sm:$0xff] %v2431_v7   ;;  %v2228_v61 = vld [vmem:[%s2696_s21 + $0x178] sm:$0xff] }
  0xea   : > { %2619 = vst [vmem:[%s2775_s24 + $0x1a0] sm:$0xff] %v2511_v8   ;;  %v2244_v2 = vld [vmem:[%s2696_s21 + $0x1f8] sm:$0xff] }
  0xeb   : > { %v1007_v11 = vpop.f32.mrf.mxu2  ;;  %v1087_v12 = vpop.f32.mrf.mxu3 }
  0xec   : > { %v849_v13 = vpop.f32.mrf.mxu0  ;;  %v929_v14 = vpop.f32.mrf.mxu1  ;;  %v1344_v23 = vmul.f32 0.2, %v1007_v11  ;;  %v1376_v24 = vmul.f32 0.2, %v1087_v12  ;;  %vm1216_vm15 = vcmp.ge.f32.partialorder %v1007_v11, 0.0  ;;  %vm1248_vm1 = vcmp.ge.f32.partialorder %v1087_v12, 0.0 }
  0xed   : > { %vm1153_vm13 = vcmp.ge.f32.partialorder %v849_v13, 0.0  ;;  %v1281_v15 = vmul.f32 0.2, %v849_v13  ;;  %vm1185_vm14 = vcmp.ge.f32.partialorder %v929_v14, 0.0  ;;  %v1313_v16 = vmul.f32 0.2, %v929_v14 }
  0xee   : > { %v1472_v35 = vsel %vm1216_vm15, %v1007_v11, %v1344_v23  ;;  %v1504_v36 = vsel %vm1248_vm1, %v1087_v12, %v1376_v24 }
  0xef   : > { %v1409_v19 = vsel %vm1153_vm13, %v849_v13, %v1281_v15  ;;  %v1441_v20 = vsel %vm1185_vm14, %v929_v14, %v1313_v16 }
  0xf0   : > { %v2276_v21 = vpack.c.bf16 %v1409_v19, %v1408_v17  ;;  %v2356_v22 = vpack.c.bf16 %v1441_v20, %v1440_v18 }
  0xf2   : > { %2572 = vst [vmem:[%s2775_s24 + $0x28] sm:$0xff] %v2276_v21  }
  0xf3   : > { %2588 = vst [vmem:[%s2775_s24 + $0xa8] sm:$0xff] %v2356_v22   ;;  %v1009_v25 = vpop.f32.mrf.mxu2  ;;  %v1089_v26 = vpop.f32.mrf.mxu3 }
  0xf4   : > { %vm1217_vm2 = vcmp.ge.f32.partialorder %v1009_v25, 0.0  ;;  %v1345_v30 = vmul.f32 0.2, %v1009_v25  ;;  %vm1249_vm3 = vcmp.ge.f32.partialorder %v1089_v26, 0.0  ;;  %v1377_v31 = vmul.f32 0.2, %v1089_v26  ;;  %v852_v32 = vpop.f32.mrf.mxu0  ;;  %v932_v33 = vpop.f32.mrf.mxu1 }
  0xf5   : > { %v1282_v41 = vmul.f32 0.2, %v852_v32  ;;  %v1314_v42 = vmul.f32 0.2, %v932_v33  ;;  %vm1154_vm4 = vcmp.ge.f32.partialorder %v852_v32, 0.0  ;;  %vm1186_vm5 = vcmp.ge.f32.partialorder %v932_v33, 0.0 }
  0xf6   : > { %v1473_v37 = vsel %vm1217_vm2, %v1009_v25, %v1345_v30  ;;  %v1505_v38 = vsel %vm1249_vm3, %v1089_v26, %v1377_v31 }
  0xf7   : > { %v2436_v39 = vpack.c.bf16 %v1473_v37, %v1472_v35  ;;  %v2516_v40 = vpack.c.bf16 %v1505_v38, %v1504_v36  ;;  %2129 = vmatmul.msk.bf16.gmra.mxu0 %vm620_vm0, %v2195_v27  ;;  %2145 = vmatmul.msk.bf16.gmra.mxu1 %vm620_vm0, %v2211_v28  ;;  %v1410_v49 = vsel %vm1154_vm4, %v852_v32, %v1282_v41 }
  0xf8   : > { %2161 = vmatmul.msk.bf16.gmra.mxu2 %vm620_vm0, %v2227_v29  ;;  %2177 = vmatmul.msk.bf16.gmra.mxu3 %vm620_vm0, %v2243_v34  ;;  %v1442_v50 = vsel %vm1186_vm5, %v932_v33, %v1314_v42 }
  0xf9   : > { %2604 = vst [vmem:[%s2775_s24 + $0x128] sm:$0xff] %v2436_v39  }
  0xfa   : > { %2620 = vst [vmem:[%s2775_s24 + $0x1a8] sm:$0xff] %v2516_v40  }
  0xfb   : > { %v1012_v43 = vpop.f32.mrf.mxu2  ;;  %v1092_v44 = vpop.f32.mrf.mxu3 }
  0xfc   : > { %v854_v45 = vpop.f32.mrf.mxu0  ;;  %v934_v46 = vpop.f32.mrf.mxu1  ;;  %v1346_v55 = vmul.f32 0.2, %v1012_v43  ;;  %v1378_v56 = vmul.f32 0.2, %v1092_v44  ;;  %vm1218_vm8 = vcmp.ge.f32.partialorder %v1012_v43, 0.0  ;;  %vm1250_vm9 = vcmp.ge.f32.partialorder %v1092_v44, 0.0 }
  0xfd   : > { %vm1155_vm6 = vcmp.ge.f32.partialorder %v854_v45, 0.0  ;;  %v1283_v47 = vmul.f32 0.2, %v854_v45  ;;  %vm1187_vm7 = vcmp.ge.f32.partialorder %v934_v46, 0.0  ;;  %v1315_v48 = vmul.f32 0.2, %v934_v46 }
  0xfe   : > { %v1474_v3 = vsel %vm1218_vm8, %v1012_v43, %v1346_v55  ;;  %v1506_v4 = vsel %vm1250_vm9, %v1092_v44, %v1378_v56 }
  0xff   : > { %v1411_v51 = vsel %vm1155_vm6, %v854_v45, %v1283_v47  ;;  %v1443_v52 = vsel %vm1187_vm7, %v934_v46, %v1315_v48 }
 0x100   : > { %v2281_v53 = vpack.c.bf16 %v1411_v51, %v1410_v49  ;;  %v2361_v54 = vpack.c.bf16 %v1443_v52, %v1442_v50 }
 0x102   : > { %2573 = vst [vmem:[%s2775_s24 + $0x30] sm:$0xff] %v2281_v53  }
 0x103   : > { %2589 = vst [vmem:[%s2775_s24 + $0xb0] sm:$0xff] %v2361_v54   ;;  %v1014_v57 = vpop.f32.mrf.mxu2  ;;  %v1094_v58 = vpop.f32.mrf.mxu3 }
 0x104   : > { %vm1219_vm10 = vcmp.ge.f32.partialorder %v1014_v57, 0.0  ;;  %v1347_v62 = vmul.f32 0.2, %v1014_v57  ;;  %vm1251_vm11 = vcmp.ge.f32.partialorder %v1094_v58, 0.0  ;;  %v1379_v63 = vmul.f32 0.2, %v1094_v58  ;;  %v857_v0 = vpop.f32.mrf.mxu0  ;;  %v937_v1 = vpop.f32.mrf.mxu1 }
 0x105   : > { %v1284_v9 = vmul.f32 0.2, %v857_v0  ;;  %v1316_v10 = vmul.f32 0.2, %v937_v1  ;;  %vm1156_vm12 = vcmp.ge.f32.partialorder %v857_v0, 0.0  ;;  %vm1188_vm13 = vcmp.ge.f32.partialorder %v937_v1, 0.0 }
 0x106   : > { %v1475_v5 = vsel %vm1219_vm10, %v1014_v57, %v1347_v62  ;;  %v1507_v6 = vsel %vm1251_vm11, %v1094_v58, %v1379_v63 }
 0x107   : > { %v2441_v7 = vpack.c.bf16 %v1475_v5, %v1474_v3  ;;  %v2521_v8 = vpack.c.bf16 %v1507_v6, %v1506_v4  ;;  %2130 = vmatmul.msk.bf16.gmra.mxu0 %vm620_vm0, %v2196_v59  ;;  %2146 = vmatmul.msk.bf16.gmra.mxu1 %vm620_vm0, %v2212_v60  ;;  %v1412_v17 = vsel %vm1156_vm12, %v857_v0, %v1284_v9 }
 0x108   : > { %2162 = vmatmul.msk.bf16.gmra.mxu2 %vm620_vm0, %v2228_v61  ;;  %2178 = vmatmul.msk.bf16.gmra.mxu3 %vm620_vm0, %v2244_v2  ;;  %v1444_v18 = vsel %vm1188_vm13, %v937_v1, %v1316_v10 }
 0x109   : > { %2605 = vst [vmem:[%s2775_s24 + $0x130] sm:$0xff] %v2441_v7  }
 0x10a   : > { %2621 = vst [vmem:[%s2775_s24 + $0x1b0] sm:$0xff] %v2521_v8  }
 0x10b   : > { %v1017_v11 = vpop.f32.mrf.mxu2  ;;  %v1097_v12 = vpop.f32.mrf.mxu3 }
 0x10c   : > { %v859_v13 = vpop.f32.mrf.mxu0  ;;  %v939_v14 = vpop.f32.mrf.mxu1  ;;  %v1348_v23 = vmul.f32 0.2, %v1017_v11  ;;  %v1380_v24 = vmul.f32 0.2, %v1097_v12  ;;  %vm1220_vm0 = vcmp.ge.f32.partialorder %v1017_v11, 0.0  ;;  %vm1252_vm1 = vcmp.ge.f32.partialorder %v1097_v12, 0.0 }
 0x10d   : > { %vm1157_vm14 = vcmp.ge.f32.partialorder %v859_v13, 0.0  ;;  %v1285_v15 = vmul.f32 0.2, %v859_v13  ;;  %vm1189_vm15 = vcmp.ge.f32.partialorder %v939_v14, 0.0  ;;  %v1317_v16 = vmul.f32 0.2, %v939_v14 }
 0x10e   : > { %v1476_v31 = vsel %vm1220_vm0, %v1017_v11, %v1348_v23  ;;  %v1508_v32 = vsel %vm1252_vm1, %v1097_v12, %v1380_v24 }
 0x10f   : > { %v1413_v19 = vsel %vm1157_vm14, %v859_v13, %v1285_v15  ;;  %v1445_v20 = vsel %vm1189_vm15, %v939_v14, %v1317_v16 }
 0x110   : > { %v2286_v21 = vpack.c.bf16 %v1413_v19, %v1412_v17  ;;  %v2366_v22 = vpack.c.bf16 %v1445_v20, %v1444_v18 }
 0x112   : > { %2574 = vst [vmem:[%s2775_s24 + $0x38] sm:$0xff] %v2286_v21  }
 0x113   : > { %2590 = vst [vmem:[%s2775_s24 + $0xb8] sm:$0xff] %v2366_v22   ;;  %v1019_v25 = vpop.f32.mrf.mxu2  ;;  %v1099_v26 = vpop.f32.mrf.mxu3 }
 0x114   : > { %vm1221_vm2 = vcmp.ge.f32.partialorder %v1019_v25, 0.0  ;;  %v1349_v27 = vmul.f32 0.2, %v1019_v25  ;;  %vm1253_vm3 = vcmp.ge.f32.partialorder %v1099_v26, 0.0  ;;  %v1381_v28 = vmul.f32 0.2, %v1099_v26  ;;  %v862_v29 = vpop.f32.mrf.mxu0  ;;  %v942_v30 = vpop.f32.mrf.mxu1 }
 0x115   : > { %v1286_v37 = vmul.f32 0.2, %v862_v29  ;;  %v1318_v38 = vmul.f32 0.2, %v942_v30  ;;  %vm1158_vm4 = vcmp.ge.f32.partialorder %v862_v29, 0.0  ;;  %vm1190_vm5 = vcmp.ge.f32.partialorder %v942_v30, 0.0 }
 0x116   : > { %v1477_v33 = vsel %vm1221_vm2, %v1019_v25, %v1349_v27  ;;  %v1509_v34 = vsel %vm1253_vm3, %v1099_v26, %v1381_v28 }
 0x117   : > { %v2446_v35 = vpack.c.bf16 %v1477_v33, %v1476_v31  ;;  %v2526_v36 = vpack.c.bf16 %v1509_v34, %v1508_v32  ;;  %v1414_v45 = vsel %vm1158_vm4, %v862_v29, %v1286_v37  ;;  %v1446_v46 = vsel %vm1190_vm5, %v942_v30, %v1318_v38 }
 0x119   : > { %2606 = vst [vmem:[%s2775_s24 + $0x138] sm:$0xff] %v2446_v35  }
 0x11a   : > { %2622 = vst [vmem:[%s2775_s24 + $0x1b8] sm:$0xff] %v2526_v36  }
 0x11b   : > { %v1022_v39 = vpop.f32.mrf.mxu2  ;;  %v1102_v40 = vpop.f32.mrf.mxu3 }
 0x11c   : > { %v864_v41 = vpop.f32.mrf.mxu0  ;;  %v944_v42 = vpop.f32.mrf.mxu1  ;;  %v1350_v51 = vmul.f32 0.2, %v1022_v39  ;;  %v1382_v52 = vmul.f32 0.2, %v1102_v40  ;;  %vm1222_vm8 = vcmp.ge.f32.partialorder %v1022_v39, 0.0  ;;  %vm1254_vm9 = vcmp.ge.f32.partialorder %v1102_v40, 0.0 }
 0x11d   : > { %vm1159_vm6 = vcmp.ge.f32.partialorder %v864_v41, 0.0  ;;  %v1287_v43 = vmul.f32 0.2, %v864_v41  ;;  %vm1191_vm7 = vcmp.ge.f32.partialorder %v944_v42, 0.0  ;;  %v1319_v44 = vmul.f32 0.2, %v944_v42 }
 0x11e   : > { %v1478_v59 = vsel %vm1222_vm8, %v1022_v39, %v1350_v51  ;;  %v1510_v60 = vsel %vm1254_vm9, %v1102_v40, %v1382_v52 }
 0x11f   : > { %v1415_v47 = vsel %vm1159_vm6, %v864_v41, %v1287_v43  ;;  %v1447_v48 = vsel %vm1191_vm7, %v944_v42, %v1319_v44 }
 0x120   : > { %v2291_v49 = vpack.c.bf16 %v1415_v47, %v1414_v45  ;;  %v2371_v50 = vpack.c.bf16 %v1447_v48, %v1446_v46 }
 0x122   : > { %2575 = vst [vmem:[%s2775_s24 + $0x40] sm:$0xff] %v2291_v49  }
 0x123   : > { %2591 = vst [vmem:[%s2775_s24 + $0xc0] sm:$0xff] %v2371_v50   ;;  %v1024_v53 = vpop.f32.mrf.mxu2  ;;  %v1104_v54 = vpop.f32.mrf.mxu3 }
 0x124   : > { %vm1223_vm10 = vcmp.ge.f32.partialorder %v1024_v53, 0.0  ;;  %v1351_v55 = vmul.f32 0.2, %v1024_v53  ;;  %vm1255_vm11 = vcmp.ge.f32.partialorder %v1104_v54, 0.0  ;;  %v1383_v56 = vmul.f32 0.2, %v1104_v54  ;;  %v867_v57 = vpop.f32.mrf.mxu0  ;;  %v947_v58 = vpop.f32.mrf.mxu1 }
 0x125   : > { %v1288_v1 = vmul.f32 0.2, %v867_v57  ;;  %vm1160_vm12 = vcmp.ge.f32.partialorder %v867_v57, 0.0  ;;  %v1320_v3 = vmul.f32 0.2, %v947_v58  ;;  %vm1192_vm13 = vcmp.ge.f32.partialorder %v947_v58, 0.0 }
 0x126   : > { %v1479_v61 = vsel %vm1223_vm10, %v1024_v53, %v1351_v55  ;;  %v1511_v62 = vsel %vm1255_vm11, %v1104_v54, %v1383_v56 }
 0x127   : > { %v2451_v63 = vpack.c.bf16 %v1479_v61, %v1478_v59  ;;  %v2531_v0 = vpack.c.bf16 %v1511_v62, %v1510_v60  ;;  %v1416_v9 = vsel %vm1160_vm12, %v867_v57, %v1288_v1  ;;  %v1448_v11 = vsel %vm1192_vm13, %v947_v58, %v1320_v3 }
 0x129   : > { %2607 = vst [vmem:[%s2775_s24 + $0x140] sm:$0xff] %v2451_v63  }
 0x12a   : > { %2623 = vst [vmem:[%s2775_s24 + $0x1c0] sm:$0xff] %v2531_v0  }
 0x12b   : > { %v1027_v2 = vpop.f32.mrf.mxu2  ;;  %v1107_v4 = vpop.f32.mrf.mxu3 }
 0x12c   : > { %v869_v5 = vpop.f32.mrf.mxu0  ;;  %v949_v7 = vpop.f32.mrf.mxu1  ;;  %v1352_v15 = vmul.f32 0.2, %v1027_v2  ;;  %vm1224_vm0 = vcmp.ge.f32.partialorder %v1027_v2, 0.0  ;;  %v1384_v16 = vmul.f32 0.2, %v1107_v4  ;;  %vm1256_vm1 = vcmp.ge.f32.partialorder %v1107_v4, 0.0 }
 0x12d   : > { %vm1161_vm14 = vcmp.ge.f32.partialorder %v869_v5, 0.0  ;;  %v1289_v6 = vmul.f32 0.2, %v869_v5  ;;  %vm1193_vm15 = vcmp.ge.f32.partialorder %v949_v7, 0.0  ;;  %v1321_v8 = vmul.f32 0.2, %v949_v7 }
 0x12e   : > { %v1480_v23 = vsel %vm1224_vm0, %v1027_v2, %v1352_v15  ;;  %v1512_v25 = vsel %vm1256_vm1, %v1107_v4, %v1384_v16 }
 0x12f   : > { %v1417_v10 = vsel %vm1161_vm14, %v869_v5, %v1289_v6  ;;  %v1449_v13 = vsel %vm1193_vm15, %v949_v7, %v1321_v8 }
 0x130   : > { %v2296_v12 = vpack.c.bf16 %v1417_v10, %v1416_v9  ;;  %v2376_v14 = vpack.c.bf16 %v1449_v13, %v1448_v11 }
 0x132   : > { %2576 = vst [vmem:[%s2775_s24 + $0x48] sm:$0xff] %v2296_v12  }
 0x133   : > { %2592 = vst [vmem:[%s2775_s24 + $0xc8] sm:$0xff] %v2376_v14   ;;  %v1029_v17 = vpop.f32.mrf.mxu2  ;;  %v1109_v19 = vpop.f32.mrf.mxu3 }
 0x134   : > { %vm1225_vm2 = vcmp.ge.f32.partialorder %v1029_v17, 0.0  ;;  %v1353_v18 = vmul.f32 0.2, %v1029_v17  ;;  %v872_v20 = vpop.f32.mrf.mxu0  ;;  %vm1257_vm3 = vcmp.ge.f32.partialorder %v1109_v19, 0.0  ;;  %v1385_v21 = vmul.f32 0.2, %v1109_v19  ;;  %v952_v22 = vpop.f32.mrf.mxu1 }
 0x135   : > { %v1290_v29 = vmul.f32 0.2, %v872_v20  ;;  %vm1162_vm4 = vcmp.ge.f32.partialorder %v872_v20, 0.0  ;;  %v1322_v31 = vmul.f32 0.2, %v952_v22  ;;  %vm1194_vm5 = vcmp.ge.f32.partialorder %v952_v22, 0.0 }
 0x136   : > { %v1481_v24 = vsel %vm1225_vm2, %v1029_v17, %v1353_v18  ;;  %v1513_v27 = vsel %vm1257_vm3, %v1109_v19, %v1385_v21 }
 0x137   : > { %v2456_v26 = vpack.c.bf16 %v1481_v24, %v1480_v23  ;;  %v2536_v28 = vpack.c.bf16 %v1513_v27, %v1512_v25  ;;  %v1418_v37 = vsel %vm1162_vm4, %v872_v20, %v1290_v29  ;;  %v1450_v39 = vsel %vm1194_vm5, %v952_v22, %v1322_v31 }
 0x139   : > { %2608 = vst [vmem:[%s2775_s24 + $0x148] sm:$0xff] %v2456_v26  }
 0x13a   : > { %2624 = vst [vmem:[%s2775_s24 + $0x1c8] sm:$0xff] %v2536_v28  }
 0x13b   : > { %v1032_v30 = vpop.f32.mrf.mxu2  ;;  %v1112_v32 = vpop.f32.mrf.mxu3 }
 0x13c   : > { %v874_v33 = vpop.f32.mrf.mxu0  ;;  %v954_v35 = vpop.f32.mrf.mxu1  ;;  %v1354_v43 = vmul.f32 0.2, %v1032_v30  ;;  %vm1226_vm8 = vcmp.ge.f32.partialorder %v1032_v30, 0.0  ;;  %v1386_v44 = vmul.f32 0.2, %v1112_v32  ;;  %vm1258_vm9 = vcmp.ge.f32.partialorder %v1112_v32, 0.0 }
 0x13d   : > { %vm1163_vm6 = vcmp.ge.f32.partialorder %v874_v33, 0.0  ;;  %v1291_v34 = vmul.f32 0.2, %v874_v33  ;;  %vm1195_vm7 = vcmp.ge.f32.partialorder %v954_v35, 0.0  ;;  %v1323_v36 = vmul.f32 0.2, %v954_v35 }
 0x13e   : > { %v1482_v51 = vsel %vm1226_vm8, %v1032_v30, %v1354_v43  ;;  %v1514_v53 = vsel %vm1258_vm9, %v1112_v32, %v1386_v44 }
 0x13f   : > { %v1419_v38 = vsel %vm1163_vm6, %v874_v33, %v1291_v34  ;;  %v1451_v41 = vsel %vm1195_vm7, %v954_v35, %v1323_v36 }
 0x140   : > { %v2301_v40 = vpack.c.bf16 %v1419_v38, %v1418_v37  ;;  %v2381_v42 = vpack.c.bf16 %v1451_v41, %v1450_v39 }
 0x142   : > { %2577 = vst [vmem:[%s2775_s24 + $0x50] sm:$0xff] %v2301_v40  }
 0x143   : > { %2593 = vst [vmem:[%s2775_s24 + $0xd0] sm:$0xff] %v2381_v42   ;;  %v1034_v45 = vpop.f32.mrf.mxu2  ;;  %v1114_v47 = vpop.f32.mrf.mxu3 }
 0x144   : > { %vm1227_vm10 = vcmp.ge.f32.partialorder %v1034_v45, 0.0  ;;  %v1355_v46 = vmul.f32 0.2, %v1034_v45  ;;  %v877_v48 = vpop.f32.mrf.mxu0  ;;  %vm1259_vm11 = vcmp.ge.f32.partialorder %v1114_v47, 0.0  ;;  %v1387_v49 = vmul.f32 0.2, %v1114_v47  ;;  %v957_v50 = vpop.f32.mrf.mxu1 }
 0x145   : > { %v1292_v57 = vmul.f32 0.2, %v877_v48  ;;  %vm1164_vm12 = vcmp.ge.f32.partialorder %v877_v48, 0.0  ;;  %v1324_v59 = vmul.f32 0.2, %v957_v50  ;;  %vm1196_vm13 = vcmp.ge.f32.partialorder %v957_v50, 0.0 }
 0x146   : > { %v1483_v52 = vsel %vm1227_vm10, %v1034_v45, %v1355_v46  ;;  %v1515_v55 = vsel %vm1259_vm11, %v1114_v47, %v1387_v49 }
 0x147   : > { %v2461_v54 = vpack.c.bf16 %v1483_v52, %v1482_v51  ;;  %v2541_v56 = vpack.c.bf16 %v1515_v55, %v1514_v53  ;;  %v1420_v1 = vsel %vm1164_vm12, %v877_v48, %v1292_v57  ;;  %v1452_v3 = vsel %vm1196_vm13, %v957_v50, %v1324_v59 }
 0x149   : > { %2609 = vst [vmem:[%s2775_s24 + $0x150] sm:$0xff] %v2461_v54  }
 0x14a   : > { %2625 = vst [vmem:[%s2775_s24 + $0x1d0] sm:$0xff] %v2541_v56  }
 0x14b   : > { %v1037_v58 = vpop.f32.mrf.mxu2  ;;  %v1117_v60 = vpop.f32.mrf.mxu3 }
 0x14c   : > { %v879_v61 = vpop.f32.mrf.mxu0  ;;  %v959_v63 = vpop.f32.mrf.mxu1  ;;  %v1356_v7 = vmul.f32 0.2, %v1037_v58  ;;  %vm1228_vm0 = vcmp.ge.f32.partialorder %v1037_v58, 0.0  ;;  %v1388_v8 = vmul.f32 0.2, %v1117_v60  ;;  %vm1260_vm1 = vcmp.ge.f32.partialorder %v1117_v60, 0.0 }
 0x14d   : > { %vm1165_vm14 = vcmp.ge.f32.partialorder %v879_v61, 0.0  ;;  %v1293_v62 = vmul.f32 0.2, %v879_v61  ;;  %vm1197_vm15 = vcmp.ge.f32.partialorder %v959_v63, 0.0  ;;  %v1325_v0 = vmul.f32 0.2, %v959_v63 }
 0x14e   : > { %v1484_v15 = vsel %vm1228_vm0, %v1037_v58, %v1356_v7  ;;  %v1516_v17 = vsel %vm1260_vm1, %v1117_v60, %v1388_v8 }
 0x14f   : > { %v1421_v2 = vsel %vm1165_vm14, %v879_v61, %v1293_v62  ;;  %v1453_v5 = vsel %vm1197_vm15, %v959_v63, %v1325_v0 }
 0x150   : > { %v2306_v4 = vpack.c.bf16 %v1421_v2, %v1420_v1  ;;  %v2386_v6 = vpack.c.bf16 %v1453_v5, %v1452_v3 }
 0x152   : > { %2578 = vst [vmem:[%s2775_s24 + $0x58] sm:$0xff] %v2306_v4  }
 0x153   : > { %2594 = vst [vmem:[%s2775_s24 + $0xd8] sm:$0xff] %v2386_v6   ;;  %v1039_v9 = vpop.f32.mrf.mxu2  ;;  %v1119_v11 = vpop.f32.mrf.mxu3 }
 0x154   : > { %vm1229_vm2 = vcmp.ge.f32.partialorder %v1039_v9, 0.0  ;;  %v1357_v10 = vmul.f32 0.2, %v1039_v9  ;;  %v882_v12 = vpop.f32.mrf.mxu0  ;;  %vm1261_vm3 = vcmp.ge.f32.partialorder %v1119_v11, 0.0  ;;  %v1389_v13 = vmul.f32 0.2, %v1119_v11  ;;  %v962_v14 = vpop.f32.mrf.mxu1 }
 0x155   : > { %v1294_v21 = vmul.f32 0.2, %v882_v12  ;;  %vm1166_vm4 = vcmp.ge.f32.partialorder %v882_v12, 0.0  ;;  %v1326_v23 = vmul.f32 0.2, %v962_v14  ;;  %vm1198_vm5 = vcmp.ge.f32.partialorder %v962_v14, 0.0 }
 0x156   : > { %v1485_v16 = vsel %vm1229_vm2, %v1039_v9, %v1357_v10  ;;  %v1517_v19 = vsel %vm1261_vm3, %v1119_v11, %v1389_v13 }
 0x157   : > { %v2466_v18 = vpack.c.bf16 %v1485_v16, %v1484_v15  ;;  %v2546_v20 = vpack.c.bf16 %v1517_v19, %v1516_v17  ;;  %v1422_v29 = vsel %vm1166_vm4, %v882_v12, %v1294_v21  ;;  %v1454_v31 = vsel %vm1198_vm5, %v962_v14, %v1326_v23 }
 0x159   : > { %2610 = vst [vmem:[%s2775_s24 + $0x158] sm:$0xff] %v2466_v18  }
 0x15a   : > { %2626 = vst [vmem:[%s2775_s24 + $0x1d8] sm:$0xff] %v2546_v20  }
 0x15b   : > { %v1042_v22 = vpop.f32.mrf.mxu2  ;;  %v1122_v24 = vpop.f32.mrf.mxu3 }
 0x15c   : > { %v884_v25 = vpop.f32.mrf.mxu0  ;;  %v964_v27 = vpop.f32.mrf.mxu1  ;;  %v1358_v35 = vmul.f32 0.2, %v1042_v22  ;;  %vm1230_vm8 = vcmp.ge.f32.partialorder %v1042_v22, 0.0  ;;  %v1390_v36 = vmul.f32 0.2, %v1122_v24  ;;  %vm1262_vm9 = vcmp.ge.f32.partialorder %v1122_v24, 0.0 }
 0x15d   : > { %vm1167_vm6 = vcmp.ge.f32.partialorder %v884_v25, 0.0  ;;  %v1295_v26 = vmul.f32 0.2, %v884_v25  ;;  %vm1199_vm7 = vcmp.ge.f32.partialorder %v964_v27, 0.0  ;;  %v1327_v28 = vmul.f32 0.2, %v964_v27 }
 0x15e   : > { %v1486_v43 = vsel %vm1230_vm8, %v1042_v22, %v1358_v35  ;;  %v1518_v45 = vsel %vm1262_vm9, %v1122_v24, %v1390_v36 }
 0x15f   : > { %v1423_v30 = vsel %vm1167_vm6, %v884_v25, %v1295_v26  ;;  %v1455_v33 = vsel %vm1199_vm7, %v964_v27, %v1327_v28 }
 0x160   : > { %v2311_v32 = vpack.c.bf16 %v1423_v30, %v1422_v29  ;;  %v2391_v34 = vpack.c.bf16 %v1455_v33, %v1454_v31 }
 0x162   : > { %2579 = vst [vmem:[%s2775_s24 + $0x60] sm:$0xff] %v2311_v32  }
 0x163   : > { %2595 = vst [vmem:[%s2775_s24 + $0xe0] sm:$0xff] %v2391_v34   ;;  %v1044_v37 = vpop.f32.mrf.mxu2  ;;  %v1124_v39 = vpop.f32.mrf.mxu3 }
 0x164   : > { %vm1231_vm10 = vcmp.ge.f32.partialorder %v1044_v37, 0.0  ;;  %v1359_v38 = vmul.f32 0.2, %v1044_v37  ;;  %v887_v40 = vpop.f32.mrf.mxu0  ;;  %vm1263_vm11 = vcmp.ge.f32.partialorder %v1124_v39, 0.0  ;;  %v1391_v41 = vmul.f32 0.2, %v1124_v39  ;;  %v967_v42 = vpop.f32.mrf.mxu1 }
 0x165   : > { %v1296_v49 = vmul.f32 0.2, %v887_v40  ;;  %vm1168_vm12 = vcmp.ge.f32.partialorder %v887_v40, 0.0  ;;  %v1328_v51 = vmul.f32 0.2, %v967_v42  ;;  %vm1200_vm13 = vcmp.ge.f32.partialorder %v967_v42, 0.0 }
 0x166   : > { %v1487_v44 = vsel %vm1231_vm10, %v1044_v37, %v1359_v38  ;;  %v1519_v47 = vsel %vm1263_vm11, %v1124_v39, %v1391_v41 }
 0x167   : > { %v2471_v46 = vpack.c.bf16 %v1487_v44, %v1486_v43  ;;  %v2551_v48 = vpack.c.bf16 %v1519_v47, %v1518_v45  ;;  %v1424_v57 = vsel %vm1168_vm12, %v887_v40, %v1296_v49  ;;  %v1456_v59 = vsel %vm1200_vm13, %v967_v42, %v1328_v51 }
 0x169   : > { %2611 = vst [vmem:[%s2775_s24 + $0x160] sm:$0xff] %v2471_v46  }
 0x16a   : > { %2627 = vst [vmem:[%s2775_s24 + $0x1e0] sm:$0xff] %v2551_v48  }
 0x16b   : > { %v1047_v50 = vpop.f32.mrf.mxu2  ;;  %v1127_v52 = vpop.f32.mrf.mxu3 }
 0x16c   : > { %v889_v53 = vpop.f32.mrf.mxu0  ;;  %v969_v55 = vpop.f32.mrf.mxu1  ;;  %v1360_v63 = vmul.f32 0.2, %v1047_v50  ;;  %vm1232_vm0 = vcmp.ge.f32.partialorder %v1047_v50, 0.0  ;;  %v1392_v0 = vmul.f32 0.2, %v1127_v52  ;;  %vm1264_vm1 = vcmp.ge.f32.partialorder %v1127_v52, 0.0 }
 0x16d   : > { %vm1169_vm14 = vcmp.ge.f32.partialorder %v889_v53, 0.0  ;;  %v1297_v54 = vmul.f32 0.2, %v889_v53  ;;  %vm1201_vm15 = vcmp.ge.f32.partialorder %v969_v55, 0.0  ;;  %v1329_v56 = vmul.f32 0.2, %v969_v55 }
 0x16e   : > { %v1488_v7 = vsel %vm1232_vm0, %v1047_v50, %v1360_v63  ;;  %v1520_v9 = vsel %vm1264_vm1, %v1127_v52, %v1392_v0 }
 0x16f   : > { %v1425_v58 = vsel %vm1169_vm14, %v889_v53, %v1297_v54  ;;  %v1457_v61 = vsel %vm1201_vm15, %v969_v55, %v1329_v56 }
 0x170   : > { %v2316_v60 = vpack.c.bf16 %v1425_v58, %v1424_v57  ;;  %v2396_v62 = vpack.c.bf16 %v1457_v61, %v1456_v59 }
 0x172   : > { %2580 = vst [vmem:[%s2775_s24 + $0x68] sm:$0xff] %v2316_v60  }
 0x173   : > { %2596 = vst [vmem:[%s2775_s24 + $0xe8] sm:$0xff] %v2396_v62   ;;  %v1049_v1 = vpop.f32.mrf.mxu2  ;;  %v1129_v3 = vpop.f32.mrf.mxu3 }
 0x174   : > { %vm1233_vm2 = vcmp.ge.f32.partialorder %v1049_v1, 0.0  ;;  %v1361_v2 = vmul.f32 0.2, %v1049_v1  ;;  %v892_v4 = vpop.f32.mrf.mxu0  ;;  %vm1265_vm3 = vcmp.ge.f32.partialorder %v1129_v3, 0.0  ;;  %v1393_v5 = vmul.f32 0.2, %v1129_v3  ;;  %v972_v6 = vpop.f32.mrf.mxu1 }
 0x175   : > { %v1298_v13 = vmul.f32 0.2, %v892_v4  ;;  %vm1170_vm4 = vcmp.ge.f32.partialorder %v892_v4, 0.0  ;;  %v1330_v15 = vmul.f32 0.2, %v972_v6  ;;  %vm1202_vm5 = vcmp.ge.f32.partialorder %v972_v6, 0.0 }
 0x176   : > { %v1489_v8 = vsel %vm1233_vm2, %v1049_v1, %v1361_v2  ;;  %v1521_v11 = vsel %vm1265_vm3, %v1129_v3, %v1393_v5 }
 0x177   : > { %v2476_v10 = vpack.c.bf16 %v1489_v8, %v1488_v7  ;;  %v2556_v12 = vpack.c.bf16 %v1521_v11, %v1520_v9  ;;  %v1426_v21 = vsel %vm1170_vm4, %v892_v4, %v1298_v13  ;;  %v1458_v23 = vsel %vm1202_vm5, %v972_v6, %v1330_v15 }
 0x179   : > { %2612 = vst [vmem:[%s2775_s24 + $0x168] sm:$0xff] %v2476_v10  }
 0x17a   : > { %2628 = vst [vmem:[%s2775_s24 + $0x1e8] sm:$0xff] %v2556_v12  }
 0x17b   : > { %v1052_v14 = vpop.f32.mrf.mxu2  ;;  %v1132_v16 = vpop.f32.mrf.mxu3 }
 0x17c   : > { %v894_v17 = vpop.f32.mrf.mxu0  ;;  %v974_v19 = vpop.f32.mrf.mxu1  ;;  %v1362_v27 = vmul.f32 0.2, %v1052_v14  ;;  %vm1234_vm8 = vcmp.ge.f32.partialorder %v1052_v14, 0.0  ;;  %v1394_v28 = vmul.f32 0.2, %v1132_v16  ;;  %vm1266_vm9 = vcmp.ge.f32.partialorder %v1132_v16, 0.0 }
 0x17d   : > { %vm1171_vm6 = vcmp.ge.f32.partialorder %v894_v17, 0.0  ;;  %v1299_v18 = vmul.f32 0.2, %v894_v17  ;;  %vm1203_vm7 = vcmp.ge.f32.partialorder %v974_v19, 0.0  ;;  %v1331_v20 = vmul.f32 0.2, %v974_v19 }
 0x17e   : > { %v1490_v35 = vsel %vm1234_vm8, %v1052_v14, %v1362_v27  ;;  %v1522_v37 = vsel %vm1266_vm9, %v1132_v16, %v1394_v28 }
 0x17f   : > { %v1427_v22 = vsel %vm1171_vm6, %v894_v17, %v1299_v18  ;;  %v1459_v25 = vsel %vm1203_vm7, %v974_v19, %v1331_v20 }
 0x180   : > { %v2321_v24 = vpack.c.bf16 %v1427_v22, %v1426_v21  ;;  %v2401_v26 = vpack.c.bf16 %v1459_v25, %v1458_v23 }
 0x182   : > { %2581 = vst [vmem:[%s2775_s24 + $0x70] sm:$0xff] %v2321_v24  }
 0x183   : > { %2597 = vst [vmem:[%s2775_s24 + $0xf0] sm:$0xff] %v2401_v26   ;;  %v1054_v29 = vpop.f32.mrf.mxu2  ;;  %v1134_v31 = vpop.f32.mrf.mxu3 }
 0x184   : > { %vm1235_vm10 = vcmp.ge.f32.partialorder %v1054_v29, 0.0  ;;  %v1363_v30 = vmul.f32 0.2, %v1054_v29  ;;  %v897_v32 = vpop.f32.mrf.mxu0  ;;  %vm1267_vm11 = vcmp.ge.f32.partialorder %v1134_v31, 0.0  ;;  %v1395_v33 = vmul.f32 0.2, %v1134_v31  ;;  %v977_v34 = vpop.f32.mrf.mxu1 }
 0x185   : > { %v1300_v41 = vmul.f32 0.2, %v897_v32  ;;  %vm1172_vm12 = vcmp.ge.f32.partialorder %v897_v32, 0.0  ;;  %v1332_v43 = vmul.f32 0.2, %v977_v34  ;;  %vm1204_vm13 = vcmp.ge.f32.partialorder %v977_v34, 0.0 }
 0x186   : > { %v1491_v36 = vsel %vm1235_vm10, %v1054_v29, %v1363_v30  ;;  %v1523_v39 = vsel %vm1267_vm11, %v1134_v31, %v1395_v33 }
 0x187   : > { %v2481_v38 = vpack.c.bf16 %v1491_v36, %v1490_v35  ;;  %v2561_v40 = vpack.c.bf16 %v1523_v39, %v1522_v37  ;;  %v1428_v49 = vsel %vm1172_vm12, %v897_v32, %v1300_v41  ;;  %v1460_v51 = vsel %vm1204_vm13, %v977_v34, %v1332_v43 }
 0x189   : > { %2613 = vst [vmem:[%s2775_s24 + $0x170] sm:$0xff] %v2481_v38  }
 0x18a   : > { %2629 = vst [vmem:[%s2775_s24 + $0x1f0] sm:$0xff] %v2561_v40  }
 0x18b   : > { %v1057_v42 = vpop.f32.mrf.mxu2  ;;  %v1137_v44 = vpop.f32.mrf.mxu3 }
 0x18c   : > { %v899_v45 = vpop.f32.mrf.mxu0  ;;  %v979_v47 = vpop.f32.mrf.mxu1  ;;  %v1364_v55 = vmul.f32 0.2, %v1057_v42  ;;  %vm1236_vm0 = vcmp.ge.f32.partialorder %v1057_v42, 0.0  ;;  %v1396_v56 = vmul.f32 0.2, %v1137_v44  ;;  %vm1268_vm1 = vcmp.ge.f32.partialorder %v1137_v44, 0.0 }
 0x18d   : > { %vm1173_vm14 = vcmp.ge.f32.partialorder %v899_v45, 0.0  ;;  %v1301_v46 = vmul.f32 0.2, %v899_v45  ;;  %vm1205_vm15 = vcmp.ge.f32.partialorder %v979_v47, 0.0  ;;  %v1333_v48 = vmul.f32 0.2, %v979_v47 }
 0x18e   : > { %v1492_v61 = vsel %vm1236_vm0, %v1057_v42, %v1364_v55  ;;  %v1524_v63 = vsel %vm1268_vm1, %v1137_v44, %v1396_v56 }
 0x18f   : > { %v1429_v50 = vsel %vm1173_vm14, %v899_v45, %v1301_v46  ;;  %v1461_v53 = vsel %vm1205_vm15, %v979_v47, %v1333_v48 }
 0x190   : > { %v2326_v52 = vpack.c.bf16 %v1429_v50, %v1428_v49  ;;  %v2406_v54 = vpack.c.bf16 %v1461_v53, %v1460_v51 }
 0x192   : > { %2582 = vst [vmem:[%s2775_s24 + $0x78] sm:$0xff] %v2326_v52  }
 0x193   : > { %2598 = vst [vmem:[%s2775_s24 + $0xf8] sm:$0xff] %v2406_v54   ;;  %v1059_v57 = vpop.f32.mrf.mxu2  ;;  %v1139_v59 = vpop.f32.mrf.mxu3 }
 0x194   : > { %vm1237_vm2 = vcmp.ge.f32.partialorder %v1059_v57, 0.0  ;;  %v1365_v58 = vmul.f32 0.2, %v1059_v57  ;;  %vm1269_vm3 = vcmp.ge.f32.partialorder %v1139_v59, 0.0  ;;  %v1397_v60 = vmul.f32 0.2, %v1139_v59 }
 0x196   : > { %v1493_v62 = vsel %vm1237_vm2, %v1059_v57, %v1365_v58  ;;  %v1525_v1 = vsel %vm1269_vm3, %v1139_v59, %v1397_v60 }
 0x197   : > { %v2486_v0 = vpack.c.bf16 %v1493_v62, %v1492_v61  ;;  %v2566_v2 = vpack.c.bf16 %v1525_v1, %v1524_v63 }
 0x199   : > { %2614 = vst [vmem:[%s2775_s24 + $0x178] sm:$0xff] %v2486_v0  }
 0x19a   : > { %2630 = vst [vmem:[%s2775_s24 + $0x1f8] sm:$0xff] %v2566_v2  }
 0x19b PF: > { %s12_s9 = sadd.s32 1, %s2654_s9  }
 0x19c   : > { %p9_p4 = scmp.ge.s32.totalorder %s12_s9, 4  }
 0x19e   :  { %11 = sbr.rel (!%p9_p4) target bundleno = 1 (0x1), region = 58 }

// kernel: discriminator_forward.9
= control target key start
LH: loop header
LB: loop body
LE: loop exit
PB: predicated region body
PF: predicated region fallthrough
CT: control target
= control target key end

     0   :  { %s1813_s1 = inlined_call_operand.vmem [shape: bf16[128,128], index: 1, kind: input, shape index: {}]   ;;  %s1814_s0 = inlined_call_operand.vmem [shape: bf16[512,128], index: 0, kind: input, shape index: {}]   ;;  %s1815_s2 = inlined_call_operand.vmem [shape: bf16[512,128], index: 2, kind: output, shape index: {0}]   ;;  %s1816_s3 = inlined_call_operand.vmem [shape: f32[8,128], index: 3, kind: output, shape index: {1}]  }
   0x1   :  { %v1050_v0 = vld [vmem:[%s1813_s1 + $0x38] sm:$0xff]  ;;  %v1049_v1 = vld [vmem:[%s1813_s1 + $0x30] sm:$0xff]  ;;  %v1048_v2 = vld [vmem:[%s1813_s1 + $0x28] sm:$0xff] }
   0x2   :  { %338 = vmatpush.bf16.msra.mxu0 %v1050_v0  ;;  %1242 = vmatpush.bf16.msra.mxu1 %v1050_v0  ;;  %v1047_v3 = vld [vmem:[%s1813_s1 + $0x20] sm:$0xff]  ;;  %v1046_v4 = vld [vmem:[%s1813_s1 + $0x18] sm:$0xff]  ;;  %v1045_v5 = vld [vmem:[%s1813_s1 + $0x10] sm:$0xff] }
   0x3   :  { %1243 = vmatpush.bf16.msra.mxu2 %v1050_v0  ;;  %1244 = vmatpush.bf16.msra.mxu3 %v1050_v0  ;;  %v1044_v6 = vld [vmem:[%s1813_s1 + $0x8] sm:$0xff]  ;;  %v1043_v7 = vld [vmem:[%s1813_s1] sm:$0xff]  ;;  %v1013_v13 = vld [vmem:[%s1814_s0 + $0x10] sm:$0xff] }
   0x4   :  { %v1011_v8 = vld [vmem:[%s1814_s0] sm:$0xff]  ;;  %v1012_v10 = vld [vmem:[%s1814_s0 + $0x8] sm:$0xff]  ;;  %v1021_v14 = vld [vmem:[%s1814_s0 + $0x50] sm:$0xff] }
   0x5   :  { %v1019_v9 = vld [vmem:[%s1814_s0 + $0x40] sm:$0xff]  ;;  %v1020_v11 = vld [vmem:[%s1814_s0 + $0x48] sm:$0xff]  ;;  %v1014_v16 = vld [vmem:[%s1814_s0 + $0x18] sm:$0xff] }
   0x6   :  { %339 = vmatpush.bf16.msra.mxu0 %v1049_v1  ;;  %1245 = vmatpush.bf16.msra.mxu1 %v1049_v1  ;;  %v1027_v12 = vld [vmem:[%s1814_s0 + $0x80] sm:$0xff]  ;;  %v1028_v15 = vld [vmem:[%s1814_s0 + $0x88] sm:$0xff]  ;;  %v1022_v17 = vld [vmem:[%s1814_s0 + $0x58] sm:$0xff] }
   0x7   :  { %1246 = vmatpush.bf16.msra.mxu2 %v1049_v1  ;;  %1247 = vmatpush.bf16.msra.mxu3 %v1049_v1  ;;  %v1029_v18 = vld [vmem:[%s1814_s0 + $0x90] sm:$0xff]  ;;  %v1035_v19 = vld [vmem:[%s1814_s0 + $0xc0] sm:$0xff]  ;;  %v1030_v22 = vld [vmem:[%s1814_s0 + $0x98] sm:$0xff] }
   0x8   :  { %v1015_v20 = vld [vmem:[%s1814_s0 + $0x20] sm:$0xff]  ;;  %v1036_v23 = vld [vmem:[%s1814_s0 + $0xc8] sm:$0xff]  ;;  %v1037_v27 = vld [vmem:[%s1814_s0 + $0xd0] sm:$0xff] }
   0x9   :  { %v1023_v21 = vld [vmem:[%s1814_s0 + $0x60] sm:$0xff]  ;;  %v1016_v24 = vld [vmem:[%s1814_s0 + $0x28] sm:$0xff]  ;;  %v1017_v28 = vld [vmem:[%s1814_s0 + $0x30] sm:$0xff] }
   0xa   :  { %340 = vmatpush.bf16.msra.mxu0 %v1048_v2  ;;  %1248 = vmatpush.bf16.msra.mxu1 %v1048_v2  ;;  %v1024_v25 = vld [vmem:[%s1814_s0 + $0x68] sm:$0xff]  ;;  %v1031_v26 = vld [vmem:[%s1814_s0 + $0xa0] sm:$0xff]  ;;  %v1025_v29 = vld [vmem:[%s1814_s0 + $0x70] sm:$0xff] }
   0xb   :  { %1249 = vmatpush.bf16.msra.mxu2 %v1048_v2  ;;  %1250 = vmatpush.bf16.msra.mxu3 %v1048_v2  ;;  %v1032_v30 = vld [vmem:[%s1814_s0 + $0xa8] sm:$0xff]  ;;  %v1038_v31 = vld [vmem:[%s1814_s0 + $0xd8] sm:$0xff]  ;;  %v1033_v34 = vld [vmem:[%s1814_s0 + $0xb0] sm:$0xff] }
   0xc   :  { %v1018_v32 = vld [vmem:[%s1814_s0 + $0x38] sm:$0xff]  ;;  %v1039_v35 = vld [vmem:[%s1814_s0 + $0xe0] sm:$0xff]  ;;  %v1040_v39 = vld [vmem:[%s1814_s0 + $0xe8] sm:$0xff] }
   0xd   :  { %v1026_v33 = vld [vmem:[%s1814_s0 + $0x78] sm:$0xff]  ;;  %v1041_v53 = vld [vmem:[%s1814_s0 + $0xf0] sm:$0xff] }
   0xe   :  { %341 = vmatpush.bf16.msra.mxu0 %v1047_v3  ;;  %1251 = vmatpush.bf16.msra.mxu1 %v1047_v3  ;;  %v1034_v38 = vld [vmem:[%s1814_s0 + $0xb8] sm:$0xff] }
   0xf   :  { %1252 = vmatpush.bf16.msra.mxu2 %v1047_v3  ;;  %1253 = vmatpush.bf16.msra.mxu3 %v1047_v3 }
  0x12   :  { %342 = vmatpush.bf16.msra.mxu0 %v1046_v4  ;;  %1254 = vmatpush.bf16.msra.mxu1 %v1046_v4 }
  0x13   :  { %1255 = vmatpush.bf16.msra.mxu2 %v1046_v4  ;;  %1256 = vmatpush.bf16.msra.mxu3 %v1046_v4 }
  0x16   :  { %343 = vmatpush.bf16.msra.mxu0 %v1045_v5  ;;  %1257 = vmatpush.bf16.msra.mxu1 %v1045_v5 }
  0x17   :  { %1258 = vmatpush.bf16.msra.mxu2 %v1045_v5  ;;  %1259 = vmatpush.bf16.msra.mxu3 %v1045_v5  ;;  %v1042_v5 = vld [vmem:[%s1814_s0 + $0xf8] sm:$0xff] }
  0x1a   :  { %344 = vmatpush.bf16.msra.mxu0 %v1044_v6  ;;  %1260 = vmatpush.bf16.msra.mxu1 %v1044_v6 }
  0x1b   :  { %1261 = vmatpush.bf16.msra.mxu2 %v1044_v6  ;;  %1262 = vmatpush.bf16.msra.mxu3 %v1044_v6 }
  0x1e   :  { %345 = vmatpush.bf16.msra.mxu0 %v1043_v7  ;;  %1263 = vmatpush.bf16.msra.mxu1 %v1043_v7 }
  0x1f   :  { %1264 = vmatpush.bf16.msra.mxu2 %v1043_v7  ;;  %1265 = vmatpush.bf16.msra.mxu3 %v1043_v7 }
  0x21   :  { %346 = vmatmul.bf16.vlgmr.msra.gmra.mxu0 %v1011_v8  ;;  %386 = vmatmul.bf16.vlgmr.msra.gmra.mxu1 %v1019_v9 }
  0x22   :  { %426 = vmatmul.bf16.vlgmr.msra.gmra.mxu2 %v1027_v12  ;;  %466 = vmatmul.bf16.vlgmr.msra.gmra.mxu3 %v1035_v19 }
  0x31   :  { %351 = vmatmul.bf16.gmra.mxu0 %v1012_v10  ;;  %391 = vmatmul.bf16.gmra.mxu1 %v1020_v11 }
  0x32   :  { %431 = vmatmul.bf16.gmra.mxu2 %v1028_v15  ;;  %471 = vmatmul.bf16.gmra.mxu3 %v1036_v23 }
  0x41   :  { %356 = vmatmul.bf16.gmra.mxu0 %v1013_v13  ;;  %396 = vmatmul.bf16.gmra.mxu1 %v1021_v14 }
  0x42   :  { %436 = vmatmul.bf16.gmra.mxu2 %v1029_v18  ;;  %476 = vmatmul.bf16.gmra.mxu3 %v1037_v27 }
  0x51   :  { %361 = vmatmul.bf16.gmra.mxu0 %v1014_v16  ;;  %401 = vmatmul.bf16.gmra.mxu1 %v1022_v17 }
  0x52   :  { %441 = vmatmul.bf16.gmra.mxu2 %v1030_v22  ;;  %481 = vmatmul.bf16.gmra.mxu3 %v1038_v31 }
  0x61   :  { %366 = vmatmul.bf16.gmra.mxu0 %v1015_v20  ;;  %406 = vmatmul.bf16.gmra.mxu1 %v1023_v21 }
  0x62   :  { %446 = vmatmul.bf16.gmra.mxu2 %v1031_v26  ;;  %486 = vmatmul.bf16.gmra.mxu3 %v1039_v35 }
  0x71   :  { %371 = vmatmul.bf16.gmra.mxu0 %v1016_v24  ;;  %411 = vmatmul.bf16.gmra.mxu1 %v1024_v25 }
  0x72   :  { %451 = vmatmul.bf16.gmra.mxu2 %v1032_v30  ;;  %491 = vmatmul.bf16.gmra.mxu3 %v1040_v39 }
  0x81   :  { %376 = vmatmul.bf16.gmra.mxu0 %v1017_v28  ;;  %416 = vmatmul.bf16.gmra.mxu1 %v1025_v29 }
  0x82   :  { %456 = vmatmul.bf16.gmra.mxu2 %v1033_v34  ;;  %496 = vmatmul.bf16.gmra.mxu3 %v1041_v53 }
  0x91   :  { %381 = vmatmul.bf16.gmra.mxu0 %v1018_v32  ;;  %421 = vmatmul.bf16.gmra.mxu1 %v1026_v33 }
  0x92   :  { %461 = vmatmul.bf16.gmra.mxu2 %v1034_v38  ;;  %501 = vmatmul.bf16.gmra.mxu3 %v1042_v5 }
  0x9e   :  { %v347_v36 = vpop.f32.mrf.mxu0  ;;  %v1396_v37 = vpop.f32.mrf.mxu1 }
  0x9f   :  { %v708_v40 = vmul.f32 %v347_v36, %v347_v36 }
  0xa5   :  { %v1423_v60 = vpop.f32.mrf.mxu2  ;;  %v1474_v20 = vpop.f32.mrf.mxu3 }
  0xa6   :  { %v349_v41 = vpop.f32.mrf.mxu0  ;;  %v1404_v42 = vpop.f32.mrf.mxu1 }
  0xa7   :  { %v1054_v43 = vpack.c.bf16 %v349_v41, %v347_v36  ;;  %v636_v44 = vadd.f32 %v349_v41, %v347_v36  ;;  %v709_v45 = vmul.f32 %v349_v41, %v349_v41  ;;  %v1094_v46 = vpack.c.bf16 %v1404_v42, %v1396_v37 }
  0xa9   :  { %1055 = vst [vmem:[%s1815_s2] sm:$0xff] %v1054_v43   ;;  %v772_v47 = vadd.f32 %v709_v45, %v708_v40 }
  0xaa   :  { %1218 = vst [vmem:[%s1815_s2 + $0x40] sm:$0xff] %v1094_v46  }
  0xad   :  { %v1435_v2 = vpop.f32.mrf.mxu2  ;;  %v1486_v24 = vpop.f32.mrf.mxu3 }
  0xae   :  { %v352_v48 = vpop.f32.mrf.mxu0  ;;  %v1414_v49 = vpop.f32.mrf.mxu1  ;;  %v1134_v3 = vpack.c.bf16 %v1435_v2, %v1423_v60  ;;  %v1174_v26 = vpack.c.bf16 %v1486_v24, %v1474_v20 }
  0xaf   :  { %v637_v50 = vadd.f32 %v636_v44, %v352_v48  ;;  %v710_v51 = vmul.f32 %v352_v48, %v352_v48 }
  0xb0   :  { %1226 = vst [vmem:[%s1815_s2 + $0x80] sm:$0xff] %v1134_v3  }
  0xb1   :  { %v773_v52 = vadd.f32 %v772_v47, %v710_v51  ;;  %1234 = vst [vmem:[%s1815_s2 + $0xc0] sm:$0xff] %v1174_v26  }
  0xb5   :  { %v1451_v10 = vpop.f32.mrf.mxu2  ;;  %v1504_v32 = vpop.f32.mrf.mxu3 }
  0xb6   :  { %v354_v54 = vpop.f32.mrf.mxu0  ;;  %v1419_v55 = vpop.f32.mrf.mxu1 }
  0xb7   :  { %v1059_v56 = vpack.c.bf16 %v354_v54, %v352_v48  ;;  %v638_v57 = vadd.f32 %v637_v50, %v354_v54  ;;  %v711_v58 = vmul.f32 %v354_v54, %v354_v54  ;;  %v1099_v59 = vpack.c.bf16 %v1419_v55, %v1414_v49 }
  0xb9   :  { %1211 = vst [vmem:[%s1815_s2 + $0x8] sm:$0xff] %v1059_v56   ;;  %v774_v61 = vadd.f32 %v773_v52, %v711_v58 }
  0xba   :  { %1219 = vst [vmem:[%s1815_s2 + $0x48] sm:$0xff] %v1099_v59  }
  0xbd   :  { %v1461_v13 = vpop.f32.mrf.mxu2  ;;  %v1516_v36 = vpop.f32.mrf.mxu3 }
  0xbe   :  { %v357_v62 = vpop.f32.mrf.mxu0  ;;  %v1431_v63 = vpop.f32.mrf.mxu1  ;;  %v1139_v14 = vpack.c.bf16 %v1461_v13, %v1451_v10  ;;  %v1179_v39 = vpack.c.bf16 %v1516_v36, %v1504_v32 }
  0xbf   :  { %v1433_v0 = vadd.f32 %v638_v57, %v357_v62  ;;  %v712_v1 = vmul.f32 %v357_v62, %v357_v62 }
  0xc0   :  { %1227 = vst [vmem:[%s1815_s2 + $0x88] sm:$0xff] %v1139_v14  }
  0xc1   :  { %v1439_v4 = vadd.f32 %v774_v61, %v712_v1  ;;  %1235 = vst [vmem:[%s1815_s2 + $0xc8] sm:$0xff] %v1179_v39  }
  0xc5   :  { %v1472_v19 = vpop.f32.mrf.mxu2  ;;  %v1534_v46 = vpop.f32.mrf.mxu3 }
  0xc6   :  { %v359_v6 = vpop.f32.mrf.mxu0  ;;  %v1447_v7 = vpop.f32.mrf.mxu1 }
  0xc7   :  { %v1064_v8 = vpack.c.bf16 %v359_v6, %v357_v62  ;;  %v1104_v9 = vpack.c.bf16 %v1447_v7, %v1431_v63  ;;  %v713_v52 = vmul.f32 %v359_v6, %v359_v6  ;;  %v640_v57 = vadd.f32 %v1433_v0, %v359_v6 }
  0xc9   :  { %1212 = vst [vmem:[%s1815_s2 + $0x10] sm:$0xff] %v1064_v8   ;;  %v776_v58 = vadd.f32 %v1439_v4, %v713_v52 }
  0xca   :  { %1220 = vst [vmem:[%s1815_s2 + $0x50] sm:$0xff] %v1104_v9  }
  0xcd   :  { %v1484_v23 = vpop.f32.mrf.mxu2  ;;  %v1546_v51 = vpop.f32.mrf.mxu3 }
  0xce   :  { %v362_v11 = vpop.f32.mrf.mxu0  ;;  %v1459_v12 = vpop.f32.mrf.mxu1  ;;  %v1144_v25 = vpack.c.bf16 %v1484_v23, %v1472_v19  ;;  %v1184_v54 = vpack.c.bf16 %v1546_v51, %v1534_v46 }
  0xcf   :  { %v714_v56 = vmul.f32 %v362_v11, %v362_v11  ;;  %v641_v61 = vadd.f32 %v640_v57, %v362_v11 }
  0xd0   :  { %1228 = vst [vmem:[%s1815_s2 + $0x90] sm:$0xff] %v1144_v25  }
  0xd1   :  { %1236 = vst [vmem:[%s1815_s2 + $0xd0] sm:$0xff] %v1184_v54   ;;  %v777_v62 = vadd.f32 %v776_v58, %v714_v56 }
  0xd5   :  { %v1502_v31 = vpop.f32.mrf.mxu2  ;;  %v1566_v0 = vpop.f32.mrf.mxu3 }
  0xd6   :  { %v364_v15 = vpop.f32.mrf.mxu0  ;;  %v1468_v16 = vpop.f32.mrf.mxu1 }
  0xd7   :  { %v1069_v17 = vpack.c.bf16 %v364_v15, %v362_v11  ;;  %v1109_v18 = vpack.c.bf16 %v1468_v16, %v1459_v12  ;;  %v715_v59 = vmul.f32 %v364_v15, %v364_v15  ;;  %v642_v8 = vadd.f32 %v641_v61, %v364_v15 }
  0xd9   :  { %1213 = vst [vmem:[%s1815_s2 + $0x18] sm:$0xff] %v1069_v17   ;;  %v778_v6 = vadd.f32 %v777_v62, %v715_v59 }
  0xda   :  { %1221 = vst [vmem:[%s1815_s2 + $0x58] sm:$0xff] %v1109_v18  }
  0xdd   :  { %v1514_v35 = vpop.f32.mrf.mxu2 }
  0xde   :  { %v367_v21 = vpop.f32.mrf.mxu0  ;;  %v1482_v22 = vpop.f32.mrf.mxu1  ;;  %v1149_v38 = vpack.c.bf16 %v1514_v35, %v1502_v31 }
  0xdf   :  { %v716_v1 = vmul.f32 %v367_v21, %v367_v21  ;;  %v643_v25 = vadd.f32 %v642_v8, %v367_v21 }
  0xe0   :  { %1229 = vst [vmem:[%s1815_s2 + $0x98] sm:$0xff] %v1149_v38  }
  0xe1   :  { %v779_v4 = vadd.f32 %v778_v6, %v716_v1 }
  0xe5   :  { %v1532_v45 = vpop.f32.mrf.mxu2 }
  0xe6   :  { %v369_v27 = vpop.f32.mrf.mxu0  ;;  %v1498_v28 = vpop.f32.mrf.mxu1 }
  0xe7   :  { %v1074_v29 = vpack.c.bf16 %v369_v27, %v367_v21  ;;  %v1114_v30 = vpack.c.bf16 %v1498_v28, %v1482_v22  ;;  %v717_v18 = vmul.f32 %v369_v27, %v369_v27  ;;  %v644_v15 = vadd.f32 %v643_v25, %v369_v27 }
  0xe9   :  { %1214 = vst [vmem:[%s1815_s2 + $0x20] sm:$0xff] %v1074_v29   ;;  %v780_v26 = vadd.f32 %v779_v4, %v717_v18 }
  0xea   :  { %1222 = vst [vmem:[%s1815_s2 + $0x60] sm:$0xff] %v1114_v30  }
  0xed   :  { %v1544_v50 = vpop.f32.mrf.mxu2 }
  0xee   :  { %v372_v33 = vpop.f32.mrf.mxu0  ;;  %v1512_v34 = vpop.f32.mrf.mxu1  ;;  %v1154_v53 = vpack.c.bf16 %v1544_v50, %v1532_v45 }
  0xef   :  { %v718_v11 = vmul.f32 %v372_v33, %v372_v33  ;;  %v645_v30 = vadd.f32 %v644_v15, %v372_v33 }
  0xf0   :  { %1230 = vst [vmem:[%s1815_s2 + $0xa0] sm:$0xff] %v1154_v53   ;;  %v1578_v53 = vpop.f32.mrf.mxu3 }
  0xf1   :  { %v781_v38 = vadd.f32 %v780_v26, %v718_v11  ;;  %v1189_v27 = vpack.c.bf16 %v1578_v53, %v1566_v0  ;;  %v725_v26 = vmul.f32 %v1404_v42, %v1404_v42 }
  0xf3   :  { %1237 = vst [vmem:[%s1815_s2 + $0xd8] sm:$0xff] %v1189_v27  }
  0xf5   :  { %v1564_v17 = vpop.f32.mrf.mxu2 }
  0xf6   :  { %v374_v40 = vpop.f32.mrf.mxu0  ;;  %v1528_v41 = vpop.f32.mrf.mxu1 }
  0xf7   :  { %v1079_v43 = vpack.c.bf16 %v374_v40, %v372_v33  ;;  %v1119_v44 = vpack.c.bf16 %v1528_v41, %v1512_v34  ;;  %v719_v29 = vmul.f32 %v374_v40, %v374_v40  ;;  %v646_v21 = vadd.f32 %v645_v30, %v374_v40 }
  0xf8   :  { %v1596_v4 = vpop.f32.mrf.mxu3 }
  0xf9   :  { %1215 = vst [vmem:[%s1815_s2 + $0x28] sm:$0xff] %v1079_v43   ;;  %v782_v54 = vadd.f32 %v781_v38, %v719_v29  ;;  %v726_v38 = vmul.f32 %v1414_v49, %v1414_v49 }
  0xfa   :  { %1223 = vst [vmem:[%s1815_s2 + $0x68] sm:$0xff] %v1119_v44  }
  0xfd   :  { %v1576_v52 = vpop.f32.mrf.mxu2 }
  0xfe   :  { %v377_v47 = vpop.f32.mrf.mxu0  ;;  %v1542_v48 = vpop.f32.mrf.mxu1  ;;  %v1159_v57 = vpack.c.bf16 %v1576_v52, %v1564_v17 }
  0xff   :  { %v720_v39 = vmul.f32 %v377_v47, %v377_v47  ;;  %v647_v58 = vadd.f32 %v646_v21, %v377_v47 }
 0x100   :  { %1231 = vst [vmem:[%s1815_s2 + $0xa8] sm:$0xff] %v1159_v57   ;;  %v1618_v57 = vpop.f32.mrf.mxu3 }
 0x101   :  { %v783_v33 = vadd.f32 %v782_v54, %v720_v39  ;;  %v1194_v27 = vpack.c.bf16 %v1618_v57, %v1596_v4 }
 0x103   :  { %1238 = vst [vmem:[%s1815_s2 + $0xe0] sm:$0xff] %v1194_v27  }
 0x105   :  { %v1594_v25 = vpop.f32.mrf.mxu2 }
 0x106   :  { %v379_v3 = vpop.f32.mrf.mxu0  ;;  %v1560_v5 = vpop.f32.mrf.mxu1 }
 0x107   :  { %v1084_v9 = vpack.c.bf16 %v379_v3, %v377_v47  ;;  %v1124_v14 = vpack.c.bf16 %v1560_v5, %v1542_v48  ;;  %v721_v56 = vmul.f32 %v379_v3, %v379_v3  ;;  %v648_v40 = vadd.f32 %v647_v58, %v379_v3 }
 0x108   :  { %v724_v3 = vmul.f32 %v1396_v37, %v1396_v37  ;;  %v737_v27 = vmul.f32 %v1560_v5, %v1560_v5 }
 0x109   :  { %1216 = vst [vmem:[%s1815_s2 + $0x30] sm:$0xff] %v1084_v9   ;;  %v784_v61 = vadd.f32 %v783_v33, %v721_v56 }
 0x10a   :  { %1224 = vst [vmem:[%s1815_s2 + $0x70] sm:$0xff] %v1124_v14  }
 0x10d   :  { %v1616_v56 = vpop.f32.mrf.mxu2 }
 0x10e   :  { %v382_v43 = vpop.f32.mrf.mxu0  ;;  %v1574_v44 = vpop.f32.mrf.mxu1 }
 0x10f   :  { %v722_v59 = vmul.f32 %v382_v43, %v382_v43  ;;  %v649_v62 = vadd.f32 %v648_v40, %v382_v43 }
 0x111   :  { %v785_v1 = vadd.f32 %v784_v61, %v722_v59  ;;  %v730_v61 = vmul.f32 %v1459_v12, %v1459_v12 }
 0x116   :  { %v384_v8 = vpop.f32.mrf.mxu0  ;;  %v1590_v9 = vpop.f32.mrf.mxu1 }
 0x117   :  { %v1089_v14 = vpack.c.bf16 %v384_v8, %v382_v43  ;;  %v650_v6 = vadd.f32 %v649_v62, %v384_v8  ;;  %v723_v47 = vmul.f32 %v384_v8, %v384_v8  ;;  %v1129_v18 = vpack.c.bf16 %v1590_v9, %v1574_v44 }
 0x119   :  { %1217 = vst [vmem:[%s1815_s2 + $0x38] sm:$0xff] %v1089_v14   ;;  %v651_v11 = vadd.f32 %v650_v6, %v1396_v37  ;;  %v786_v15 = vadd.f32 %v785_v1, %v723_v47  ;;  %v727_v37 = vmul.f32 %v1419_v55, %v1419_v55  ;;  %v731_v1 = vmul.f32 %v1468_v16, %v1468_v16  ;;  %v1642_v6 = vpop.f32.mrf.mxu2 }
 0x11a   :  { %1225 = vst [vmem:[%s1815_s2 + $0x78] sm:$0xff] %v1129_v18   ;;  %v732_v47 = vmul.f32 %v1482_v22, %v1482_v22 }
 0x11b   :  { %v652_v29 = vadd.f32 %v651_v11, %v1404_v42  ;;  %v787_v30 = vadd.f32 %v786_v15, %v724_v3  ;;  %v1164_v42 = vpack.c.bf16 %v1616_v56, %v1594_v25  ;;  %v733_v11 = vmul.f32 %v1498_v28, %v1498_v28 }
 0x11d   :  { %v653_v39 = vadd.f32 %v652_v29, %v1414_v49  ;;  %v788_v43 = vadd.f32 %v787_v30, %v725_v26  ;;  %v728_v49 = vmul.f32 %v1431_v63, %v1431_v63  ;;  %1232 = vst [vmem:[%s1815_s2 + $0xb0] sm:$0xff] %v1164_v42   ;;  %v735_v30 = vmul.f32 %v1528_v41, %v1528_v41 }
 0x11f   :  { %v654_v21 = vadd.f32 %v653_v39, %v1419_v55  ;;  %v789_v54 = vadd.f32 %v788_v43, %v726_v38  ;;  %v729_v55 = vmul.f32 %v1447_v7, %v1447_v7 }
 0x121   :  { %v655_v58 = vadd.f32 %v654_v21, %v1431_v63  ;;  %v790_v33 = vadd.f32 %v789_v54, %v727_v37 }
 0x123   :  { %v656_v59 = vadd.f32 %v655_v58, %v1447_v7  ;;  %v791_v40 = vadd.f32 %v790_v33, %v728_v49  ;;  %v1644_v7 = vpop.f32.mrf.mxu3 }
 0x125   :  { %v792_v62 = vadd.f32 %v791_v40, %v729_v55  ;;  %v657_v63 = vadd.f32 %v656_v59, %v1459_v12  ;;  %v739_v59 = vmul.f32 %v1590_v9, %v1590_v9 }
 0x127   :  { %v658_v8 = vadd.f32 %v657_v63, %v1468_v16  ;;  %v793_v14 = vadd.f32 %v792_v62, %v730_v61  ;;  %v734_v16 = vmul.f32 %v1512_v34, %v1512_v34  ;;  %v741_v63 = vmul.f32 %v1435_v2, %v1435_v2 }
 0x129   :  { %v659_v18 = vadd.f32 %v658_v8, %v1482_v22  ;;  %v794_v3 = vadd.f32 %v793_v14, %v731_v1  ;;  %v1658_v22 = vpop.f32.mrf.mxu2  ;;  %v742_v8 = vmul.f32 %v1451_v10, %v1451_v10 }
 0x12b   :  { %v660_v12 = vadd.f32 %v659_v18, %v1498_v28  ;;  %v795_v15 = vadd.f32 %v794_v3, %v732_v47  ;;  %v1660_v43 = vpop.f32.mrf.mxu3  ;;  %v1169_v28 = vpack.c.bf16 %v1658_v22, %v1642_v6  ;;  %v743_v47 = vmul.f32 %v1461_v13, %v1461_v13 }
 0x12c   :  { %v1199_v37 = vpack.c.bf16 %v1660_v43, %v1644_v7 }
 0x12d   :  { %v661_v26 = vadd.f32 %v660_v12, %v1512_v34  ;;  %v796_v29 = vadd.f32 %v795_v15, %v733_v11  ;;  %v736_v34 = vmul.f32 %v1542_v48, %v1542_v48  ;;  %1233 = vst [vmem:[%s1815_s2 + $0xb8] sm:$0xff] %v1169_v28  }
 0x12e   :  { %1239 = vst [vmem:[%s1815_s2 + $0xe8] sm:$0xff] %v1199_v37   ;;  %v748_v37 = vmul.f32 %v1532_v45, %v1532_v45 }
 0x12f   :  { %v662_v38 = vadd.f32 %v661_v26, %v1528_v41  ;;  %v797_v39 = vadd.f32 %v796_v29, %v734_v16  ;;  %v746_v26 = vmul.f32 %v1502_v31, %v1502_v31 }
 0x131   :  { %v663_v21 = vadd.f32 %v662_v38, %v1542_v48  ;;  %v798_v54 = vadd.f32 %v797_v39, %v735_v30  ;;  %v738_v48 = vmul.f32 %v1574_v44, %v1574_v44 }
 0x133   :  { %v799_v41 = vadd.f32 %v798_v54, %v736_v34  ;;  %v664_v42 = vadd.f32 %v663_v21, %v1560_v5  ;;  %v1684_v40 = vpop.f32.mrf.mxu3  ;;  %v740_v5 = vmul.f32 %v1423_v60, %v1423_v60  ;;  %v749_v34 = vmul.f32 %v1544_v50, %v1544_v50 }
 0x135   :  { %v800_v49 = vadd.f32 %v799_v41, %v737_v27  ;;  %v665_v58 = vadd.f32 %v664_v42, %v1574_v44  ;;  %v750_v41 = vmul.f32 %v1564_v17, %v1564_v17 }
 0x137   :  { %v801_v33 = vadd.f32 %v800_v49, %v738_v48  ;;  %v666_v55 = vadd.f32 %v665_v58, %v1590_v9  ;;  %v751_v49 = vmul.f32 %v1576_v52, %v1576_v52 }
 0x139   :  { %v667_v61 = vadd.f32 %v666_v55, %v1423_v60  ;;  %v802_v62 = vadd.f32 %v801_v33, %v739_v59  ;;  %v752_v55 = vmul.f32 %v1594_v25, %v1594_v25 }
 0x13b   :  { %v668_v1 = vadd.f32 %v667_v61, %v1435_v2  ;;  %v803_v44 = vadd.f32 %v802_v62, %v740_v5  ;;  %v1698_v60 = vpop.f32.mrf.mxu3  ;;  %v744_v2 = vmul.f32 %v1472_v19, %v1472_v19  ;;  %v754_v62 = vmul.f32 %v1642_v6, %v1642_v6 }
 0x13c   :  { %v1204_v11 = vpack.c.bf16 %v1698_v60, %v1684_v40 }
 0x13d   :  { %v669_v14 = vadd.f32 %v668_v1, %v1451_v10  ;;  %v804_v9 = vadd.f32 %v803_v44, %v741_v63  ;;  %v745_v10 = vmul.f32 %v1484_v23, %v1484_v23  ;;  %v1267_v44 = vmov 0.0  }
 0x13e   :  { %1240 = vst [vmem:[%s1815_s2 + $0xf0] sm:$0xff] %v1204_v11   ;;  %v759_v11 = vmul.f32 %v1516_v36, %v1516_v36 }
 0x13f   :  { %v670_v18 = vadd.f32 %v669_v14, %v1461_v13  ;;  %v805_v3 = vadd.f32 %v804_v9, %v742_v8  ;;  %17 = vst [vmem:[%s1816_s3] sm:$0xff] %v1267_v44 }
 0x141   :  { %v671_v12 = vadd.f32 %v670_v18, %v1472_v19  ;;  %v806_v15 = vadd.f32 %v805_v3, %v743_v47  ;;  %v747_v19 = vmul.f32 %v1514_v35, %v1514_v35 }
 0x143   :  { %v672_v13 = vadd.f32 %v671_v12, %v1484_v23  ;;  %v807_v16 = vadd.f32 %v806_v15, %v744_v2  ;;  %v1717_v28 = vpop.f32.mrf.mxu3 }
 0x145   :  { %v808_v29 = vadd.f32 %v807_v16, %v745_v10  ;;  %v673_v30 = vadd.f32 %v672_v13, %v1502_v31 }
 0x147   :  { %v674_v38 = vadd.f32 %v673_v30, %v1514_v35  ;;  %v809_v39 = vadd.f32 %v808_v29, %v746_v26 }
 0x149   :  { %v675_v23 = vadd.f32 %v674_v38, %v1532_v45  ;;  %v810_v21 = vadd.f32 %v809_v39, %v747_v19 }
 0x14b   :  { %v676_v54 = vadd.f32 %v675_v23, %v1544_v50  ;;  %v811_v31 = vadd.f32 %v810_v21, %v748_v37  ;;  %v1731_v45 = vpop.f32.mrf.mxu3 }
 0x14c   :  { %v1209_v48 = vpack.c.bf16 %v1731_v45, %v1717_v28 }
 0x14d   :  { %v677_v35 = vadd.f32 %v676_v54, %v1564_v17  ;;  %v812_v42 = vadd.f32 %v811_v31, %v749_v34  ;;  %v767_v54 = vmul.f32 %v1660_v43, %v1660_v43 }
 0x14e   :  { %1241 = vst [vmem:[%s1815_s2 + $0xf8] sm:$0xff] %v1209_v48  }
 0x14f   :  { %v678_v27 = vadd.f32 %v677_v35, %v1576_v52  ;;  %v813_v58 = vadd.f32 %v812_v42, %v750_v41  ;;  %v753_v52 = vmul.f32 %v1616_v56, %v1616_v56  ;;  %v768_v35 = vmul.f32 %v1684_v40, %v1684_v40 }
 0x151   :  { %v814_v33 = vadd.f32 %v813_v58, %v751_v49  ;;  %v679_v50 = vadd.f32 %v678_v27, %v1594_v25  ;;  %v755_v25 = vmul.f32 %v1658_v22, %v1658_v22  ;;  %v769_v27 = vmul.f32 %v1698_v60, %v1698_v60 }
 0x152   :  { %v770_v58 = vmul.f32 %v1717_v28, %v1717_v28 }
 0x153   :  { %v815_v17 = vadd.f32 %v814_v33, %v752_v55  ;;  %v680_v59 = vadd.f32 %v679_v50, %v1616_v56  ;;  %v756_v56 = vmul.f32 %v1474_v20, %v1474_v20  ;;  %v771_v33 = vmul.f32 %v1731_v45, %v1731_v45 }
 0x155   :  { %v816_v5 = vadd.f32 %v815_v17, %v753_v52  ;;  %v681_v61 = vadd.f32 %v680_v59, %v1642_v6  ;;  %v757_v6 = vmul.f32 %v1486_v24, %v1486_v24 }
 0x157   :  { %v817_v63 = vadd.f32 %v816_v5, %v754_v62  ;;  %v682_v1 = vadd.f32 %v681_v61, %v1658_v22  ;;  %v758_v22 = vmul.f32 %v1504_v32, %v1504_v32 }
 0x159   :  { %v683_v8 = vadd.f32 %v682_v1, %v1474_v20  ;;  %v818_v14 = vadd.f32 %v817_v63, %v755_v25  ;;  %v760_v20 = vmul.f32 %v1534_v46, %v1534_v46 }
 0x15b   :  { %v684_v9 = vadd.f32 %v683_v8, %v1486_v24  ;;  %v819_v47 = vadd.f32 %v818_v14, %v756_v56  ;;  %v761_v24 = vmul.f32 %v1546_v51, %v1546_v51 }
 0x15d   :  { %v685_v18 = vadd.f32 %v684_v9, %v1504_v32  ;;  %v820_v3 = vadd.f32 %v819_v47, %v757_v6  ;;  %v762_v32 = vmul.f32 %v1566_v0, %v1566_v0 }
 0x15f   :  { %v686_v2 = vadd.f32 %v685_v18, %v1516_v36  ;;  %v821_v12 = vadd.f32 %v820_v3, %v758_v22  ;;  %v763_v36 = vmul.f32 %v1578_v53, %v1578_v53 }
 0x161   :  { %v687_v15 = vadd.f32 %v686_v2, %v1534_v46  ;;  %v822_v10 = vadd.f32 %v821_v12, %v759_v11  ;;  %v764_v46 = vmul.f32 %v1596_v4, %v1596_v4 }
 0x163   :  { %v688_v13 = vadd.f32 %v687_v15, %v1546_v51  ;;  %v823_v16 = vadd.f32 %v822_v10, %v760_v20  ;;  %v765_v51 = vmul.f32 %v1618_v57, %v1618_v57 }
 0x165   :  { %v824_v26 = vadd.f32 %v823_v16, %v761_v24  ;;  %v689_v29 = vadd.f32 %v688_v13, %v1566_v0  ;;  %v766_v0 = vmul.f32 %v1644_v7, %v1644_v7 }
 0x167   :  { %v690_v30 = vadd.f32 %v689_v29, %v1578_v53  ;;  %v825_v19 = vadd.f32 %v824_v26, %v762_v32 }
 0x169   :  { %v691_v38 = vadd.f32 %v690_v30, %v1596_v4  ;;  %v826_v39 = vadd.f32 %v825_v19, %v763_v36 }
 0x16b   :  { %v692_v37 = vadd.f32 %v691_v38, %v1618_v57  ;;  %v827_v23 = vadd.f32 %v826_v39, %v764_v46 }
 0x16d   :  { %v693_v21 = vadd.f32 %v692_v37, %v1644_v7  ;;  %v828_v34 = vadd.f32 %v827_v23, %v765_v51 }
 0x16f   :  { %v694_v53 = vadd.f32 %v693_v21, %v1660_v43  ;;  %v829_v31 = vadd.f32 %v828_v34, %v766_v0 }
 0x171   :  { %v830_v4 = vadd.f32 %v829_v31, %v767_v54  ;;  %v695_v41 = vadd.f32 %v694_v53, %v1684_v40 }
 0x173   :  { %v831_v57 = vadd.f32 %v830_v4, %v768_v35  ;;  %v696_v42 = vadd.f32 %v695_v41, %v1698_v60 }
 0x175   :  { %v832_v7 = vadd.f32 %v831_v57, %v769_v27  ;;  %v697_v49 = vadd.f32 %v696_v42, %v1717_v28  ;;  %v635_v28 = vld [vmem:[%s1816_s3] sm:$0x1] }
 0x177   :  { %v833_v43 = vadd.f32 %v832_v7, %v770_v58  ;;  %v698_v48 = vadd.f32 %v697_v49, %v1731_v45  ;;  %v707_v45 = vld [vmem:[%s1816_s3 + $0x1] sm:$0x1] }
 0x179   :  { %v699_v50 = vrot.slane %v698_v48, 4  ;;  %v834_v40 = vadd.f32 %v833_v43, %v771_v33 }
 0x17b   :  { %v700_v55 = vadd.f32 %v699_v50, %v698_v48  ;;  %v835_v17 = vrot.slane %v834_v40, 4 }
 0x17d   :  { %v701_v59 = vrot.slane %v700_v55, 2  ;;  %v836_v52 = vadd.f32 %v835_v17, %v834_v40 }
 0x17f   :  { %v702_v5 = vadd.f32 %v701_v59, %v700_v55  ;;  %v837_v60 = vrot.slane %v836_v52, 2 }
 0x181   :  { %v703_v61 = vrot.slane %v702_v5, 1  ;;  %v838_v62 = vadd.f32 %v837_v60, %v836_v52 }
 0x183   :  { %v704_v63 = vadd.f32 %v703_v61, %v702_v5  ;;  %v839_v1 = vrot.slane %v838_v62, 1 }
 0x185   :  { %v705_v25 = vadd.f32 %v704_v63, %v635_v28  ;;  %v840_v44 = vadd.f32 %v839_v1, %v838_v62 }
 0x187   :  { %706 = vst [vmem:[%s1816_s3] sm:$0x1] %v705_v25  ;;  %v841_v56 = vadd.f32 %v840_v44, %v707_v45 }
 0x189   :  { %842 = vst [vmem:[%s1816_s3 + $0x1] sm:$0x1] %v841_v56 }

// kernel: discriminator_forward.10
= control target key start
LH: loop header
LB: loop body
LE: loop exit
PB: predicated region body
PF: predicated region fallthrough
CT: control target
= control target key end

     0   :  { %s1401_s1 = inlined_call_operand.vmem [shape: f32[8,128], index: 1, kind: input, shape index: {}]   ;;  %s1402_s0 = inlined_call_operand.vmem [shape: bf16[512,128], index: 0, kind: input, shape index: {}]   ;;  %s1403_s2 = inlined_call_operand.vmem [shape: f32[1,128], index: 2, kind: input, shape index: {}]   ;;  %s1404_s3 = inlined_call_operand.vmem [shape: f32[1,128], index: 3, kind: input, shape index: {}]   ;;  %s1405_s4 = inlined_call_operand.vmem [shape: bf16[512,128], index: 4, kind: output, shape index: {}]  }
   0x1   :  { %v145_v0 = vld [vmem:[%s1401_s1] sm:$0x1]  ;;  %v147_v1 = vld [vmem:[%s1401_s1 + $0x1] sm:$0x1]  ;;  %v914_v13 = vld [vmem:[%s1402_s0 + $0x8] sm:$0xff]  }
   0x2   :  { %v146_v2 = vmul.f32 0.001953125, %v145_v0  ;;  %v148_v3 = vmul.f32 0.001953125, %v147_v1  ;;  %v627_v11 = vld [vmem:[%s1402_s0] sm:$0xff]   ;;  %v915_v14 = vld [vmem:[%s1402_s0 + $0x10] sm:$0xff]   ;;  %v916_v15 = vld [vmem:[%s1402_s0 + $0x18] sm:$0xff]   ;;  %v632_v22 = vunpack.c.l.bf16 %v914_v13  ;;  %v633_v23 = vunpack.c.h.bf16 %v914_v13 }
   0x3   :  { %v628_v16 = vunpack.c.l.bf16 %v627_v11  ;;  %v917_v18 = vld [vmem:[%s1402_s0 + $0x20] sm:$0xff]   ;;  %v918_v19 = vld [vmem:[%s1402_s0 + $0x28] sm:$0xff]   ;;  %v629_v20 = vunpack.c.h.bf16 %v627_v11  ;;  %v636_v24 = vunpack.c.l.bf16 %v915_v14  ;;  %v919_v25 = vld [vmem:[%s1402_s0 + $0x30] sm:$0xff]   ;;  %v637_v29 = vunpack.c.h.bf16 %v915_v14 }
   0x4   :  { %v149_v4 = vmul.f32 %v146_v2, %v146_v2  ;;  %v1037_v26 = vld [vmem:[%s1402_s0 + $0x38] sm:$0xff]   ;;  %v163_v28 = vld [vmem:[%s1403_s2] sm:$0x1]  ;;  %v640_v30 = vunpack.c.l.bf16 %v916_v15  ;;  %v641_v31 = vunpack.c.h.bf16 %v916_v15  ;;  %v644_v33 = vunpack.c.l.bf16 %v917_v18  ;;  %v1050_v37 = vld [vmem:[%s1402_s0 + $0x48] sm:$0xff]  }
   0x5   :  { %v1045_v32 = vld [vmem:[%s1402_s0 + $0x40] sm:$0xff]   ;;  %v645_v34 = vunpack.c.h.bf16 %v917_v18  ;;  %v648_v35 = vunpack.c.l.bf16 %v918_v19  ;;  %v649_v36 = vunpack.c.h.bf16 %v918_v19  ;;  %v1055_v38 = vld [vmem:[%s1402_s0 + $0x50] sm:$0xff]   ;;  %v652_v40 = vunpack.c.l.bf16 %v919_v25  ;;  %v1063_v43 = vld [vmem:[%s1402_s0 + $0x58] sm:$0xff]  }
   0x6   :  { %v150_v5 = vsub.f32 %v148_v3, %v149_v4  ;;  %v653_v41 = vunpack.c.h.bf16 %v919_v25  ;;  %v656_v42 = vunpack.c.l.bf16 %v1037_v26  ;;  %v657_v45 = vunpack.c.h.bf16 %v1037_v26  ;;  %v1071_v48 = vld [vmem:[%s1402_s0 + $0x60] sm:$0xff]   ;;  %v1076_v49 = vld [vmem:[%s1402_s0 + $0x68] sm:$0xff]  }
   0x7   :  { %v660_v46 = vunpack.c.l.bf16 %v1045_v32  ;;  %v661_v47 = vunpack.c.h.bf16 %v1045_v32  ;;  %v165_v50 = vld [vmem:[%s1404_s3] sm:$0x1]  ;;  %v664_v51 = vunpack.c.l.bf16 %v1050_v37  ;;  %v665_v52 = vunpack.c.h.bf16 %v1050_v37 }
   0x8   :  { %v151_v6 = vmax.f32 %v150_v5, 0.0  ;;  %v668_v53 = vunpack.c.l.bf16 %v1055_v38  ;;  %v669_v54 = vunpack.c.h.bf16 %v1055_v38  ;;  %v672_v57 = vunpack.c.l.bf16 %v1063_v43 }
   0x9   :  { %v673_v58 = vunpack.c.h.bf16 %v1063_v43  ;;  %v676_v59 = vunpack.c.l.bf16 %v1071_v48  ;;  %v677_v60 = vunpack.c.h.bf16 %v1071_v48  ;;  %v680_v61 = vunpack.c.l.bf16 %v1076_v49 }
   0xa   :  { %v152_v7 = vadd.f32 1e-05, %v151_v6  ;;  %v681_v62 = vunpack.c.h.bf16 %v1076_v49 }
   0xc   :  { %976 = vrsqrt.f32 %v152_v7  ;;  %vm159_vm0 = vweird.f32 %v152_v7 }
  0x12   :  { %v977_v8 = vpop.eup %976 }
  0x13   :  { %v154_v9 = vmul.f32 %v977_v8, %v152_v7  ;;  %vm160_vm1 = vweird.f32 %v977_v8 }
  0x14   :  { %vm1027_vm2 = vmor %vm159_vm0, %vm160_vm1 }
  0x15   :  { %v155_v10 = vmul.f32 %v977_v8, %v154_v9 }
  0x17   :  { %v156_v12 = vmul.f32 0.5, %v155_v10 }
  0x19   :  { %v157_v17 = vsub.f32 1.5, %v156_v12 }
  0x1b   :  { %v158_v27 = vmul.f32 %v977_v8, %v157_v17 }
  0x1d   :  { %v162_v39 = vsel %vm1027_vm2, %v977_v8, %v158_v27 }
  0x1e   :  { %v164_v44 = vmul.f32 %v163_v28, %v162_v39 }
  0x20   :  { %v166_v55 = vmul.f32 %v164_v44, %v146_v2  ;;  %v1085_v56 = vperm.slane %v164_v44, 0 }
  0x22   :  { %v167_v63 = vsub.f32 %v165_v50, %v166_v55  ;;  %v171_v0 = vmul.f32 %v628_v16, %v1085_v56  ;;  %v172_v1 = vmul.f32 %v629_v20, %v1085_v56  ;;  %v173_v2 = vmul.f32 %v632_v22, %v1085_v56 }
  0x23   :  { %v174_v3 = vmul.f32 %v633_v23, %v1085_v56  ;;  %v175_v4 = vmul.f32 %v636_v24, %v1085_v56  ;;  %v176_v5 = vmul.f32 %v637_v29, %v1085_v56  ;;  %v177_v6 = vmul.f32 %v640_v30, %v1085_v56 }
  0x24   :  { %v1100_v7 = vperm.slane %v167_v63, 0  ;;  %v178_v8 = vmul.f32 %v641_v31, %v1085_v56  ;;  %v179_v9 = vmul.f32 %v644_v33, %v1085_v56  ;;  %v180_v10 = vmul.f32 %v645_v34, %v1085_v56 }
  0x25   :  { %v181_v11 = vmul.f32 %v648_v35, %v1085_v56  ;;  %v182_v12 = vmul.f32 %v649_v36, %v1085_v56  ;;  %v183_v13 = vmul.f32 %v652_v40, %v1085_v56  ;;  %v184_v14 = vmul.f32 %v653_v41, %v1085_v56 }
  0x26   :  { %v238_v15 = vadd.f32 %v1100_v7, %v171_v0  ;;  %v239_v16 = vadd.f32 %v1100_v7, %v172_v1  ;;  %v240_v17 = vadd.f32 %v1100_v7, %v173_v2  ;;  %v241_v18 = vadd.f32 %v1100_v7, %v174_v3 }
  0x27   :  { %v242_v19 = vadd.f32 %v1100_v7, %v175_v4  ;;  %v243_v20 = vadd.f32 %v1100_v7, %v176_v5  ;;  %v244_v21 = vadd.f32 %v1100_v7, %v177_v6  ;;  %v245_v22 = vadd.f32 %v1100_v7, %v178_v8 }
  0x28   :  { %vm302_vm3 = vcmp.ge.f32.partialorder %v238_v15, 0.0  ;;  %vm303_vm4 = vcmp.ge.f32.partialorder %v239_v16, 0.0  ;;  %v366_v23 = vmul.f32 0.2, %v238_v15  ;;  %v367_v24 = vmul.f32 0.2, %v239_v16 }
  0x29   :  { %vm304_vm5 = vcmp.ge.f32.partialorder %v240_v17, 0.0  ;;  %vm305_vm6 = vcmp.ge.f32.partialorder %v241_v18, 0.0  ;;  %v368_v25 = vmul.f32 0.2, %v240_v17  ;;  %v369_v27 = vmul.f32 0.2, %v241_v18 }
  0x2a   :  { %v430_v28 = vsel %vm302_vm3, %v238_v15, %v366_v23  ;;  %v431_v29 = vsel %vm303_vm4, %v239_v16, %v367_v24  ;;  %vm306_vm7 = vcmp.ge.f32.partialorder %v242_v19, 0.0  ;;  %vm307_vm8 = vcmp.ge.f32.partialorder %v243_v20, 0.0 }
  0x2b   :  { %v757_v30 = vpack.c.bf16 %v431_v29, %v430_v28  ;;  %v432_v31 = vsel %vm304_vm5, %v240_v17, %v368_v25  ;;  %v433_v33 = vsel %vm305_vm6, %v241_v18, %v369_v27  ;;  %v370_v34 = vmul.f32 0.2, %v242_v19 }
  0x2c   :  { %v762_v35 = vpack.c.bf16 %v433_v33, %v432_v31  ;;  %v371_v36 = vmul.f32 0.2, %v243_v20  ;;  %vm308_vm9 = vcmp.ge.f32.partialorder %v244_v21, 0.0  ;;  %vm309_vm10 = vcmp.ge.f32.partialorder %v245_v22, 0.0 }
  0x2d   :  { %758 = vst [vmem:[%s1405_s4] sm:$0xff] %v757_v30   ;;  %v434_v39 = vsel %vm306_vm7, %v242_v19, %v370_v34  ;;  %v372_v40 = vmul.f32 0.2, %v244_v21  ;;  %v373_v41 = vmul.f32 0.2, %v245_v22  ;;  %v246_v44 = vadd.f32 %v1100_v7, %v179_v9 }
  0x2e   :  { %945 = vst [vmem:[%s1405_s4 + $0x8] sm:$0xff] %v762_v35   ;;  %v435_v50 = vsel %vm307_vm8, %v243_v20, %v371_v36  ;;  %v247_v55 = vadd.f32 %v1100_v7, %v180_v10  ;;  %v248_v63 = vadd.f32 %v1100_v7, %v181_v11  ;;  %v249_v0 = vadd.f32 %v1100_v7, %v182_v12 }
  0x2f   :  { %v767_v1 = vpack.c.bf16 %v435_v50, %v434_v39  ;;  %v436_v2 = vsel %vm308_vm9, %v244_v21, %v372_v40  ;;  %v437_v3 = vsel %vm309_vm10, %v245_v22, %v373_v41  ;;  %vm310_vm11 = vcmp.ge.f32.partialorder %v246_v44, 0.0 }
  0x30   :  { %v772_v4 = vpack.c.bf16 %v437_v3, %v436_v2  ;;  %vm311_vm12 = vcmp.ge.f32.partialorder %v247_v55, 0.0  ;;  %v374_v5 = vmul.f32 0.2, %v246_v44  ;;  %v375_v6 = vmul.f32 0.2, %v247_v55 }
  0x31   :  { %946 = vst [vmem:[%s1405_s4 + $0x10] sm:$0xff] %v767_v1   ;;  %vm312_vm13 = vcmp.ge.f32.partialorder %v248_v63, 0.0  ;;  %vm313_vm14 = vcmp.ge.f32.partialorder %v249_v0, 0.0  ;;  %v376_v8 = vmul.f32 0.2, %v248_v63  ;;  %v250_v9 = vadd.f32 %v1100_v7, %v183_v13 }
  0x32   :  { %947 = vst [vmem:[%s1405_s4 + $0x18] sm:$0xff] %v772_v4   ;;  %v438_v10 = vsel %vm310_vm11, %v246_v44, %v374_v5  ;;  %v439_v11 = vsel %vm311_vm12, %v247_v55, %v375_v6  ;;  %v377_v12 = vmul.f32 0.2, %v249_v0  ;;  %v251_v15 = vadd.f32 %v1100_v7, %v184_v14 }
  0x33   :  { %v777_v16 = vpack.c.bf16 %v439_v11, %v438_v10  ;;  %v440_v17 = vsel %vm312_vm13, %v248_v63, %v376_v8  ;;  %vm314_vm15 = vcmp.ge.f32.partialorder %v250_v9, 0.0  ;;  %v378_v18 = vmul.f32 0.2, %v250_v9 }
  0x34   :  { %v441_v19 = vsel %vm313_vm14, %v249_v0, %v377_v12  ;;  %vm315_vm0 = vcmp.ge.f32.partialorder %v251_v15, 0.0  ;;  %v379_v20 = vmul.f32 0.2, %v251_v15  ;;  %v185_v13 = vmul.f32 %v656_v42, %v1085_v56 }
  0x35   :  { %948 = vst [vmem:[%s1405_s4 + $0x20] sm:$0xff] %v777_v16   ;;  %v782_v21 = vpack.c.bf16 %v441_v19, %v440_v17  ;;  %v442_v22 = vsel %vm314_vm15, %v250_v9, %v378_v18  ;;  %v186_v14 = vmul.f32 %v657_v45, %v1085_v56  ;;  %v187_v23 = vmul.f32 %v660_v46, %v1085_v56  ;;  %v928_v19 = vld [vmem:[%s1402_s0 + $0x78] sm:$0xff]  }
  0x36   :  { %v443_v24 = vsel %vm315_vm0, %v251_v15, %v379_v20  ;;  %v252_v25 = vadd.f32 %v1100_v7, %v185_v13  ;;  %v188_v42 = vmul.f32 %v661_v47, %v1085_v56  ;;  %v189_v27 = vmul.f32 %v664_v51, %v1085_v56 }
  0x37   :  { %949 = vst [vmem:[%s1405_s4 + $0x28] sm:$0xff] %v782_v21   ;;  %v787_v26 = vpack.c.bf16 %v443_v24, %v442_v22  ;;  %v253_v45 = vadd.f32 %v1100_v7, %v186_v14  ;;  %v254_v46 = vadd.f32 %v1100_v7, %v187_v23  ;;  %v190_v28 = vmul.f32 %v665_v52, %v1085_v56  ;;  %v929_v14 = vld [vmem:[%s1402_s0 + $0x80] sm:$0xff]  }
  0x38   :  { %vm316_vm1 = vcmp.ge.f32.partialorder %v252_v25, 0.0  ;;  %v380_v32 = vmul.f32 0.2, %v252_v25  ;;  %v255_v47 = vadd.f32 %v1100_v7, %v188_v42  ;;  %v256_v29 = vadd.f32 %v1100_v7, %v189_v27 }
  0x39   :  { %950 = vst [vmem:[%s1405_s4 + $0x30] sm:$0xff] %v787_v26   ;;  %vm317_vm2 = vcmp.ge.f32.partialorder %v253_v45, 0.0  ;;  %v381_v51 = vmul.f32 0.2, %v253_v45  ;;  %vm318_vm3 = vcmp.ge.f32.partialorder %v254_v46, 0.0  ;;  %v257_v30 = vadd.f32 %v1100_v7, %v190_v28  ;;  %v930_v26 = vld [vmem:[%s1402_s0 + $0x88] sm:$0xff]  }
  0x3a   :  { %v444_v31 = vsel %vm316_vm1, %v252_v25, %v380_v32  ;;  %vm319_vm4 = vcmp.ge.f32.partialorder %v255_v47, 0.0  ;;  %v382_v33 = vmul.f32 0.2, %v254_v46  ;;  %v383_v37 = vmul.f32 0.2, %v255_v47 }
  0x3b   :  { %v445_v52 = vsel %vm317_vm2, %v253_v45, %v381_v51  ;;  %vm320_vm5 = vcmp.ge.f32.partialorder %v256_v29, 0.0  ;;  %vm321_vm6 = vcmp.ge.f32.partialorder %v257_v30, 0.0  ;;  %v384_v34 = vmul.f32 0.2, %v256_v29 }
  0x3c   :  { %v792_v35 = vpack.c.bf16 %v445_v52, %v444_v31  ;;  %v446_v36 = vsel %vm318_vm3, %v254_v46, %v382_v33  ;;  %v447_v39 = vsel %vm319_vm4, %v255_v47, %v383_v37  ;;  %v385_v40 = vmul.f32 0.2, %v257_v30 }
  0x3d   :  { %v797_v41 = vpack.c.bf16 %v447_v39, %v446_v36  ;;  %v448_v44 = vsel %vm320_vm5, %v256_v29, %v384_v34  ;;  %v191_v50 = vmul.f32 %v668_v53, %v1085_v56  ;;  %v192_v55 = vmul.f32 %v669_v54, %v1085_v56 }
  0x3e   :  { %951 = vst [vmem:[%s1405_s4 + $0x38] sm:$0xff] %v792_v35   ;;  %v449_v63 = vsel %vm321_vm6, %v257_v30, %v385_v40  ;;  %v193_v0 = vmul.f32 %v672_v57, %v1085_v56  ;;  %v194_v1 = vmul.f32 %v673_v58, %v1085_v56  ;;  %v195_v53 = vmul.f32 %v676_v59, %v1085_v56 }
  0x3f   :  { %952 = vst [vmem:[%s1405_s4 + $0x40] sm:$0xff] %v797_v41   ;;  %v802_v38 = vpack.c.bf16 %v449_v63, %v448_v44  ;;  %v258_v54 = vadd.f32 %v1100_v7, %v191_v50  ;;  %v259_v2 = vadd.f32 %v1100_v7, %v192_v55  ;;  %v196_v57 = vmul.f32 %v677_v60, %v1085_v56 }
  0x40   :  { %v260_v43 = vadd.f32 %v1100_v7, %v193_v0  ;;  %v261_v58 = vadd.f32 %v1100_v7, %v194_v1  ;;  %v262_v3 = vadd.f32 %v1100_v7, %v195_v53  ;;  %v197_v59 = vmul.f32 %v680_v61, %v1085_v56  ;;  %v927_v61 = vld [vmem:[%s1402_s0 + $0x70] sm:$0xff]  }
  0x41   :  { %953 = vst [vmem:[%s1405_s4 + $0x48] sm:$0xff] %v802_v38   ;;  %vm322_vm7 = vcmp.ge.f32.partialorder %v258_v54, 0.0  ;;  %vm323_vm8 = vcmp.ge.f32.partialorder %v259_v2, 0.0  ;;  %v386_v4 = vmul.f32 0.2, %v258_v54  ;;  %v263_v48 = vadd.f32 %v1100_v7, %v196_v57 }
  0x42   :  { %v387_v60 = vmul.f32 0.2, %v259_v2  ;;  %vm324_vm9 = vcmp.ge.f32.partialorder %v260_v43, 0.0  ;;  %vm325_vm10 = vcmp.ge.f32.partialorder %v261_v58, 0.0  ;;  %v388_v5 = vmul.f32 0.2, %v260_v43 }
  0x43   :  { %v450_v6 = vsel %vm322_vm7, %v258_v54, %v386_v4  ;;  %v389_v8 = vmul.f32 0.2, %v261_v58  ;;  %vm326_vm11 = vcmp.ge.f32.partialorder %v262_v3, 0.0  ;;  %vm327_vm12 = vcmp.ge.f32.partialorder %v263_v48, 0.0  ;;  %v931_v54 = vld [vmem:[%s1402_s0 + $0x90] sm:$0xff]  }
  0x44   :  { %v451_v9 = vsel %vm323_vm8, %v259_v2, %v387_v60  ;;  %v452_v10 = vsel %vm324_vm9, %v260_v43, %v388_v5  ;;  %v390_v11 = vmul.f32 0.2, %v262_v3  ;;  %v391_v12 = vmul.f32 0.2, %v263_v48 }
  0x45   :  { %v807_v15 = vpack.c.bf16 %v451_v9, %v450_v6  ;;  %v453_v16 = vsel %vm325_vm10, %v261_v58, %v389_v8  ;;  %v198_v17 = vmul.f32 %v681_v62, %v1085_v56  ;;  %v264_v18 = vadd.f32 %v1100_v7, %v197_v59  ;;  %v933_v59 = vld [vmem:[%s1402_s0 + $0xa0] sm:$0xff]  }
  0x46   :  { %v812_v20 = vpack.c.bf16 %v453_v16, %v452_v10  ;;  %v454_v13 = vsel %vm326_vm11, %v262_v3, %v390_v11  ;;  %v455_v21 = vsel %vm327_vm12, %v263_v48, %v391_v12  ;;  %v684_v22 = vunpack.c.l.bf16 %v927_v61  ;;  %v932_v3 = vld [vmem:[%s1402_s0 + $0x98] sm:$0xff]  }
  0x47   :  { %954 = vst [vmem:[%s1405_s4 + $0x50] sm:$0xff] %v807_v15   ;;  %v817_v49 = vpack.c.bf16 %v455_v21, %v454_v13  ;;  %v265_v62 = vadd.f32 %v1100_v7, %v198_v17  ;;  %vm328_vm13 = vcmp.ge.f32.partialorder %v264_v18, 0.0  ;;  %v392_v23 = vmul.f32 0.2, %v264_v18  ;;  %v934_v21 = vld [vmem:[%s1402_s0 + $0xa8] sm:$0xff]  }
  0x48   :  { %955 = vst [vmem:[%s1405_s4 + $0x58] sm:$0xff] %v812_v20   ;;  %v685_v24 = vunpack.c.h.bf16 %v927_v61  ;;  %v199_v25 = vmul.f32 %v684_v22, %v1085_v56  ;;  %v688_v42 = vunpack.c.l.bf16 %v928_v19  ;;  %v689_v27 = vunpack.c.h.bf16 %v928_v19 }
  0x49   :  { %956 = vst [vmem:[%s1405_s4 + $0x60] sm:$0xff] %v817_v49   ;;  %vm329_vm14 = vcmp.ge.f32.partialorder %v265_v62, 0.0  ;;  %v393_v45 = vmul.f32 0.2, %v265_v62  ;;  %v456_v46 = vsel %vm328_vm13, %v264_v18, %v392_v23  ;;  %v692_v28 = vunpack.c.l.bf16 %v929_v14 }
  0x4a   :  { %v200_v32 = vmul.f32 %v685_v24, %v1085_v56  ;;  %v266_v47 = vadd.f32 %v1100_v7, %v199_v25  ;;  %v201_v29 = vmul.f32 %v688_v42, %v1085_v56  ;;  %v202_v51 = vmul.f32 %v689_v27, %v1085_v56 }
  0x4b   :  { %v457_v30 = vsel %vm329_vm14, %v265_v62, %v393_v45  ;;  %v693_v31 = vunpack.c.h.bf16 %v929_v14  ;;  %v203_v33 = vmul.f32 %v692_v28, %v1085_v56  ;;  %v696_v37 = vunpack.c.l.bf16 %v930_v26 }
  0x4c   :  { %v822_v52 = vpack.c.bf16 %v457_v30, %v456_v46  ;;  %v267_v34 = vadd.f32 %v1100_v7, %v200_v32  ;;  %vm330_vm15 = vcmp.ge.f32.partialorder %v266_v47, 0.0  ;;  %v394_v35 = vmul.f32 0.2, %v266_v47 }
  0x4d   :  { %v268_v36 = vadd.f32 %v1100_v7, %v201_v29  ;;  %v269_v39 = vadd.f32 %v1100_v7, %v202_v51  ;;  %v204_v40 = vmul.f32 %v693_v31, %v1085_v56  ;;  %v270_v41 = vadd.f32 %v1100_v7, %v203_v33 }
  0x4e   :  { %957 = vst [vmem:[%s1405_s4 + $0x68] sm:$0xff] %v822_v52   ;;  %vm331_vm0 = vcmp.ge.f32.partialorder %v267_v34, 0.0  ;;  %v395_v44 = vmul.f32 0.2, %v267_v34  ;;  %v458_v50 = vsel %vm330_vm15, %v266_v47, %v394_v35  ;;  %v697_v55 = vunpack.c.h.bf16 %v930_v26  ;;  %v935_v35 = vld [vmem:[%s1402_s0 + $0xb0] sm:$0xff]  }
  0x4f   :  { %vm332_vm1 = vcmp.ge.f32.partialorder %v268_v36, 0.0  ;;  %vm333_vm2 = vcmp.ge.f32.partialorder %v269_v39, 0.0  ;;  %v396_v63 = vmul.f32 0.2, %v268_v36  ;;  %v397_v0 = vmul.f32 0.2, %v269_v39 }
  0x50   :  { %v459_v1 = vsel %vm331_vm0, %v267_v34, %v395_v44  ;;  %v271_v53 = vadd.f32 %v1100_v7, %v204_v40  ;;  %vm334_vm3 = vcmp.ge.f32.partialorder %v270_v41, 0.0  ;;  %v398_v38 = vmul.f32 0.2, %v270_v41 }
  0x51   :  { %v827_v2 = vpack.c.bf16 %v459_v1, %v458_v50  ;;  %v460_v57 = vsel %vm332_vm1, %v268_v36, %v396_v63  ;;  %v461_v43 = vsel %vm333_vm2, %v269_v39, %v397_v0  ;;  %v205_v58 = vmul.f32 %v696_v37, %v1085_v56  ;;  %v936_v36 = vld [vmem:[%s1402_s0 + $0xb8] sm:$0xff]  }
  0x52   :  { %v832_v4 = vpack.c.bf16 %v461_v43, %v460_v57  ;;  %vm335_vm4 = vcmp.ge.f32.partialorder %v271_v53, 0.0  ;;  %v399_v48 = vmul.f32 0.2, %v271_v53  ;;  %v462_v60 = vsel %vm334_vm3, %v270_v41, %v398_v38  ;;  %v937_v43 = vld [vmem:[%s1402_s0 + $0xc0] sm:$0xff]  }
  0x53   :  { %958 = vst [vmem:[%s1405_s4 + $0x70] sm:$0xff] %v827_v2   ;;  %v206_v5 = vmul.f32 %v697_v55, %v1085_v56  ;;  %v272_v6 = vadd.f32 %v1100_v7, %v205_v58  ;;  %v700_v8 = vunpack.c.l.bf16 %v931_v54  ;;  %v701_v61 = vunpack.c.h.bf16 %v931_v54 }
  0x54   :  { %959 = vst [vmem:[%s1405_s4 + $0x78] sm:$0xff] %v832_v4   ;;  %v463_v9 = vsel %vm335_vm4, %v271_v53, %v399_v48  ;;  %v704_v10 = vunpack.c.l.bf16 %v932_v3  ;;  %v705_v11 = vunpack.c.h.bf16 %v932_v3  ;;  %v708_v12 = vunpack.c.l.bf16 %v933_v59 }
  0x55   :  { %v837_v15 = vpack.c.bf16 %v463_v9, %v462_v60  ;;  %v273_v16 = vadd.f32 %v1100_v7, %v206_v5  ;;  %vm336_vm5 = vcmp.ge.f32.partialorder %v272_v6, 0.0  ;;  %v400_v17 = vmul.f32 0.2, %v272_v6 }
  0x56   :  { %v207_v18 = vmul.f32 %v700_v8, %v1085_v56  ;;  %v208_v19 = vmul.f32 %v701_v61, %v1085_v56  ;;  %v209_v20 = vmul.f32 %v704_v10, %v1085_v56  ;;  %v210_v13 = vmul.f32 %v705_v11, %v1085_v56 }
  0x57   :  { %960 = vst [vmem:[%s1405_s4 + $0x80] sm:$0xff] %v837_v15   ;;  %vm337_vm6 = vcmp.ge.f32.partialorder %v273_v16, 0.0  ;;  %v401_v22 = vmul.f32 0.2, %v273_v16  ;;  %v464_v14 = vsel %vm336_vm5, %v272_v6, %v400_v17  ;;  %v709_v49 = vunpack.c.h.bf16 %v933_v59 }
  0x58   :  { %v274_v62 = vadd.f32 %v1100_v7, %v207_v18  ;;  %v275_v23 = vadd.f32 %v1100_v7, %v208_v19  ;;  %v276_v24 = vadd.f32 %v1100_v7, %v209_v20  ;;  %v277_v25 = vadd.f32 %v1100_v7, %v210_v13  ;;  %v938_v18 = vld [vmem:[%s1402_s0 + $0xc8] sm:$0xff]  }
  0x59   :  { %v465_v42 = vsel %vm337_vm6, %v273_v16, %v401_v22  ;;  %v211_v27 = vmul.f32 %v708_v12, %v1085_v56  ;;  %v212_v26 = vmul.f32 %v709_v49, %v1085_v56  ;;  %v712_v45 = vunpack.c.l.bf16 %v934_v21 }
  0x5a   :  { %v842_v46 = vpack.c.bf16 %v465_v42, %v464_v14  ;;  %vm338_vm7 = vcmp.ge.f32.partialorder %v274_v62, 0.0  ;;  %vm339_vm8 = vcmp.ge.f32.partialorder %v275_v23, 0.0  ;;  %v402_v28 = vmul.f32 0.2, %v274_v62  ;;  %v939_v14 = vld [vmem:[%s1402_s0 + $0xd0] sm:$0xff]  }
  0x5b   :  { %v403_v32 = vmul.f32 0.2, %v275_v23  ;;  %vm340_vm9 = vcmp.ge.f32.partialorder %v276_v24, 0.0  ;;  %vm341_vm10 = vcmp.ge.f32.partialorder %v277_v25, 0.0  ;;  %v404_v47 = vmul.f32 0.2, %v276_v24 }
  0x5c   :  { %961 = vst [vmem:[%s1405_s4 + $0x88] sm:$0xff] %v842_v46   ;;  %v466_v29 = vsel %vm338_vm7, %v274_v62, %v402_v28  ;;  %v405_v51 = vmul.f32 0.2, %v277_v25  ;;  %v278_v30 = vadd.f32 %v1100_v7, %v211_v27  ;;  %v279_v31 = vadd.f32 %v1100_v7, %v212_v26 }
  0x5d   :  { %v467_v33 = vsel %vm339_vm8, %v275_v23, %v403_v32  ;;  %v468_v37 = vsel %vm340_vm9, %v276_v24, %v404_v47  ;;  %v713_v52 = vunpack.c.h.bf16 %v934_v21  ;;  %v213_v34 = vmul.f32 %v712_v45, %v1085_v56  ;;  %v940_v47 = vld [vmem:[%s1402_s0 + $0xd8] sm:$0xff]  }
  0x5e   :  { %v847_v39 = vpack.c.bf16 %v467_v33, %v466_v29  ;;  %v469_v40 = vsel %vm341_vm10, %v277_v25, %v405_v51  ;;  %vm342_vm11 = vcmp.ge.f32.partialorder %v278_v30, 0.0  ;;  %vm343_vm12 = vcmp.ge.f32.partialorder %v279_v31, 0.0 }
  0x5f   :  { %v852_v41 = vpack.c.bf16 %v469_v40, %v468_v37  ;;  %v406_v44 = vmul.f32 0.2, %v278_v30  ;;  %v407_v50 = vmul.f32 0.2, %v279_v31  ;;  %v214_v55 = vmul.f32 %v713_v52, %v1085_v56 }
  0x60   :  { %962 = vst [vmem:[%s1405_s4 + $0x90] sm:$0xff] %v847_v39   ;;  %v280_v63 = vadd.f32 %v1100_v7, %v213_v34  ;;  %v716_v0 = vunpack.c.l.bf16 %v935_v35  ;;  %v717_v1 = vunpack.c.h.bf16 %v935_v35  ;;  %v720_v53 = vunpack.c.l.bf16 %v936_v36 }
  0x61   :  { %963 = vst [vmem:[%s1405_s4 + $0x98] sm:$0xff] %v852_v41   ;;  %v470_v38 = vsel %vm342_vm11, %v278_v30, %v406_v44  ;;  %v471_v54 = vsel %vm343_vm12, %v279_v31, %v407_v50  ;;  %v281_v2 = vadd.f32 %v1100_v7, %v214_v55  ;;  %v721_v57 = vunpack.c.h.bf16 %v936_v36 }
  0x62   :  { %v857_v58 = vpack.c.bf16 %v471_v54, %v470_v38  ;;  %vm344_vm13 = vcmp.ge.f32.partialorder %v280_v63, 0.0  ;;  %v408_v3 = vmul.f32 0.2, %v280_v63  ;;  %v215_v59 = vmul.f32 %v716_v0, %v1085_v56  ;;  %v942_v38 = vld [vmem:[%s1402_s0 + $0xe8] sm:$0xff]  }
  0x63   :  { %vm345_vm14 = vcmp.ge.f32.partialorder %v281_v2, 0.0  ;;  %v409_v4 = vmul.f32 0.2, %v281_v2  ;;  %v216_v48 = vmul.f32 %v717_v1, %v1085_v56  ;;  %v217_v60 = vmul.f32 %v720_v53, %v1085_v56 }
  0x64   :  { %964 = vst [vmem:[%s1405_s4 + $0xa0] sm:$0xff] %v857_v58   ;;  %v472_v5 = vsel %vm344_vm13, %v280_v63, %v408_v3  ;;  %v282_v6 = vadd.f32 %v1100_v7, %v215_v59  ;;  %v218_v8 = vmul.f32 %v721_v57, %v1085_v56  ;;  %v724_v61 = vunpack.c.l.bf16 %v937_v43  ;;  %v941_v63 = vld [vmem:[%s1402_s0 + $0xe0] sm:$0xff]  }
  0x65   :  { %v473_v9 = vsel %vm345_vm14, %v281_v2, %v409_v4  ;;  %v283_v10 = vadd.f32 %v1100_v7, %v216_v48  ;;  %v284_v11 = vadd.f32 %v1100_v7, %v217_v60  ;;  %v725_v12 = vunpack.c.h.bf16 %v937_v43 }
  0x66   :  { %v862_v15 = vpack.c.bf16 %v473_v9, %v472_v5  ;;  %vm346_vm15 = vcmp.ge.f32.partialorder %v282_v6, 0.0  ;;  %v410_v16 = vmul.f32 0.2, %v282_v6  ;;  %v285_v17 = vadd.f32 %v1100_v7, %v218_v8 }
  0x67   :  { %vm347_vm0 = vcmp.ge.f32.partialorder %v283_v10, 0.0  ;;  %v411_v19 = vmul.f32 0.2, %v283_v10  ;;  %vm348_vm1 = vcmp.ge.f32.partialorder %v284_v11, 0.0  ;;  %v412_v20 = vmul.f32 0.2, %v284_v11 }
  0x68   :  { %965 = vst [vmem:[%s1405_s4 + $0xa8] sm:$0xff] %v862_v15   ;;  %v474_v13 = vsel %vm346_vm15, %v282_v6, %v410_v16  ;;  %vm349_vm2 = vcmp.ge.f32.partialorder %v285_v17, 0.0  ;;  %v413_v21 = vmul.f32 0.2, %v285_v17  ;;  %v219_v22 = vmul.f32 %v724_v61, %v1085_v56 }
  0x69   :  { %v475_v49 = vsel %vm347_vm0, %v283_v10, %v411_v19  ;;  %v476_v62 = vsel %vm348_vm1, %v284_v11, %v412_v20  ;;  %v220_v23 = vmul.f32 %v725_v12, %v1085_v56  ;;  %v728_v24 = vunpack.c.l.bf16 %v938_v18  ;;  %v943_v10 = vld [vmem:[%s1402_s0 + $0xf0] sm:$0xff]  }
  0x6a   :  { %v867_v25 = vpack.c.bf16 %v475_v49, %v474_v13  ;;  %v477_v42 = vsel %vm349_vm2, %v285_v17, %v413_v21  ;;  %v286_v27 = vadd.f32 %v1100_v7, %v219_v22  ;;  %v729_v26 = vunpack.c.h.bf16 %v938_v18 }
  0x6b   :  { %v872_v45 = vpack.c.bf16 %v477_v42, %v476_v62  ;;  %v287_v46 = vadd.f32 %v1100_v7, %v220_v23  ;;  %v221_v28 = vmul.f32 %v728_v24, %v1085_v56  ;;  %v732_v32 = vunpack.c.l.bf16 %v939_v14  ;;  %v944_v62 = vld [vmem:[%s1402_s0 + $0xf8] sm:$0xff]  }
  0x6c   :  { %966 = vst [vmem:[%s1405_s4 + $0xb0] sm:$0xff] %v867_v25   ;;  %vm350_vm3 = vcmp.ge.f32.partialorder %v286_v27, 0.0  ;;  %v414_v29 = vmul.f32 0.2, %v286_v27  ;;  %v222_v51 = vmul.f32 %v729_v26, %v1085_v56  ;;  %v733_v30 = vunpack.c.h.bf16 %v939_v14 }
  0x6d   :  { %967 = vst [vmem:[%s1405_s4 + $0xb8] sm:$0xff] %v872_v45   ;;  %vm351_vm4 = vcmp.ge.f32.partialorder %v287_v46, 0.0  ;;  %v415_v31 = vmul.f32 0.2, %v287_v46  ;;  %v288_v33 = vadd.f32 %v1100_v7, %v221_v28  ;;  %v223_v37 = vmul.f32 %v732_v32, %v1085_v56 }
  0x6e   :  { %v478_v52 = vsel %vm350_vm3, %v286_v27, %v414_v29  ;;  %v289_v34 = vadd.f32 %v1100_v7, %v222_v51  ;;  %v224_v35 = vmul.f32 %v733_v30, %v1085_v56  ;;  %v736_v36 = vunpack.c.l.bf16 %v940_v47 }
  0x6f   :  { %v479_v39 = vsel %vm351_vm4, %v287_v46, %v415_v31  ;;  %vm352_vm5 = vcmp.ge.f32.partialorder %v288_v33, 0.0  ;;  %v416_v40 = vmul.f32 0.2, %v288_v33  ;;  %v290_v41 = vadd.f32 %v1100_v7, %v223_v37 }
  0x70   :  { %v877_v44 = vpack.c.bf16 %v479_v39, %v478_v52  ;;  %vm353_vm6 = vcmp.ge.f32.partialorder %v289_v34, 0.0  ;;  %v417_v50 = vmul.f32 0.2, %v289_v34  ;;  %v291_v55 = vadd.f32 %v1100_v7, %v224_v35 }
  0x71   :  { %v480_v0 = vsel %vm352_vm5, %v288_v33, %v416_v40  ;;  %vm354_vm7 = vcmp.ge.f32.partialorder %v290_v41, 0.0  ;;  %v418_v1 = vmul.f32 0.2, %v290_v41  ;;  %v737_v53 = vunpack.c.h.bf16 %v940_v47 }
  0x72   :  { %968 = vst [vmem:[%s1405_s4 + $0xc0] sm:$0xff] %v877_v44   ;;  %v481_v54 = vsel %vm353_vm6, %v289_v34, %v417_v50  ;;  %vm355_vm8 = vcmp.ge.f32.partialorder %v291_v55, 0.0  ;;  %v419_v2 = vmul.f32 0.2, %v291_v55  ;;  %v225_v57 = vmul.f32 %v736_v36, %v1085_v56 }
  0x73   :  { %v882_v43 = vpack.c.bf16 %v481_v54, %v480_v0  ;;  %v482_v58 = vsel %vm354_vm7, %v290_v41, %v418_v1  ;;  %v226_v3 = vmul.f32 %v737_v53, %v1085_v56  ;;  %v740_v59 = vunpack.c.l.bf16 %v941_v63 }
  0x74   :  { %v483_v4 = vsel %vm355_vm8, %v291_v55, %v419_v2  ;;  %v292_v48 = vadd.f32 %v1100_v7, %v225_v57  ;;  %v741_v60 = vunpack.c.h.bf16 %v941_v63  ;;  %v744_v5 = vunpack.c.l.bf16 %v942_v38 }
  0x75   :  { %969 = vst [vmem:[%s1405_s4 + $0xc8] sm:$0xff] %v882_v43   ;;  %v887_v6 = vpack.c.bf16 %v483_v4, %v482_v58  ;;  %v293_v8 = vadd.f32 %v1100_v7, %v226_v3  ;;  %v227_v61 = vmul.f32 %v740_v59, %v1085_v56  ;;  %v745_v9 = vunpack.c.h.bf16 %v942_v38 }
  0x76   :  { %vm356_vm9 = vcmp.ge.f32.partialorder %v292_v48, 0.0  ;;  %v420_v11 = vmul.f32 0.2, %v292_v48  ;;  %v228_v12 = vmul.f32 %v741_v60, %v1085_v56  ;;  %v229_v15 = vmul.f32 %v744_v5, %v1085_v56 }
  0x77   :  { %970 = vst [vmem:[%s1405_s4 + $0xd0] sm:$0xff] %v887_v6   ;;  %vm357_vm10 = vcmp.ge.f32.partialorder %v293_v8, 0.0  ;;  %v421_v16 = vmul.f32 0.2, %v293_v8  ;;  %v294_v17 = vadd.f32 %v1100_v7, %v227_v61  ;;  %v230_v18 = vmul.f32 %v745_v9, %v1085_v56 }
  0x78   :  { %v484_v19 = vsel %vm356_vm9, %v292_v48, %v420_v11  ;;  %v295_v20 = vadd.f32 %v1100_v7, %v228_v12  ;;  %v296_v13 = vadd.f32 %v1100_v7, %v229_v15  ;;  %v748_v21 = vunpack.c.l.bf16 %v943_v10 }
  0x79   :  { %v485_v22 = vsel %vm357_vm10, %v293_v8, %v421_v16  ;;  %vm358_vm11 = vcmp.ge.f32.partialorder %v294_v17, 0.0  ;;  %v422_v14 = vmul.f32 0.2, %v294_v17  ;;  %v297_v49 = vadd.f32 %v1100_v7, %v230_v18 }
  0x7a   :  { %v892_v23 = vpack.c.bf16 %v485_v22, %v484_v19  ;;  %vm359_vm12 = vcmp.ge.f32.partialorder %v295_v20, 0.0  ;;  %v423_v24 = vmul.f32 0.2, %v295_v20  ;;  %vm360_vm13 = vcmp.ge.f32.partialorder %v296_v13, 0.0 }
  0x7b   :  { %v486_v25 = vsel %vm358_vm11, %v294_v17, %v422_v14  ;;  %vm361_vm14 = vcmp.ge.f32.partialorder %v297_v49, 0.0  ;;  %v424_v42 = vmul.f32 0.2, %v296_v13  ;;  %v425_v27 = vmul.f32 0.2, %v297_v49 }
  0x7c   :  { %971 = vst [vmem:[%s1405_s4 + $0xd8] sm:$0xff] %v892_v23   ;;  %v487_v26 = vsel %vm359_vm12, %v295_v20, %v423_v24  ;;  %v749_v45 = vunpack.c.h.bf16 %v943_v10  ;;  %v231_v46 = vmul.f32 %v748_v21, %v1085_v56  ;;  %v752_v28 = vunpack.c.l.bf16 %v944_v62 }
  0x7d   :  { %v897_v32 = vpack.c.bf16 %v487_v26, %v486_v25  ;;  %v488_v47 = vsel %vm360_vm13, %v296_v13, %v424_v42  ;;  %v489_v29 = vsel %vm361_vm14, %v297_v49, %v425_v27  ;;  %v753_v51 = vunpack.c.h.bf16 %v944_v62 }
  0x7e   :  { %v902_v30 = vpack.c.bf16 %v489_v29, %v488_v47  ;;  %v232_v31 = vmul.f32 %v749_v45, %v1085_v56  ;;  %v298_v33 = vadd.f32 %v1100_v7, %v231_v46  ;;  %v233_v37 = vmul.f32 %v752_v28, %v1085_v56 }
  0x7f   :  { %972 = vst [vmem:[%s1405_s4 + $0xe0] sm:$0xff] %v897_v32   ;;  %v234_v52 = vmul.f32 %v753_v51, %v1085_v56 }
  0x80   :  { %973 = vst [vmem:[%s1405_s4 + $0xe8] sm:$0xff] %v902_v30   ;;  %v299_v34 = vadd.f32 %v1100_v7, %v232_v31  ;;  %vm362_vm15 = vcmp.ge.f32.partialorder %v298_v33, 0.0  ;;  %v426_v35 = vmul.f32 0.2, %v298_v33  ;;  %v300_v36 = vadd.f32 %v1100_v7, %v233_v37 }
  0x81   :  { %v301_v39 = vadd.f32 %v1100_v7, %v234_v52 }
  0x82   :  { %vm363_vm0 = vcmp.ge.f32.partialorder %v299_v34, 0.0  ;;  %v427_v40 = vmul.f32 0.2, %v299_v34  ;;  %v490_v41 = vsel %vm362_vm15, %v298_v33, %v426_v35  ;;  %vm364_vm1 = vcmp.ge.f32.partialorder %v300_v36, 0.0 }
  0x83   :  { %vm365_vm2 = vcmp.ge.f32.partialorder %v301_v39, 0.0  ;;  %v428_v44 = vmul.f32 0.2, %v300_v36  ;;  %v429_v50 = vmul.f32 0.2, %v301_v39 }
  0x84   :  { %v491_v56 = vsel %vm363_vm0, %v299_v34, %v427_v40 }
  0x85   :  { %v907_v55 = vpack.c.bf16 %v491_v56, %v490_v41  ;;  %v492_v63 = vsel %vm364_vm1, %v300_v36, %v428_v44  ;;  %v493_v0 = vsel %vm365_vm2, %v301_v39, %v429_v50 }
  0x86   :  { %v912_v1 = vpack.c.bf16 %v493_v0, %v492_v63 }
  0x87   :  { %974 = vst [vmem:[%s1405_s4 + $0xf0] sm:$0xff] %v907_v55  }
  0x88   :  { %975 = vst [vmem:[%s1405_s4 + $0xf8] sm:$0xff] %v912_v1  }

// kernel: discriminator_forward.11
= control target key start
LH: loop header
LB: loop body
LE: loop exit
PB: predicated region body
PF: predicated region fallthrough
CT: control target
= control target key end

     0   :  { %s896_s1 = inlined_call_operand.vmem [shape: bf16[256,128], index: 1, kind: input, shape index: {}]   ;;  %s897_s0 = inlined_call_operand.vmem [shape: bf16[128,256], index: 0, kind: input, shape index: {}]   ;;  %s898_s2 = inlined_call_operand.vmem [shape: bf16[128,128], index: 2, kind: output, shape index: {0}]   ;;  %s899_s3 = inlined_call_operand.vmem [shape: f32[8,128], index: 3, kind: output, shape index: {1}]  }
   0x1   :  { %v595_v0 = vld [vmem:[%s896_s1 + $0x38] sm:$0xff]  ;;  %v594_v2 = vld [vmem:[%s896_s1 + $0x30] sm:$0xff]  ;;  %v593_v4 = vld [vmem:[%s896_s1 + $0x28] sm:$0xff] }
   0x2   :  { %v603_v1 = vld [vmem:[%s896_s1 + $0x78] sm:$0xff]  ;;  %242 = vmatpush.bf16.msra.mxu0 %v595_v0  ;;  %v602_v3 = vld [vmem:[%s896_s1 + $0x70] sm:$0xff]  ;;  %651 = vmatpush.bf16.msra.mxu2 %v595_v0  ;;  %v601_v5 = vld [vmem:[%s896_s1 + $0x68] sm:$0xff] }
   0x3   :  { %291 = vmatpush.bf16.msra.mxu1 %v603_v1  ;;  %659 = vmatpush.bf16.msra.mxu3 %v603_v1  ;;  %v592_v6 = vld [vmem:[%s896_s1 + $0x20] sm:$0xff]  ;;  %v591_v8 = vld [vmem:[%s896_s1 + $0x18] sm:$0xff]  ;;  %v590_v10 = vld [vmem:[%s896_s1 + $0x10] sm:$0xff] }
   0x4   :  { %v600_v7 = vld [vmem:[%s896_s1 + $0x60] sm:$0xff]  ;;  %v599_v9 = vld [vmem:[%s896_s1 + $0x58] sm:$0xff]  ;;  %v598_v11 = vld [vmem:[%s896_s1 + $0x50] sm:$0xff] }
   0x5   :  { %v589_v12 = vld [vmem:[%s896_s1 + $0x8] sm:$0xff]  ;;  %v588_v14 = vld [vmem:[%s896_s1] sm:$0xff]  ;;  %v454_v28 = vld [vmem:[%s897_s0 + $0x10] sm:$0xf] }
   0x6   :  { %243 = vmatpush.bf16.msra.mxu0 %v594_v2  ;;  %652 = vmatpush.bf16.msra.mxu2 %v594_v2  ;;  %v597_v13 = vld [vmem:[%s896_s1 + $0x48] sm:$0xff]  ;;  %v596_v15 = vld [vmem:[%s896_s1 + $0x40] sm:$0xff]  ;;  %v575_v29 = vld [vmem:[%s897_s0 + $0x14] sm:$0xf0] }
   0x7   :  { %292 = vmatpush.bf16.msra.mxu1 %v602_v3  ;;  %660 = vmatpush.bf16.msra.mxu3 %v602_v3  ;;  %v446_v16 = vld [vmem:[%s897_s0] sm:$0xf]  ;;  %v573_v17 = vld [vmem:[%s897_s0 + $0x4] sm:$0xf0]  ;;  %v572_v18 = vld [vmem:[%s897_s0 + $0x4] sm:$0xf]  ;;  %v455_v36 = vor.u32 %v575_v29, %v454_v28 }
   0x8   :  { %v448_v19 = vld [vmem:[%s897_s0 + $0x8] sm:$0xf0]  ;;  %v478_v20 = vld [vmem:[%s897_s0 + $0x40] sm:$0xf]  ;;  %v581_v21 = vld [vmem:[%s897_s0 + $0x44] sm:$0xf0]  ;;  %v447_v24 = vor.u32 %v573_v17, %v446_v16 }
   0x9   :  { %v580_v22 = vld [vmem:[%s897_s0 + $0x44] sm:$0xf]  ;;  %v480_v23 = vld [vmem:[%s897_s0 + $0x48] sm:$0xf0]  ;;  %v451_v25 = vor.u32 %v572_v18, %v448_v19  ;;  %v479_v26 = vor.u32 %v581_v21, %v478_v20  ;;  %v574_v30 = vld [vmem:[%s897_s0 + $0x14] sm:$0xf] }
   0xa   :  { %244 = vmatpush.bf16.msra.mxu0 %v593_v4  ;;  %653 = vmatpush.bf16.msra.mxu2 %v593_v4  ;;  %v483_v27 = vor.u32 %v580_v22, %v480_v23  ;;  %v456_v31 = vld [vmem:[%s897_s0 + $0x18] sm:$0xf0]  ;;  %v486_v32 = vld [vmem:[%s897_s0 + $0x50] sm:$0xf]  ;;  %v583_v33 = vld [vmem:[%s897_s0 + $0x54] sm:$0xf0] }
   0xb   :  { %293 = vmatpush.bf16.msra.mxu1 %v601_v5  ;;  %661 = vmatpush.bf16.msra.mxu3 %v601_v5  ;;  %v582_v34 = vld [vmem:[%s897_s0 + $0x54] sm:$0xf]  ;;  %v488_v35 = vld [vmem:[%s897_s0 + $0x58] sm:$0xf0]  ;;  %v459_v37 = vor.u32 %v574_v30, %v456_v31  ;;  %v487_v38 = vor.u32 %v583_v33, %v486_v32  ;;  %v462_v40 = vld [vmem:[%s897_s0 + $0x20] sm:$0xf] }
   0xc   :  { %v491_v39 = vor.u32 %v582_v34, %v488_v35  ;;  %v577_v41 = vld [vmem:[%s897_s0 + $0x24] sm:$0xf0]  ;;  %v576_v42 = vld [vmem:[%s897_s0 + $0x24] sm:$0xf]  ;;  %v464_v43 = vld [vmem:[%s897_s0 + $0x28] sm:$0xf0] }
   0xd   :  { %v494_v44 = vld [vmem:[%s897_s0 + $0x60] sm:$0xf]  ;;  %v585_v45 = vld [vmem:[%s897_s0 + $0x64] sm:$0xf0]  ;;  %v584_v46 = vld [vmem:[%s897_s0 + $0x64] sm:$0xf]  ;;  %v463_v48 = vor.u32 %v577_v41, %v462_v40  ;;  %v467_v49 = vor.u32 %v576_v42, %v464_v43 }
   0xe   :  { %245 = vmatpush.bf16.msra.mxu0 %v592_v6  ;;  %654 = vmatpush.bf16.msra.mxu2 %v592_v6  ;;  %v496_v47 = vld [vmem:[%s897_s0 + $0x68] sm:$0xf0]  ;;  %v495_v50 = vor.u32 %v585_v45, %v494_v44  ;;  %v470_v52 = vld [vmem:[%s897_s0 + $0x30] sm:$0xf]  ;;  %v579_v53 = vld [vmem:[%s897_s0 + $0x34] sm:$0xf0] }
   0xf   :  { %294 = vmatpush.bf16.msra.mxu1 %v600_v7  ;;  %662 = vmatpush.bf16.msra.mxu3 %v600_v7  ;;  %v499_v51 = vor.u32 %v584_v46, %v496_v47  ;;  %v578_v54 = vld [vmem:[%s897_s0 + $0x34] sm:$0xf]  ;;  %v472_v55 = vld [vmem:[%s897_s0 + $0x38] sm:$0xf0]  ;;  %v502_v56 = vld [vmem:[%s897_s0 + $0x70] sm:$0xf]  ;;  %v471_v60 = vor.u32 %v579_v53, %v470_v52 }
  0x10   :  { %v587_v57 = vld [vmem:[%s897_s0 + $0x74] sm:$0xf0]  ;;  %v586_v58 = vld [vmem:[%s897_s0 + $0x74] sm:$0xf]  ;;  %v504_v59 = vld [vmem:[%s897_s0 + $0x78] sm:$0xf0]  ;;  %v475_v61 = vor.u32 %v578_v54, %v472_v55 }
  0x11   :  { %v503_v62 = vor.u32 %v587_v57, %v502_v56  ;;  %v507_v63 = vor.u32 %v586_v58, %v504_v59 }
  0x12   :  { %246 = vmatpush.bf16.msra.mxu0 %v591_v8  ;;  %655 = vmatpush.bf16.msra.mxu2 %v591_v8 }
  0x13   :  { %295 = vmatpush.bf16.msra.mxu1 %v599_v9  ;;  %663 = vmatpush.bf16.msra.mxu3 %v599_v9 }
  0x16   :  { %247 = vmatpush.bf16.msra.mxu0 %v590_v10  ;;  %656 = vmatpush.bf16.msra.mxu2 %v590_v10 }
  0x17   :  { %296 = vmatpush.bf16.msra.mxu1 %v598_v11  ;;  %664 = vmatpush.bf16.msra.mxu3 %v598_v11 }
  0x1a   :  { %248 = vmatpush.bf16.msra.mxu0 %v589_v12  ;;  %657 = vmatpush.bf16.msra.mxu2 %v589_v12 }
  0x1b   :  { %297 = vmatpush.bf16.msra.mxu1 %v597_v13  ;;  %665 = vmatpush.bf16.msra.mxu3 %v597_v13 }
  0x1e   :  { %249 = vmatpush.bf16.msra.mxu0 %v588_v14  ;;  %658 = vmatpush.bf16.msra.mxu2 %v588_v14 }
  0x1f   :  { %298 = vmatpush.bf16.msra.mxu1 %v596_v15  ;;  %666 = vmatpush.bf16.msra.mxu3 %v596_v15 }
  0x21   :  { %250 = vmatmul.bf16.vlgmr.msra.gmra.mxu0 %v447_v24  ;;  %270 = vmatmul.bf16.vlgmr.msra.gmra.mxu2 %v479_v26 }
  0x22   :  { %299 = vmatmul.bf16.vlgmr.msra.gmra.mxu1 %v451_v25  ;;  %319 = vmatmul.bf16.vlgmr.msra.gmra.mxu3 %v483_v27 }
  0x31   :  { %255 = vmatmul.bf16.gmra.mxu0 %v455_v36  ;;  %275 = vmatmul.bf16.gmra.mxu2 %v487_v38 }
  0x32   :  { %304 = vmatmul.bf16.gmra.mxu1 %v459_v37  ;;  %324 = vmatmul.bf16.gmra.mxu3 %v491_v39  ;;  %v668_v37 = vmov 0.0  }
  0x33   :  { %17 = vst [vmem:[%s899_s3] sm:$0xff] %v668_v37 }
  0x41   :  { %260 = vmatmul.bf16.gmra.mxu0 %v463_v48  ;;  %280 = vmatmul.bf16.gmra.mxu2 %v495_v50 }
  0x42   :  { %309 = vmatmul.bf16.gmra.mxu1 %v467_v49  ;;  %329 = vmatmul.bf16.gmra.mxu3 %v499_v51 }
  0x51   :  { %265 = vmatmul.bf16.gmra.mxu0 %v471_v60  ;;  %285 = vmatmul.bf16.gmra.mxu2 %v503_v62 }
  0x52   :  { %314 = vmatmul.bf16.gmra.mxu1 %v475_v61  ;;  %334 = vmatmul.bf16.gmra.mxu3 %v507_v63 }
  0x9e   :  { %v251_v0 = vpop.f32.mrf.mxu0 }
  0x9f   :  { %v300_v1 = vpop.f32.mrf.mxu1 }
  0xa0   :  { %v301_v6 = vadd.f32 %v300_v1, %v251_v0 }
  0xa2   :  { %v397_v40 = vmul.f32 %v301_v6, %v301_v6 }
  0xa4   :  { %v271_v2 = vpop.f32.mrf.mxu2 }
  0xa5   :  { %v320_v3 = vpop.f32.mrf.mxu3 }
  0xa6   :  { %v253_v4 = vpop.f32.mrf.mxu0  ;;  %v836_v9 = vadd.f32 %v320_v3, %v271_v2 }
  0xa7   :  { %v302_v5 = vpop.f32.mrf.mxu1 }
  0xa8   :  { %v303_v7 = vadd.f32 %v302_v5, %v253_v4 }
  0xaa   :  { %v607_v8 = vpack.c.bf16 %v303_v7, %v301_v6  ;;  %v398_v38 = vmul.f32 %v303_v7, %v303_v7  ;;  %v373_v41 = vadd.f32 %v303_v7, %v301_v6 }
  0xac   :  { %608 = vst [vmem:[%s898_s2] sm:$0xff] %v607_v8   ;;  %v273_v10 = vpop.f32.mrf.mxu2  ;;  %v413_v48 = vadd.f32 %v398_v38, %v397_v40 }
  0xad   :  { %v322_v11 = vpop.f32.mrf.mxu3 }
  0xae   :  { %v256_v12 = vpop.f32.mrf.mxu0  ;;  %v838_v14 = vadd.f32 %v322_v11, %v273_v10  ;;  %v405_v10 = vmul.f32 %v836_v9, %v836_v9 }
  0xaf   :  { %v305_v13 = vpop.f32.mrf.mxu1 }
  0xb0   :  { %v627_v15 = vpack.c.bf16 %v838_v14, %v836_v9  ;;  %v306_v20 = vadd.f32 %v305_v13, %v256_v12 }
  0xb2   :  { %647 = vst [vmem:[%s898_s2 + $0x20] sm:$0xff] %v627_v15   ;;  %v399_v42 = vmul.f32 %v306_v20, %v306_v20  ;;  %v374_v49 = vadd.f32 %v373_v41, %v306_v20  ;;  %v406_v15 = vmul.f32 %v838_v14, %v838_v14 }
  0xb4   :  { %v276_v16 = vpop.f32.mrf.mxu2  ;;  %v414_v52 = vadd.f32 %v413_v48, %v399_v42 }
  0xb5   :  { %v325_v17 = vpop.f32.mrf.mxu3 }
  0xb6   :  { %v258_v18 = vpop.f32.mrf.mxu0  ;;  %v848_v23 = vadd.f32 %v325_v17, %v276_v16 }
  0xb7   :  { %v307_v19 = vpop.f32.mrf.mxu1 }
  0xb8   :  { %v308_v21 = vadd.f32 %v307_v19, %v258_v18 }
  0xba   :  { %v612_v22 = vpack.c.bf16 %v308_v21, %v306_v20  ;;  %v400_v50 = vmul.f32 %v308_v21, %v308_v21  ;;  %v375_v53 = vadd.f32 %v374_v49, %v308_v21  ;;  %v407_v21 = vmul.f32 %v848_v23, %v848_v23 }
  0xbc   :  { %644 = vst [vmem:[%s898_s2 + $0x8] sm:$0xff] %v612_v22   ;;  %v278_v24 = vpop.f32.mrf.mxu2  ;;  %v415_v56 = vadd.f32 %v414_v52, %v400_v50 }
  0xbd   :  { %v327_v25 = vpop.f32.mrf.mxu3 }
  0xbe   :  { %v261_v26 = vpop.f32.mrf.mxu0  ;;  %v850_v28 = vadd.f32 %v327_v25, %v278_v24 }
  0xbf   :  { %v310_v27 = vpop.f32.mrf.mxu1 }
  0xc0   :  { %v632_v29 = vpack.c.bf16 %v850_v28, %v848_v23  ;;  %v311_v34 = vadd.f32 %v310_v27, %v261_v26 }
  0xc2   :  { %648 = vst [vmem:[%s898_s2 + $0x28] sm:$0xff] %v632_v29   ;;  %v401_v54 = vmul.f32 %v311_v34, %v311_v34  ;;  %v376_v57 = vadd.f32 %v375_v53, %v311_v34 }
  0xc4   :  { %v281_v30 = vpop.f32.mrf.mxu2  ;;  %v416_v59 = vadd.f32 %v415_v56, %v401_v54 }
  0xc5   :  { %v330_v31 = vpop.f32.mrf.mxu3 }
  0xc6   :  { %v263_v32 = vpop.f32.mrf.mxu0  ;;  %v331_v39 = vadd.f32 %v330_v31, %v281_v30 }
  0xc7   :  { %v312_v33 = vpop.f32.mrf.mxu1 }
  0xc8   :  { %v313_v35 = vadd.f32 %v312_v33, %v263_v32 }
  0xca   :  { %v617_v36 = vpack.c.bf16 %v313_v35, %v311_v34  ;;  %v402_v58 = vmul.f32 %v313_v35, %v313_v35  ;;  %v377_v60 = vadd.f32 %v376_v57, %v313_v35 }
  0xcc   :  { %645 = vst [vmem:[%s898_s2 + $0x10] sm:$0xff] %v617_v36   ;;  %v283_v43 = vpop.f32.mrf.mxu2  ;;  %v417_v2 = vadd.f32 %v416_v59, %v402_v58 }
  0xcd   :  { %v332_v44 = vpop.f32.mrf.mxu3 }
  0xce   :  { %v266_v45 = vpop.f32.mrf.mxu0  ;;  %v333_v47 = vadd.f32 %v332_v44, %v283_v43 }
  0xcf   :  { %v315_v46 = vpop.f32.mrf.mxu1 }
  0xd0   :  { %v637_v51 = vpack.c.bf16 %v333_v47, %v331_v39  ;;  %v316_v55 = vadd.f32 %v315_v46, %v266_v45  ;;  %v410_v31 = vmul.f32 %v333_v47, %v333_v47 }
  0xd2   :  { %649 = vst [vmem:[%s898_s2 + $0x30] sm:$0xff] %v637_v51   ;;  %v403_v61 = vmul.f32 %v316_v55, %v316_v55  ;;  %v378_v3 = vadd.f32 %v377_v60, %v316_v55  ;;  %v396_v51 = vld [vmem:[%s899_s3 + $0x1] sm:$0x1] }
  0xd4   :  { %v286_v62 = vpop.f32.mrf.mxu2  ;;  %v418_v5 = vadd.f32 %v417_v2, %v403_v61 }
  0xd5   :  { %v335_v63 = vpop.f32.mrf.mxu3 }
  0xd6   :  { %v268_v0 = vpop.f32.mrf.mxu0  ;;  %v336_v13 = vadd.f32 %v335_v63, %v286_v62 }
  0xd7   :  { %v317_v1 = vpop.f32.mrf.mxu1 }
  0xd8   :  { %v318_v4 = vadd.f32 %v317_v1, %v268_v0 }
  0xda   :  { %v622_v6 = vpack.c.bf16 %v318_v4, %v316_v55  ;;  %v379_v7 = vadd.f32 %v378_v3, %v318_v4  ;;  %v404_v8 = vmul.f32 %v318_v4, %v318_v4 }
  0xdc   :  { %646 = vst [vmem:[%s898_s2 + $0x18] sm:$0xff] %v622_v6   ;;  %v380_v11 = vadd.f32 %v379_v7, %v836_v9  ;;  %v419_v12 = vadd.f32 %v418_v5, %v404_v8  ;;  %v288_v18 = vpop.f32.mrf.mxu2  ;;  %v408_v9 = vmul.f32 %v850_v28, %v850_v28 }
  0xdd   :  { %v337_v19 = vpop.f32.mrf.mxu3 }
  0xde   :  { %v381_v16 = vadd.f32 %v380_v11, %v838_v14  ;;  %v420_v17 = vadd.f32 %v419_v12, %v405_v10  ;;  %v338_v20 = vadd.f32 %v337_v19, %v288_v18  ;;  %v409_v14 = vmul.f32 %v331_v39, %v331_v39 }
  0xe0   :  { %v382_v22 = vadd.f32 %v381_v16, %v848_v23  ;;  %v421_v24 = vadd.f32 %v420_v17, %v406_v15  ;;  %v642_v25 = vpack.c.bf16 %v338_v20, %v336_v13  ;;  %v411_v23 = vmul.f32 %v336_v13, %v336_v13 }
  0xe1   :  { %v412_v38 = vmul.f32 %v338_v20, %v338_v20 }
  0xe2   :  { %v422_v26 = vadd.f32 %v421_v24, %v407_v21  ;;  %v383_v27 = vadd.f32 %v382_v22, %v850_v28  ;;  %650 = vst [vmem:[%s898_s2 + $0x38] sm:$0xff] %v642_v25  }
  0xe4   :  { %v384_v29 = vadd.f32 %v383_v27, %v331_v39  ;;  %v423_v30 = vadd.f32 %v422_v26, %v408_v9 }
  0xe6   :  { %v385_v32 = vadd.f32 %v384_v29, %v333_v47  ;;  %v424_v33 = vadd.f32 %v423_v30, %v409_v14  ;;  %v372_v47 = vld [vmem:[%s899_s3] sm:$0x1] }
  0xe8   :  { %v386_v34 = vadd.f32 %v385_v32, %v336_v13  ;;  %v425_v35 = vadd.f32 %v424_v33, %v410_v31 }
  0xea   :  { %v426_v36 = vadd.f32 %v425_v35, %v411_v23  ;;  %v387_v37 = vadd.f32 %v386_v34, %v338_v20 }
  0xec   :  { %v388_v40 = vrot.slane %v387_v37, 4  ;;  %v427_v41 = vadd.f32 %v426_v36, %v412_v38 }
  0xee   :  { %v389_v42 = vadd.f32 %v388_v40, %v387_v37  ;;  %v428_v28 = vrot.slane %v427_v41, 4 }
  0xf0   :  { %v390_v43 = vrot.slane %v389_v42, 2  ;;  %v429_v44 = vadd.f32 %v428_v28, %v427_v41 }
  0xf2   :  { %v391_v45 = vadd.f32 %v390_v43, %v389_v42  ;;  %v430_v46 = vrot.slane %v429_v44, 2 }
  0xf4   :  { %v392_v48 = vrot.slane %v391_v45, 1  ;;  %v431_v39 = vadd.f32 %v430_v46, %v429_v44 }
  0xf6   :  { %v393_v49 = vadd.f32 %v392_v48, %v391_v45  ;;  %v432_v50 = vrot.slane %v431_v39, 1 }
  0xf8   :  { %v394_v52 = vadd.f32 %v393_v49, %v372_v47  ;;  %v433_v53 = vadd.f32 %v432_v50, %v431_v39 }
  0xfa   :  { %395 = vst [vmem:[%s899_s3] sm:$0x1] %v394_v52  ;;  %v434_v54 = vadd.f32 %v433_v53, %v396_v51 }
  0xfc   :  { %435 = vst [vmem:[%s899_s3 + $0x1] sm:$0x1] %v434_v54 }

// kernel: discriminator_forward.12
= control target key start
LH: loop header
LB: loop body
LE: loop exit
PB: predicated region body
PF: predicated region fallthrough
CT: control target
= control target key end

     0   :  { %s411_s1 = inlined_call_operand.vmem [shape: f32[8,128], index: 1, kind: input, shape index: {}]   ;;  %s412_s0 = inlined_call_operand.vmem [shape: bf16[128,128], index: 0, kind: input, shape index: {}]   ;;  %s413_s2 = inlined_call_operand.vmem [shape: f32[1,128], index: 2, kind: input, shape index: {}]   ;;  %s414_s3 = inlined_call_operand.vmem [shape: f32[1,128], index: 3, kind: input, shape index: {}]   ;;  %s415_s4 = inlined_call_operand.vmem [shape: bf16[128,128], index: 4, kind: output, shape index: {}]  }
   0x1   :  { %v49_v0 = vld [vmem:[%s411_s1] sm:$0x1]  ;;  %v51_v1 = vld [vmem:[%s411_s1 + $0x1] sm:$0x1]  ;;  %v266_v14 = vld [vmem:[%s412_s0 + $0x8] sm:$0xff]  }
   0x2   :  { %v50_v2 = vmul.f32 0.0078125, %v49_v0  ;;  %v52_v3 = vmul.f32 0.0078125, %v51_v1  ;;  %v195_v13 = vld [vmem:[%s412_s0] sm:$0xff]   ;;  %v267_v17 = vld [vmem:[%s412_s0 + $0x10] sm:$0xff]   ;;  %v268_v18 = vld [vmem:[%s412_s0 + $0x18] sm:$0xff]   ;;  %v200_v23 = vunpack.c.l.bf16 %v266_v14  ;;  %v201_v26 = vunpack.c.h.bf16 %v266_v14 }
   0x3   :  { %v67_v16 = vld [vmem:[%s413_s2] sm:$0x1]  ;;  %v196_v20 = vunpack.c.l.bf16 %v195_v13  ;;  %v197_v21 = vunpack.c.h.bf16 %v195_v13  ;;  %v270_v24 = vld [vmem:[%s412_s0 + $0x28] sm:$0xff]   ;;  %v204_v27 = vunpack.c.l.bf16 %v267_v17  ;;  %v205_v28 = vunpack.c.h.bf16 %v267_v17  ;;  %v271_v29 = vld [vmem:[%s412_s0 + $0x30] sm:$0xff]  }
   0x4   :  { %v53_v4 = vmul.f32 %v50_v2, %v50_v2  ;;  %v269_v19 = vld [vmem:[%s412_s0 + $0x20] sm:$0xff]   ;;  %v340_v30 = vld [vmem:[%s412_s0 + $0x38] sm:$0xff]   ;;  %v208_v32 = vunpack.c.l.bf16 %v268_v18  ;;  %v209_v33 = vunpack.c.h.bf16 %v268_v18  ;;  %v216_v38 = vunpack.c.l.bf16 %v270_v24 }
   0x5   :  { %v69_v31 = vld [vmem:[%s414_s3] sm:$0x1]  ;;  %v212_v34 = vunpack.c.l.bf16 %v269_v19  ;;  %v213_v35 = vunpack.c.h.bf16 %v269_v19  ;;  %v217_v39 = vunpack.c.h.bf16 %v270_v24  ;;  %v220_v40 = vunpack.c.l.bf16 %v271_v29 }
   0x6   :  { %v54_v5 = vsub.f32 %v52_v3, %v53_v4  ;;  %v221_v41 = vunpack.c.h.bf16 %v271_v29  ;;  %v224_v42 = vunpack.c.l.bf16 %v340_v30  ;;  %v225_v43 = vunpack.c.h.bf16 %v340_v30 }
   0x8   :  { %v55_v6 = vmax.f32 %v54_v5, 0.0 }
   0xa   :  { %v56_v7 = vadd.f32 1e-05, %v55_v6 }
   0xc   :  { %280 = vrsqrt.f32 %v56_v7  ;;  %vm63_vm0 = vweird.f32 %v56_v7 }
  0x12   :  { %v281_v8 = vpop.eup %280 }
  0x13   :  { %v58_v9 = vmul.f32 %v281_v8, %v56_v7  ;;  %vm64_vm1 = vweird.f32 %v281_v8 }
  0x14   :  { %vm65_vm2 = vmor %vm63_vm0, %vm64_vm1 }
  0x15   :  { %v59_v10 = vmul.f32 %v281_v8, %v58_v9 }
  0x17   :  { %v60_v11 = vmul.f32 0.5, %v59_v10 }
  0x19   :  { %v61_v12 = vsub.f32 1.5, %v60_v11 }
  0x1b   :  { %v62_v15 = vmul.f32 %v281_v8, %v61_v12 }
  0x1d   :  { %v66_v22 = vsel %vm65_vm2, %v281_v8, %v62_v15 }
  0x1e   :  { %v68_v25 = vmul.f32 %v67_v16, %v66_v22 }
  0x20   :  { %v70_v36 = vmul.f32 %v68_v25, %v50_v2  ;;  %v345_v37 = vperm.slane %v68_v25, 0 }
  0x22   :  { %v71_v44 = vsub.f32 %v69_v31, %v70_v36  ;;  %v75_v45 = vmul.f32 %v196_v20, %v345_v37  ;;  %v76_v46 = vmul.f32 %v197_v21, %v345_v37  ;;  %v77_v47 = vmul.f32 %v200_v23, %v345_v37 }
  0x23   :  { %v78_v48 = vmul.f32 %v201_v26, %v345_v37  ;;  %v79_v49 = vmul.f32 %v204_v27, %v345_v37  ;;  %v80_v50 = vmul.f32 %v205_v28, %v345_v37  ;;  %v81_v51 = vmul.f32 %v208_v32, %v345_v37 }
  0x24   :  { %v356_v52 = vperm.slane %v71_v44, 0  ;;  %v82_v53 = vmul.f32 %v209_v33, %v345_v37  ;;  %v83_v54 = vmul.f32 %v212_v34, %v345_v37  ;;  %v84_v55 = vmul.f32 %v213_v35, %v345_v37 }
  0x25   :  { %v85_v56 = vmul.f32 %v216_v38, %v345_v37  ;;  %v86_v57 = vmul.f32 %v217_v39, %v345_v37  ;;  %v87_v58 = vmul.f32 %v220_v40, %v345_v37  ;;  %v88_v59 = vmul.f32 %v221_v41, %v345_v37 }
  0x26   :  { %v94_v60 = vadd.f32 %v356_v52, %v75_v45  ;;  %v95_v61 = vadd.f32 %v356_v52, %v76_v46  ;;  %v96_v62 = vadd.f32 %v356_v52, %v77_v47  ;;  %v97_v63 = vadd.f32 %v356_v52, %v78_v48 }
  0x27   :  { %v98_v0 = vadd.f32 %v356_v52, %v79_v49  ;;  %v99_v1 = vadd.f32 %v356_v52, %v80_v50  ;;  %v100_v2 = vadd.f32 %v356_v52, %v81_v51  ;;  %v101_v3 = vadd.f32 %v356_v52, %v82_v53 }
  0x28   :  { %vm110_vm3 = vcmp.ge.f32.partialorder %v94_v60, 0.0  ;;  %vm111_vm4 = vcmp.ge.f32.partialorder %v95_v61, 0.0  ;;  %v126_v4 = vmul.f32 0.2, %v94_v60  ;;  %v127_v5 = vmul.f32 0.2, %v95_v61 }
  0x29   :  { %vm112_vm5 = vcmp.ge.f32.partialorder %v96_v62, 0.0  ;;  %vm113_vm6 = vcmp.ge.f32.partialorder %v97_v63, 0.0  ;;  %v128_v6 = vmul.f32 0.2, %v96_v62  ;;  %v129_v7 = vmul.f32 0.2, %v97_v63 }
  0x2a   :  { %v142_v8 = vsel %vm110_vm3, %v94_v60, %v126_v4  ;;  %v143_v9 = vsel %vm111_vm4, %v95_v61, %v127_v5  ;;  %vm114_vm7 = vcmp.ge.f32.partialorder %v98_v0, 0.0  ;;  %vm115_vm8 = vcmp.ge.f32.partialorder %v99_v1, 0.0 }
  0x2b   :  { %v229_v10 = vpack.c.bf16 %v143_v9, %v142_v8  ;;  %v144_v11 = vsel %vm112_vm5, %v96_v62, %v128_v6  ;;  %v145_v12 = vsel %vm113_vm6, %v97_v63, %v129_v7  ;;  %v130_v13 = vmul.f32 0.2, %v98_v0 }
  0x2c   :  { %v234_v14 = vpack.c.bf16 %v145_v12, %v144_v11  ;;  %v131_v15 = vmul.f32 0.2, %v99_v1  ;;  %vm116_vm9 = vcmp.ge.f32.partialorder %v100_v2, 0.0  ;;  %vm117_vm10 = vcmp.ge.f32.partialorder %v101_v3, 0.0 }
  0x2d   :  { %230 = vst [vmem:[%s415_s4] sm:$0xff] %v229_v10   ;;  %v146_v16 = vsel %vm114_vm7, %v98_v0, %v130_v13  ;;  %v132_v17 = vmul.f32 0.2, %v100_v2  ;;  %v133_v18 = vmul.f32 0.2, %v101_v3  ;;  %v102_v19 = vadd.f32 %v356_v52, %v83_v54 }
  0x2e   :  { %273 = vst [vmem:[%s415_s4 + $0x8] sm:$0xff] %v234_v14   ;;  %v147_v20 = vsel %vm115_vm8, %v99_v1, %v131_v15  ;;  %v103_v21 = vadd.f32 %v356_v52, %v84_v55  ;;  %v104_v22 = vadd.f32 %v356_v52, %v85_v56  ;;  %v105_v23 = vadd.f32 %v356_v52, %v86_v57 }
  0x2f   :  { %v239_v24 = vpack.c.bf16 %v147_v20, %v146_v16  ;;  %v148_v25 = vsel %vm116_vm9, %v100_v2, %v132_v17  ;;  %v149_v26 = vsel %vm117_vm10, %v101_v3, %v133_v18  ;;  %vm118_vm11 = vcmp.ge.f32.partialorder %v102_v19, 0.0 }
  0x30   :  { %v244_v27 = vpack.c.bf16 %v149_v26, %v148_v25  ;;  %vm119_vm12 = vcmp.ge.f32.partialorder %v103_v21, 0.0  ;;  %v134_v28 = vmul.f32 0.2, %v102_v19  ;;  %v135_v29 = vmul.f32 0.2, %v103_v21 }
  0x31   :  { %274 = vst [vmem:[%s415_s4 + $0x10] sm:$0xff] %v239_v24   ;;  %vm120_vm13 = vcmp.ge.f32.partialorder %v104_v22, 0.0  ;;  %vm121_vm14 = vcmp.ge.f32.partialorder %v105_v23, 0.0  ;;  %v136_v31 = vmul.f32 0.2, %v104_v22  ;;  %v106_v32 = vadd.f32 %v356_v52, %v87_v58 }
  0x32   :  { %275 = vst [vmem:[%s415_s4 + $0x18] sm:$0xff] %v244_v27   ;;  %v150_v33 = vsel %vm118_vm11, %v102_v19, %v134_v28  ;;  %v151_v34 = vsel %vm119_vm12, %v103_v21, %v135_v29  ;;  %v137_v35 = vmul.f32 0.2, %v105_v23  ;;  %v107_v36 = vadd.f32 %v356_v52, %v88_v59 }
  0x33   :  { %v249_v38 = vpack.c.bf16 %v151_v34, %v150_v33  ;;  %v152_v39 = vsel %vm120_vm13, %v104_v22, %v136_v31  ;;  %vm122_vm15 = vcmp.ge.f32.partialorder %v106_v32, 0.0  ;;  %v138_v40 = vmul.f32 0.2, %v106_v32 }
  0x34   :  { %v153_v41 = vsel %vm121_vm14, %v105_v23, %v137_v35  ;;  %vm123_vm0 = vcmp.ge.f32.partialorder %v107_v36, 0.0  ;;  %v139_v44 = vmul.f32 0.2, %v107_v36  ;;  %v89_v45 = vmul.f32 %v224_v42, %v345_v37 }
  0x35   :  { %276 = vst [vmem:[%s415_s4 + $0x20] sm:$0xff] %v249_v38   ;;  %v254_v46 = vpack.c.bf16 %v153_v41, %v152_v39  ;;  %v154_v47 = vsel %vm122_vm15, %v106_v32, %v138_v40  ;;  %v90_v48 = vmul.f32 %v225_v43, %v345_v37 }
  0x36   :  { %v155_v49 = vsel %vm123_vm0, %v107_v36, %v139_v44  ;;  %v108_v50 = vadd.f32 %v356_v52, %v89_v45 }
  0x37   :  { %277 = vst [vmem:[%s415_s4 + $0x28] sm:$0xff] %v254_v46   ;;  %v259_v51 = vpack.c.bf16 %v155_v49, %v154_v47  ;;  %v109_v42 = vadd.f32 %v356_v52, %v90_v48 }
  0x38   :  { %vm124_vm1 = vcmp.ge.f32.partialorder %v108_v50, 0.0  ;;  %v140_v53 = vmul.f32 0.2, %v108_v50 }
  0x39   :  { %278 = vst [vmem:[%s415_s4 + $0x30] sm:$0xff] %v259_v51   ;;  %vm125_vm2 = vcmp.ge.f32.partialorder %v109_v42, 0.0  ;;  %v141_v54 = vmul.f32 0.2, %v109_v42 }
  0x3a   :  { %v156_v30 = vsel %vm124_vm1, %v108_v50, %v140_v53 }
  0x3b   :  { %v157_v37 = vsel %vm125_vm2, %v109_v42, %v141_v54 }
  0x3c   :  { %v264_v43 = vpack.c.bf16 %v157_v37, %v156_v30 }
  0x3e   :  { %279 = vst [vmem:[%s415_s4 + $0x38] sm:$0xff] %v264_v43  }

// kernel: discriminator_forward.13
= control target key start
LH: loop header
LB: loop body
LE: loop exit
PB: predicated region body
PF: predicated region fallthrough
CT: control target
= control target key end

     0   :  { %v654_v58 = vmov 0.0   ;;  %s840_s1 = inlined_call_operand.vmem [shape: bf16[512,128], index: 1, kind: input, shape index: {}]   ;;  %s841_s0 = inlined_call_operand.vmem [shape: bf16[32,512], index: 0, kind: input, shape index: {}]   ;;  %s842_s3 = inlined_call_operand.vmem [shape: f32[8,128], index: 3, kind: output, shape index: {1}]   ;;  %s843_s2 = inlined_call_operand.vmem [shape: bf16[32,128], index: 2, kind: output, shape index: {0}]  }
   0x1   :  { %v617_v0 = vld [vmem:[%s840_s1 + $0x38] sm:$0xff]  ;;  %v616_v4 = vld [vmem:[%s840_s1 + $0x30] sm:$0xff]  ;;  %v615_v8 = vld [vmem:[%s840_s1 + $0x28] sm:$0xff]  ;;  %17 = vst [vmem:[%s842_s3] sm:$0xff] %v654_v58 }
   0x2   :  { %v625_v1 = vld [vmem:[%s840_s1 + $0x78] sm:$0xff]  ;;  %322 = vmatpush.bf16.msra.mxu0 %v617_v0  ;;  %v624_v5 = vld [vmem:[%s840_s1 + $0x70] sm:$0xff]  ;;  %v623_v9 = vld [vmem:[%s840_s1 + $0x68] sm:$0xff] }
   0x3   :  { %v633_v2 = vld [vmem:[%s840_s1 + $0xb8] sm:$0xff]  ;;  %341 = vmatpush.bf16.msra.mxu1 %v625_v1  ;;  %v632_v6 = vld [vmem:[%s840_s1 + $0xb0] sm:$0xff]  ;;  %v631_v10 = vld [vmem:[%s840_s1 + $0xa8] sm:$0xff] }
   0x4   :  { %v641_v3 = vld [vmem:[%s840_s1 + $0xf8] sm:$0xff]  ;;  %360 = vmatpush.bf16.msra.mxu2 %v633_v2  ;;  %v640_v7 = vld [vmem:[%s840_s1 + $0xf0] sm:$0xff]  ;;  %v639_v11 = vld [vmem:[%s840_s1 + $0xe8] sm:$0xff] }
   0x5   :  { %379 = vmatpush.bf16.msra.mxu3 %v641_v3  ;;  %v614_v12 = vld [vmem:[%s840_s1 + $0x20] sm:$0xff]  ;;  %v613_v16 = vld [vmem:[%s840_s1 + $0x18] sm:$0xff]  ;;  %v612_v20 = vld [vmem:[%s840_s1 + $0x10] sm:$0xff] }
   0x6   :  { %323 = vmatpush.bf16.msra.mxu0 %v616_v4  ;;  %v622_v13 = vld [vmem:[%s840_s1 + $0x60] sm:$0xff]  ;;  %v621_v17 = vld [vmem:[%s840_s1 + $0x58] sm:$0xff]  ;;  %v620_v21 = vld [vmem:[%s840_s1 + $0x50] sm:$0xff] }
   0x7   :  { %342 = vmatpush.bf16.msra.mxu1 %v624_v5  ;;  %v630_v14 = vld [vmem:[%s840_s1 + $0xa0] sm:$0xff]  ;;  %v629_v18 = vld [vmem:[%s840_s1 + $0x98] sm:$0xff]  ;;  %v628_v22 = vld [vmem:[%s840_s1 + $0x90] sm:$0xff] }
   0x8   :  { %361 = vmatpush.bf16.msra.mxu2 %v632_v6  ;;  %v638_v15 = vld [vmem:[%s840_s1 + $0xe0] sm:$0xff]  ;;  %v637_v19 = vld [vmem:[%s840_s1 + $0xd8] sm:$0xff]  ;;  %v636_v23 = vld [vmem:[%s840_s1 + $0xd0] sm:$0xff] }
   0x9   :  { %380 = vmatpush.bf16.msra.mxu3 %v640_v7  ;;  %v611_v24 = vld [vmem:[%s840_s1 + $0x8] sm:$0xff]  ;;  %v610_v28 = vld [vmem:[%s840_s1] sm:$0xff]  ;;  %v604_v33 = vld [vmem:[%s841_s0 + $0xc] sm:$0xf0] }
   0xa   :  { %324 = vmatpush.bf16.msra.mxu0 %v615_v8  ;;  %v619_v25 = vld [vmem:[%s840_s1 + $0x48] sm:$0xff]  ;;  %v618_v29 = vld [vmem:[%s840_s1 + $0x40] sm:$0xff]  ;;  %v446_v35 = vld [vmem:[%s841_s0 + $0x10] sm:$0xf0] }
   0xb   :  { %343 = vmatpush.bf16.msra.mxu1 %v623_v9  ;;  %v627_v26 = vld [vmem:[%s840_s1 + $0x88] sm:$0xff]  ;;  %v626_v30 = vld [vmem:[%s840_s1 + $0x80] sm:$0xff]  ;;  %v605_v37 = vld [vmem:[%s841_s0 + $0x14] sm:$0xf0] }
   0xc   :  { %362 = vmatpush.bf16.msra.mxu2 %v631_v10  ;;  %v635_v27 = vld [vmem:[%s840_s1 + $0xc8] sm:$0xff]  ;;  %v634_v31 = vld [vmem:[%s840_s1 + $0xc0] sm:$0xff]  ;;  %v454_v39 = vld [vmem:[%s841_s0 + $0x18] sm:$0xf0] }
   0xd   :  { %381 = vmatpush.bf16.msra.mxu3 %v639_v11  ;;  %v444_v32 = vld [vmem:[%s841_s0] sm:$0xf]  ;;  %v602_v34 = vld [vmem:[%s841_s0 + $0x4] sm:$0xf]  ;;  %v452_v36 = vld [vmem:[%s841_s0 + $0x8] sm:$0xf] }
   0xe   :  { %325 = vmatpush.bf16.msra.mxu0 %v614_v12  ;;  %v603_v38 = vld [vmem:[%s841_s0 + $0xc] sm:$0xf]  ;;  %v445_v40 = vor.u32 %v604_v33, %v444_v32  ;;  %v449_v41 = vor.u32 %v602_v34, %v446_v35  ;;  %v453_v42 = vor.u32 %v605_v37, %v452_v36  ;;  %v460_v44 = vld [vmem:[%s841_s0 + $0x20] sm:$0xf]  ;;  %v608_v45 = vld [vmem:[%s841_s0 + $0x2c] sm:$0xf0] }
   0xf   :  { %344 = vmatpush.bf16.msra.mxu1 %v622_v13  ;;  %v457_v43 = vor.u32 %v603_v38, %v454_v39  ;;  %v606_v46 = vld [vmem:[%s841_s0 + $0x24] sm:$0xf]  ;;  %v462_v47 = vld [vmem:[%s841_s0 + $0x30] sm:$0xf0]  ;;  %v468_v48 = vld [vmem:[%s841_s0 + $0x28] sm:$0xf]  ;;  %v461_v52 = vor.u32 %v608_v45, %v460_v44 }
  0x10   :  { %363 = vmatpush.bf16.msra.mxu2 %v630_v14  ;;  %v609_v49 = vld [vmem:[%s841_s0 + $0x34] sm:$0xf0]  ;;  %v607_v50 = vld [vmem:[%s841_s0 + $0x2c] sm:$0xf]  ;;  %v470_v51 = vld [vmem:[%s841_s0 + $0x38] sm:$0xf0]  ;;  %v465_v53 = vor.u32 %v606_v46, %v462_v47 }
  0x11   :  { %382 = vmatpush.bf16.msra.mxu3 %v638_v15  ;;  %v469_v54 = vor.u32 %v609_v49, %v468_v48  ;;  %v473_v55 = vor.u32 %v607_v50, %v470_v51  ;;  %v418_v45 = vld [vmem:[%s842_s3 + $0x1] sm:$0x1] }
  0x12   :  { %326 = vmatpush.bf16.msra.mxu0 %v613_v16 }
  0x13   :  { %345 = vmatpush.bf16.msra.mxu1 %v621_v17 }
  0x14   :  { %364 = vmatpush.bf16.msra.mxu2 %v629_v18 }
  0x15   :  { %383 = vmatpush.bf16.msra.mxu3 %v637_v19 }
  0x16   :  { %327 = vmatpush.bf16.msra.mxu0 %v612_v20 }
  0x17   :  { %346 = vmatpush.bf16.msra.mxu1 %v620_v21 }
  0x18   :  { %365 = vmatpush.bf16.msra.mxu2 %v628_v22 }
  0x19   :  { %384 = vmatpush.bf16.msra.mxu3 %v636_v23 }
  0x1a   :  { %328 = vmatpush.bf16.msra.mxu0 %v611_v24 }
  0x1b   :  { %347 = vmatpush.bf16.msra.mxu1 %v619_v25 }
  0x1c   :  { %366 = vmatpush.bf16.msra.mxu2 %v627_v26 }
  0x1d   :  { %385 = vmatpush.bf16.msra.mxu3 %v635_v27 }
  0x1e   :  { %329 = vmatpush.bf16.msra.mxu0 %v610_v28 }
  0x1f   :  { %348 = vmatpush.bf16.msra.mxu1 %v618_v29 }
  0x20   :  { %367 = vmatpush.bf16.msra.mxu2 %v626_v30 }
  0x21   :  { %386 = vmatpush.bf16.msra.mxu3 %v634_v31  ;;  %330 = vmatmul.bf16.vlgmr.msra.gmra.mxu0 %v445_v40 }
  0x22   :  { %349 = vmatmul.bf16.vlgmr.msra.gmra.mxu1 %v449_v41 }
  0x23   :  { %368 = vmatmul.bf16.vlgmr.msra.gmra.mxu2 %v453_v42  ;;  %v406_v42 = vld [vmem:[%s842_s3] sm:$0x1] }
  0x24   :  { %387 = vmatmul.bf16.vlgmr.msra.gmra.mxu3 %v457_v43 }
  0x31   :  { %335 = vmatmul.bf16.gmra.mxu0 %v461_v52 }
  0x32   :  { %354 = vmatmul.bf16.gmra.mxu1 %v465_v53 }
  0x33   :  { %373 = vmatmul.bf16.gmra.mxu2 %v469_v54 }
  0x34   :  { %392 = vmatmul.bf16.gmra.mxu3 %v473_v55 }
  0x9e   :  { %v331_v56 = vpop.f32.mrf.mxu0 }
  0x9f   :  { %v350_v57 = vpop.f32.mrf.mxu1 }
  0xa0   :  { %v351_v63 = vadd.f32 %v350_v57, %v331_v56 }
  0xa6   :  { %v369_v59 = vpop.f32.mrf.mxu2  ;;  %v333_v61 = vpop.f32.mrf.mxu0 }
  0xa7   :  { %v388_v60 = vpop.f32.mrf.mxu3  ;;  %v352_v62 = vpop.f32.mrf.mxu1  ;;  %v370_v0 = vadd.f32 %v369_v59, %v351_v63 }
  0xa8   :  { %v353_v1 = vadd.f32 %v352_v62, %v333_v61 }
  0xa9   :  { %v389_v7 = vadd.f32 %v388_v60, %v370_v0 }
  0xab   :  { %v419_v20 = vmul.f32 %v389_v7, %v389_v7 }
  0xae   :  { %v371_v2 = vpop.f32.mrf.mxu2  ;;  %v336_v5 = vpop.f32.mrf.mxu0 }
  0xaf   :  { %v390_v3 = vpop.f32.mrf.mxu3  ;;  %v372_v4 = vadd.f32 %v371_v2, %v353_v1  ;;  %v355_v6 = vpop.f32.mrf.mxu1 }
  0xb0   :  { %v356_v10 = vadd.f32 %v355_v6, %v336_v5 }
  0xb1   :  { %v391_v8 = vadd.f32 %v390_v3, %v372_v4 }
  0xb3   :  { %v645_v9 = vpack.c.bf16 %v391_v8, %v389_v7  ;;  %v420_v17 = vmul.f32 %v391_v8, %v391_v8  ;;  %v407_v21 = vadd.f32 %v391_v8, %v389_v7 }
  0xb5   :  { %646 = vst [vmem:[%s843_s2] sm:$0xff] %v645_v9   ;;  %v423_v25 = vadd.f32 %v420_v17, %v419_v20 }
  0xb6   :  { %v374_v11 = vpop.f32.mrf.mxu2  ;;  %v338_v14 = vpop.f32.mrf.mxu0 }
  0xb7   :  { %v393_v12 = vpop.f32.mrf.mxu3  ;;  %v375_v13 = vadd.f32 %v374_v11, %v356_v10  ;;  %v357_v15 = vpop.f32.mrf.mxu1 }
  0xb8   :  { %v358_v18 = vadd.f32 %v357_v15, %v338_v14 }
  0xb9   :  { %v394_v16 = vadd.f32 %v393_v12, %v375_v13 }
  0xbb   :  { %v421_v22 = vmul.f32 %v394_v16, %v394_v16  ;;  %v408_v26 = vadd.f32 %v407_v21, %v394_v16 }
  0xbd   :  { %v424_v28 = vadd.f32 %v423_v25, %v421_v22 }
  0xbe   :  { %v376_v19 = vpop.f32.mrf.mxu2 }
  0xbf   :  { %v377_v23 = vadd.f32 %v376_v19, %v358_v18  ;;  %v395_v24 = vpop.f32.mrf.mxu3 }
  0xc1   :  { %v396_v27 = vadd.f32 %v395_v24, %v377_v23 }
  0xc3   :  { %v650_v29 = vpack.c.bf16 %v396_v27, %v394_v16  ;;  %v409_v30 = vadd.f32 %v408_v26, %v396_v27  ;;  %v422_v31 = vmul.f32 %v396_v27, %v396_v27 }
  0xc5   :  { %652 = vst [vmem:[%s843_s2 + $0x8] sm:$0xff] %v650_v29   ;;  %v410_v32 = vrot.slane %v409_v30, 4  ;;  %v425_v33 = vadd.f32 %v424_v28, %v422_v31 }
  0xc7   :  { %v411_v34 = vadd.f32 %v410_v32, %v409_v30  ;;  %v426_v35 = vrot.slane %v425_v33, 4 }
  0xc9   :  { %v412_v36 = vrot.slane %v411_v34, 2  ;;  %v427_v37 = vadd.f32 %v426_v35, %v425_v33 }
  0xcb   :  { %v413_v38 = vadd.f32 %v412_v36, %v411_v34  ;;  %v428_v39 = vrot.slane %v427_v37, 2 }
  0xcd   :  { %v414_v40 = vrot.slane %v413_v38, 1  ;;  %v429_v41 = vadd.f32 %v428_v39, %v427_v37 }
  0xcf   :  { %v415_v43 = vadd.f32 %v414_v40, %v413_v38  ;;  %v430_v44 = vrot.slane %v429_v41, 1 }
  0xd1   :  { %v416_v46 = vadd.f32 %v415_v43, %v406_v42  ;;  %v431_v47 = vadd.f32 %v430_v44, %v429_v41 }
  0xd3   :  { %417 = vst [vmem:[%s842_s3] sm:$0x1] %v416_v46  ;;  %v432_v48 = vadd.f32 %v431_v47, %v418_v45 }
  0xd5   :  { %433 = vst [vmem:[%s842_s3 + $0x1] sm:$0x1] %v432_v48 }

// kernel: discriminator_forward.14
= control target key start
LH: loop header
LB: loop body
LE: loop exit
PB: predicated region body
PF: predicated region fallthrough
CT: control target
= control target key end

     0   :  { %s157_s1 = inlined_call_operand.vmem [shape: f32[8,128], index: 1, kind: input, shape index: {}]   ;;  %s158_s0 = inlined_call_operand.vmem [shape: bf16[32,128], index: 0, kind: input, shape index: {}]   ;;  %s159_s2 = inlined_call_operand.vmem [shape: f32[1,128], index: 2, kind: input, shape index: {}]   ;;  %s160_s3 = inlined_call_operand.vmem [shape: f32[1,128], index: 3, kind: input, shape index: {}]   ;;  %s161_s4 = inlined_call_operand.vmem [shape: bf16[32,128], index: 4, kind: output, shape index: {}]  }
   0x1   :  { %v25_v0 = vld [vmem:[%s157_s1] sm:$0x1]  ;;  %v27_v1 = vld [vmem:[%s157_s1 + $0x1] sm:$0x1]  ;;  %v104_v16 = vld [vmem:[%s158_s0 + $0x8] sm:$0xff]  }
   0x2   :  { %v26_v2 = vmul.f32 0.03125, %v25_v0  ;;  %v28_v3 = vmul.f32 0.03125, %v27_v1  ;;  %v87_v13 = vld [vmem:[%s158_s0] sm:$0xff]   ;;  %v92_v21 = vunpack.c.l.bf16 %v104_v16  ;;  %v93_v23 = vunpack.c.h.bf16 %v104_v16 }
   0x3   :  { %v43_v15 = vld [vmem:[%s159_s2] sm:$0x1]  ;;  %v88_v18 = vunpack.c.l.bf16 %v87_v13  ;;  %v89_v19 = vunpack.c.h.bf16 %v87_v13 }
   0x4   :  { %v29_v4 = vmul.f32 %v26_v2, %v26_v2  ;;  %v45_v22 = vld [vmem:[%s160_s3] sm:$0x1] }
   0x6   :  { %v30_v5 = vsub.f32 %v28_v3, %v29_v4 }
   0x8   :  { %v31_v6 = vmax.f32 %v30_v5, 0.0 }
   0xa   :  { %v32_v7 = vadd.f32 1e-05, %v31_v6 }
   0xc   :  { %106 = vrsqrt.f32 %v32_v7  ;;  %vm39_vm0 = vweird.f32 %v32_v7 }
  0x12   :  { %v107_v8 = vpop.eup %106 }
  0x13   :  { %v34_v9 = vmul.f32 %v107_v8, %v32_v7  ;;  %vm40_vm1 = vweird.f32 %v107_v8 }
  0x14   :  { %vm41_vm2 = vmor %vm39_vm0, %vm40_vm1 }
  0x15   :  { %v35_v10 = vmul.f32 %v107_v8, %v34_v9 }
  0x17   :  { %v36_v11 = vmul.f32 0.5, %v35_v10 }
  0x19   :  { %v37_v12 = vsub.f32 1.5, %v36_v11 }
  0x1b   :  { %v38_v14 = vmul.f32 %v107_v8, %v37_v12 }
  0x1d   :  { %v42_v17 = vsel %vm41_vm2, %v107_v8, %v38_v14 }
  0x1e   :  { %v44_v20 = vmul.f32 %v43_v15, %v42_v17 }
  0x20   :  { %v46_v24 = vmul.f32 %v44_v20, %v26_v2  ;;  %v49_v25 = vperm.slane %v44_v20, 0 }
  0x22   :  { %v47_v26 = vsub.f32 %v45_v22, %v46_v24  ;;  %v51_v27 = vmul.f32 %v88_v18, %v49_v25  ;;  %v52_v28 = vmul.f32 %v89_v19, %v49_v25  ;;  %v53_v29 = vmul.f32 %v92_v21, %v49_v25 }
  0x23   :  { %v54_v30 = vmul.f32 %v93_v23, %v49_v25 }
  0x24   :  { %v56_v31 = vperm.slane %v47_v26, 0 }
  0x26   :  { %v58_v32 = vadd.f32 %v56_v31, %v51_v27  ;;  %v59_v33 = vadd.f32 %v56_v31, %v52_v28  ;;  %v60_v34 = vadd.f32 %v56_v31, %v53_v29  ;;  %v61_v35 = vadd.f32 %v56_v31, %v54_v30 }
  0x28   :  { %vm62_vm3 = vcmp.ge.f32.partialorder %v58_v32, 0.0  ;;  %vm63_vm4 = vcmp.ge.f32.partialorder %v59_v33, 0.0  ;;  %v66_v36 = vmul.f32 0.2, %v58_v32  ;;  %v67_v37 = vmul.f32 0.2, %v59_v33 }
  0x29   :  { %vm64_vm5 = vcmp.ge.f32.partialorder %v60_v34, 0.0  ;;  %vm65_vm6 = vcmp.ge.f32.partialorder %v61_v35, 0.0  ;;  %v68_v38 = vmul.f32 0.2, %v60_v34  ;;  %v69_v39 = vmul.f32 0.2, %v61_v35 }
  0x2a   :  { %v70_v40 = vsel %vm62_vm3, %v58_v32, %v66_v36  ;;  %v71_v41 = vsel %vm63_vm4, %v59_v33, %v67_v37 }
  0x2b   :  { %v97_v42 = vpack.c.bf16 %v71_v41, %v70_v40  ;;  %v72_v43 = vsel %vm64_vm5, %v60_v34, %v68_v38  ;;  %v73_v44 = vsel %vm65_vm6, %v61_v35, %v69_v39 }
  0x2c   :  { %v102_v45 = vpack.c.bf16 %v73_v44, %v72_v43 }
  0x2d   :  { %98 = vst [vmem:[%s161_s4] sm:$0xff] %v97_v42  }
  0x2e   :  { %105 = vst [vmem:[%s161_s4 + $0x8] sm:$0xff] %v102_v45  }

// kernel: discriminator_forward.15
= control target key start
LH: loop header
LB: loop body
LE: loop exit
PB: predicated region body
PF: predicated region fallthrough
CT: control target
= control target key end

     0   :  { %s1207_s1 = inlined_call_operand.vmem [shape: bf16[1024,128], index: 1, kind: input, shape index: {}]   ;;  %s1208_s0 = inlined_call_operand.vmem [shape: bf16[2,1024], index: 0, kind: input, shape index: {}]   ;;  %s1209_s2 = inlined_call_operand.vmem [shape: f32[2,128], index: 2, kind: output, shape index: {}]  }
   0x1   :  { %v933_v0 = vld [vmem:[%s1207_s1 + $0x38] sm:$0xff]  ;;  %v932_v4 = vld [vmem:[%s1207_s1 + $0x30] sm:$0xff]  ;;  %v931_v8 = vld [vmem:[%s1207_s1 + $0x28] sm:$0xff] }
   0x2   :  { %v941_v1 = vld [vmem:[%s1207_s1 + $0x78] sm:$0xff]  ;;  %542 = vmatpush.bf16.msra.mxu0 %v933_v0  ;;  %v940_v5 = vld [vmem:[%s1207_s1 + $0x70] sm:$0xff]  ;;  %v939_v9 = vld [vmem:[%s1207_s1 + $0x68] sm:$0xff] }
   0x3   :  { %v949_v2 = vld [vmem:[%s1207_s1 + $0xb8] sm:$0xff]  ;;  %555 = vmatpush.bf16.msra.mxu1 %v941_v1  ;;  %v948_v6 = vld [vmem:[%s1207_s1 + $0xb0] sm:$0xff]  ;;  %v947_v10 = vld [vmem:[%s1207_s1 + $0xa8] sm:$0xff] }
   0x4   :  { %v957_v3 = vld [vmem:[%s1207_s1 + $0xf8] sm:$0xff]  ;;  %568 = vmatpush.bf16.msra.mxu2 %v949_v2  ;;  %v956_v7 = vld [vmem:[%s1207_s1 + $0xf0] sm:$0xff]  ;;  %v955_v11 = vld [vmem:[%s1207_s1 + $0xe8] sm:$0xff] }
   0x5   :  { %581 = vmatpush.bf16.msra.mxu3 %v957_v3  ;;  %v930_v12 = vld [vmem:[%s1207_s1 + $0x20] sm:$0xff]  ;;  %v929_v17 = vld [vmem:[%s1207_s1 + $0x18] sm:$0xff]  ;;  %v928_v21 = vld [vmem:[%s1207_s1 + $0x10] sm:$0xff] }
   0x6   :  { %543 = vmatpush.bf16.msra.mxu0 %v932_v4  ;;  %v938_v13 = vld [vmem:[%s1207_s1 + $0x60] sm:$0xff]  ;;  %v937_v18 = vld [vmem:[%s1207_s1 + $0x58] sm:$0xff]  ;;  %v936_v22 = vld [vmem:[%s1207_s1 + $0x50] sm:$0xff] }
   0x7   :  { %556 = vmatpush.bf16.msra.mxu1 %v940_v5  ;;  %v946_v14 = vld [vmem:[%s1207_s1 + $0xa0] sm:$0xff]  ;;  %v945_v19 = vld [vmem:[%s1207_s1 + $0x98] sm:$0xff]  ;;  %v944_v23 = vld [vmem:[%s1207_s1 + $0x90] sm:$0xff] }
   0x8   :  { %569 = vmatpush.bf16.msra.mxu2 %v948_v6  ;;  %v954_v15 = vld [vmem:[%s1207_s1 + $0xe0] sm:$0xff]  ;;  %v953_v20 = vld [vmem:[%s1207_s1 + $0xd8] sm:$0xff]  ;;  %v952_v24 = vld [vmem:[%s1207_s1 + $0xd0] sm:$0xff] }
   0x9   :  { %582 = vmatpush.bf16.msra.mxu3 %v956_v7  ;;  %v11_v16 = vld [vmem:[%s1208_s0] sm:$0xff]  ;;  %v927_v25 = vld [vmem:[%s1207_s1 + $0x8] sm:$0xff]  ;;  %v965_v33 = vld [vmem:[%s1207_s1 + $0x138] sm:$0xff] }
   0xa   :  { %544 = vmatpush.bf16.msra.mxu0 %v931_v8  ;;  %141 = vst [vmem:[#allocation1] ss:$9 sm:$0xff] %v11_v16  ;;  %v935_v26 = vld [vmem:[%s1207_s1 + $0x48] sm:$0xff]  ;;  %v926_v29 = vld [vmem:[%s1207_s1] sm:$0xff]  ;;  %v973_v34 = vld [vmem:[%s1207_s1 + $0x178] sm:$0xff] }
   0xb   :  { %557 = vmatpush.bf16.msra.mxu1 %v939_v9  ;;  %v943_v27 = vld [vmem:[%s1207_s1 + $0x88] sm:$0xff]  ;;  %v934_v30 = vld [vmem:[%s1207_s1 + $0x40] sm:$0xff]  ;;  %v981_v35 = vld [vmem:[%s1207_s1 + $0x1b8] sm:$0xff] }
   0xc   :  { %570 = vmatpush.bf16.msra.mxu2 %v947_v10  ;;  %v951_v28 = vld [vmem:[%s1207_s1 + $0xc8] sm:$0xff]  ;;  %v942_v31 = vld [vmem:[%s1207_s1 + $0x80] sm:$0xff]  ;;  %v989_v36 = vld [vmem:[%s1207_s1 + $0x1f8] sm:$0xff] }
   0xd   :  { %583 = vmatpush.bf16.msra.mxu3 %v955_v11  ;;  %v950_v32 = vld [vmem:[%s1207_s1 + $0xc0] sm:$0xff]  ;;  %v964_v37 = vld [vmem:[%s1207_s1 + $0x130] sm:$0xff]  ;;  %v963_v45 = vld [vmem:[%s1207_s1 + $0x128] sm:$0xff] }
   0xe   :  { %545 = vmatpush.bf16.msra.mxu0 %v930_v12  ;;  %v972_v40 = vld [vmem:[%s1207_s1 + $0x170] sm:$0xff]  ;;  %v971_v46 = vld [vmem:[%s1207_s1 + $0x168] sm:$0xff]  ;;  %v962_v49 = vld [vmem:[%s1207_s1 + $0x120] sm:$0xff] }
   0xf   :  { %558 = vmatpush.bf16.msra.mxu1 %v938_v13  ;;  %v980_v43 = vld [vmem:[%s1207_s1 + $0x1b0] sm:$0xff]  ;;  %v979_v47 = vld [vmem:[%s1207_s1 + $0x1a8] sm:$0xff]  ;;  %v970_v50 = vld [vmem:[%s1207_s1 + $0x160] sm:$0xff] }
  0x10   :  { %571 = vmatpush.bf16.msra.mxu2 %v946_v14  ;;  %v988_v44 = vld [vmem:[%s1207_s1 + $0x1f0] sm:$0xff]  ;;  %v987_v48 = vld [vmem:[%s1207_s1 + $0x1e8] sm:$0xff]  ;;  %v978_v51 = vld [vmem:[%s1207_s1 + $0x1a0] sm:$0xff] }
  0x11   :  { %584 = vmatpush.bf16.msra.mxu3 %v954_v15  ;;  %v144_v38 = vld [vmem:[#allocation1 + $0x12] sm:$0xff]  ;;  %v142_v39 = vld [vmem:[#allocation1] sm:$0xff]  ;;  %v143_v42 = vld [vmem:[#allocation1 + $0x9] sm:$0xff] }
  0x12   :  { %546 = vmatpush.bf16.msra.mxu0 %v929_v17  ;;  %v145_v41 = vld [vmem:[#allocation1 + $0x1b] sm:$0xff]  ;;  %v960_v57 = vld [vmem:[%s1207_s1 + $0x110] sm:$0xff]  ;;  %v959_v61 = vld [vmem:[%s1207_s1 + $0x108] sm:$0xff] }
  0x13   :  { %559 = vmatpush.bf16.msra.mxu1 %v937_v18  ;;  %v986_v52 = vld [vmem:[%s1207_s1 + $0x1e0] sm:$0xff]  ;;  %v961_v53 = vld [vmem:[%s1207_s1 + $0x118] sm:$0xff]  ;;  %v968_v58 = vld [vmem:[%s1207_s1 + $0x150] sm:$0xff] }
  0x14   :  { %572 = vmatpush.bf16.msra.mxu2 %v945_v19  ;;  %v969_v54 = vld [vmem:[%s1207_s1 + $0x158] sm:$0xff]  ;;  %v976_v59 = vld [vmem:[%s1207_s1 + $0x190] sm:$0xff]  ;;  %v967_v62 = vld [vmem:[%s1207_s1 + $0x148] sm:$0xff] }
  0x15   :  { %585 = vmatpush.bf16.msra.mxu3 %v953_v20  ;;  %v977_v55 = vld [vmem:[%s1207_s1 + $0x198] sm:$0xff]  ;;  %v984_v60 = vld [vmem:[%s1207_s1 + $0x1d0] sm:$0xff]  ;;  %v975_v63 = vld [vmem:[%s1207_s1 + $0x188] sm:$0xff] }
  0x16   :  { %547 = vmatpush.bf16.msra.mxu0 %v928_v21  ;;  %v985_v56 = vld [vmem:[%s1207_s1 + $0x1d8] sm:$0xff]  ;;  %v983_v0 = vld [vmem:[%s1207_s1 + $0x1c8] sm:$0xff]  ;;  %v958_v1 = vld [vmem:[%s1207_s1 + $0x100] sm:$0xff] }
  0x17   :  { %560 = vmatpush.bf16.msra.mxu1 %v936_v22  ;;  %v966_v2 = vld [vmem:[%s1207_s1 + $0x140] sm:$0xff]  ;;  %v147_v6 = vld [vmem:[#allocation1 + $0x2d] sm:$0xff]  ;;  %v148_v7 = vld [vmem:[#allocation1 + $0x36] sm:$0xff] }
  0x18   :  { %573 = vmatpush.bf16.msra.mxu2 %v944_v23  ;;  %v974_v3 = vld [vmem:[%s1207_s1 + $0x180] sm:$0xff] }
  0x19   :  { %586 = vmatpush.bf16.msra.mxu3 %v952_v24  ;;  %v982_v4 = vld [vmem:[%s1207_s1 + $0x1c0] sm:$0xff] }
  0x1a   :  { %548 = vmatpush.bf16.msra.mxu0 %v927_v25  ;;  %v146_v5 = vld [vmem:[#allocation1 + $0x24] sm:$0xff] }
  0x1b   :  { %561 = vmatpush.bf16.msra.mxu1 %v935_v26  ;;  %v149_v8 = vld [vmem:[#allocation1 + $0x3f] sm:$0xff] }
  0x1c   :  { %574 = vmatpush.bf16.msra.mxu2 %v943_v27 }
  0x1d   :  { %587 = vmatpush.bf16.msra.mxu3 %v951_v28 }
  0x1e   :  { %549 = vmatpush.bf16.msra.mxu0 %v926_v29 }
  0x1f   :  { %562 = vmatpush.bf16.msra.mxu1 %v934_v30 }
  0x20   :  { %575 = vmatpush.bf16.msra.mxu2 %v942_v31 }
  0x21   :  { %588 = vmatpush.bf16.msra.mxu3 %v950_v32  ;;  %550 = vmatmul.bf16.vlgmr.msra.gmra.mxu0 %v142_v39 }
  0x22   :  { %594 = vmatpush.bf16.msrb.mxu0 %v965_v33  ;;  %563 = vmatmul.bf16.vlgmr.msra.gmra.mxu1 %v143_v42 }
  0x23   :  { %607 = vmatpush.bf16.msrb.mxu1 %v973_v34  ;;  %576 = vmatmul.bf16.vlgmr.msra.gmra.mxu2 %v144_v38 }
  0x24   :  { %620 = vmatpush.bf16.msrb.mxu2 %v981_v35  ;;  %589 = vmatmul.bf16.vlgmr.msra.gmra.mxu3 %v145_v41 }
  0x25   :  { %633 = vmatpush.bf16.msrb.mxu3 %v989_v36 }
  0x26   :  { %595 = vmatpush.bf16.msrb.mxu0 %v964_v37 }
  0x27   :  { %608 = vmatpush.bf16.msrb.mxu1 %v972_v40 }
  0x28   :  { %621 = vmatpush.bf16.msrb.mxu2 %v980_v43 }
  0x29   :  { %634 = vmatpush.bf16.msrb.mxu3 %v988_v44 }
  0x2a   :  { %596 = vmatpush.bf16.msrb.mxu0 %v963_v45 }
  0x2b   :  { %609 = vmatpush.bf16.msrb.mxu1 %v971_v46 }
  0x2c   :  { %622 = vmatpush.bf16.msrb.mxu2 %v979_v47 }
  0x2d   :  { %635 = vmatpush.bf16.msrb.mxu3 %v987_v48 }
  0x2e   :  { %597 = vmatpush.bf16.msrb.mxu0 %v962_v49 }
  0x2f   :  { %610 = vmatpush.bf16.msrb.mxu1 %v970_v50 }
  0x30   :  { %623 = vmatpush.bf16.msrb.mxu2 %v978_v51 }
  0x31   :  { %636 = vmatpush.bf16.msrb.mxu3 %v986_v52 }
  0x32   :  { %598 = vmatpush.bf16.msrb.mxu0 %v961_v53 }
  0x33   :  { %611 = vmatpush.bf16.msrb.mxu1 %v969_v54 }
  0x34   :  { %624 = vmatpush.bf16.msrb.mxu2 %v977_v55 }
  0x35   :  { %637 = vmatpush.bf16.msrb.mxu3 %v985_v56 }
  0x36   :  { %599 = vmatpush.bf16.msrb.mxu0 %v960_v57 }
  0x37   :  { %612 = vmatpush.bf16.msrb.mxu1 %v968_v58 }
  0x38   :  { %625 = vmatpush.bf16.msrb.mxu2 %v976_v59 }
  0x39   :  { %638 = vmatpush.bf16.msrb.mxu3 %v984_v60 }
  0x3a   :  { %600 = vmatpush.bf16.msrb.mxu0 %v959_v61 }
  0x3b   :  { %613 = vmatpush.bf16.msrb.mxu1 %v967_v62 }
  0x3c   :  { %626 = vmatpush.bf16.msrb.mxu2 %v975_v63 }
  0x3d   :  { %639 = vmatpush.bf16.msrb.mxu3 %v983_v0 }
  0x3e   :  { %601 = vmatpush.bf16.msrb.mxu0 %v958_v1 }
  0x3f   :  { %614 = vmatpush.bf16.msrb.mxu1 %v966_v2 }
  0x40   :  { %627 = vmatpush.bf16.msrb.mxu2 %v974_v3 }
  0x41   :  { %640 = vmatpush.bf16.msrb.mxu3 %v982_v4  ;;  %602 = vmatmul.bf16.vlgmr.msrb.gmra.mxu0 %v146_v5 }
  0x42   :  { %615 = vmatmul.bf16.vlgmr.msrb.gmra.mxu1 %v147_v6 }
  0x43   :  { %628 = vmatmul.bf16.vlgmr.msrb.gmra.mxu2 %v148_v7 }
  0x44   :  { %641 = vmatmul.bf16.vlgmr.msrb.gmra.mxu3 %v149_v8 }
  0x9e   :  { %v551_v9 = vpop.f32.mrf.mxu0 }
  0x9f   :  { %v564_v10 = vpop.f32.mrf.mxu1 }
  0xa0   :  { %v565_v17 = vadd.f32 %v564_v10, %v551_v9 }
  0xa6   :  { %v577_v11 = vpop.f32.mrf.mxu2  ;;  %v553_v13 = vpop.f32.mrf.mxu0 }
  0xa7   :  { %v590_v12 = vpop.f32.mrf.mxu3  ;;  %v566_v14 = vpop.f32.mrf.mxu1  ;;  %v578_v18 = vadd.f32 %v577_v11, %v565_v17 }
  0xa9   :  { %v591_v19 = vadd.f32 %v590_v12, %v578_v18 }
  0xae   :  { %v579_v15 = vpop.f32.mrf.mxu2 }
  0xaf   :  { %v592_v16 = vpop.f32.mrf.mxu3 }
  0xbe   :  { %v603_v20 = vpop.f32.mrf.mxu0 }
  0xbf   :  { %v616_v21 = vpop.f32.mrf.mxu1  ;;  %v604_v22 = vadd.f32 %v603_v20, %v591_v19 }
  0xc1   :  { %v617_v23 = vadd.f32 %v616_v21, %v604_v22 }
  0xc6   :  { %v629_v24 = vpop.f32.mrf.mxu2  ;;  %v605_v27 = vpop.f32.mrf.mxu0 }
  0xc7   :  { %v642_v25 = vpop.f32.mrf.mxu3  ;;  %v630_v26 = vadd.f32 %v629_v24, %v617_v23  ;;  %v618_v28 = vpop.f32.mrf.mxu1 }
  0xc9   :  { %v643_v29 = vadd.f32 %v642_v25, %v630_v26 }
  0xcb   :  { %v646_v30 = vsub.f32 0.0, %v643_v29 }
  0xcd   :  { %v647_v31 = vmul.f32 1.442695, %v646_v30 }
  0xce   :  { %v631_v32 = vpop.f32.mrf.mxu2 }
  0xcf   :  { %v644_v33 = vpop.f32.mrf.mxu3  ;;  %990 = vpow2.f32 %v647_v31 }
  0xd5   :  { %v991_v34 = vpop.eup %990 }
  0xd6   :  { %v649_v35 = vadd.f32 1.0, %v991_v34 }
  0xd8   :  { %992 = vrcp.f32 %v649_v35  ;;  %v661_v39 = vand.u32 2147483648, %v649_v35  ;;  %v659_v41 = vand.u32 2147483647, %v649_v35  ;;  %vm655_vm1 = vweird.f32 %v649_v35 }
  0xda   :  { %v662_v43 = vor.u32 1.1754944e-38, %v661_v39  ;;  %vm660_vm3 = vcmp.eq.f32.partialorder %v659_v41, 8.507059e+37 }
  0xde   :  { %v993_v36 = vpop.eup %992 }
  0xdf   :  { %v651_v37 = vmul.f32 %v993_v36, %v649_v35  ;;  %vm656_vm0 = vweird.f32 %v993_v36 }
  0xe0   :  { %vm657_vm2 = vmor %vm655_vm1, %vm656_vm0 }
  0xe1   :  { %v652_v38 = vsub.f32 1.0, %v651_v37 }
  0xe3   :  { %v653_v40 = vmul.f32 %v993_v36, %v652_v38 }
  0xe5   :  { %v654_v42 = vadd.f32 %v993_v36, %v653_v40 }
  0xe7   :  { %v658_v44 = vsel %vm657_vm2, %v993_v36, %v654_v42 }
  0xe8   :  { %v663_v45 = vsel %vm660_vm3, %v662_v43, %v658_v44 }
  0xe9   :  { %665 = vst [vmem:[%s1209_s2] sm:$0x3] %v663_v45 }

</bundles_post_ra>
